<compile_context>
chip_gen: v7x
topology: tpu7x:2x2x1
jax: 0.10.0
libtpu: 0.0.40
codegen_flags: <defaults>
</compile_context>

<pallas_src>
import functools

import jax
import jax.numpy as jnp
from jax import lax
from jax.experimental import pallas as pl
from jax.experimental.pallas import tpu as pltpu

LANE = 128


def _round_up(x, m):
    return ((x + m - 1) // m) * m


def _default_vmem_limit():
    """Generation-aware VMEM limit: 3/4 of capacity (<=96 MiB); 32 MiB fallback is safe everywhere."""
    try:
        cap = int(pltpu.get_tpu_info().vmem_capacity_bytes)
        return max(32 * 1024 * 1024, min(cap * 3 // 4, 96 * 1024 * 1024))
    except Exception:
        return 32 * 1024 * 1024


_VMEM_LIMIT = _default_vmem_limit()


# ----------------------------------------------------------------------------
# Pallas kernels
# ----------------------------------------------------------------------------

def _make_conv_kernel(n_relu_cols: int, n_cols: int, has_residual: bool):
    """Fused im2col-matmul conv + folded-BN bias (+ residual) (+ ReLU on the first
    n_relu_cols output columns — partial ReLU is used when a shortcut conv is fused
    as extra output columns of conv1)."""

    def kernel(p_ref, w_ref, b_ref, *rest):
        if has_residual:
            r_ref, o_ref = rest
        else:
            (o_ref,) = rest
        # bf16 x bf16 MXU matmul with f32 accumulation.
        acc = jnp.dot(p_ref[...], w_ref[...], preferred_element_type=jnp.float32)
        y = acc + b_ref[...]                      # folded-BN bias (scale is in the weights)
        if has_residual:
            y = y + r_ref[...].astype(jnp.float32)
        if n_relu_cols >= n_cols:
            y = jnp.maximum(y, 0.0)
        elif n_relu_cols > 0:
            col = lax.broadcasted_iota(jnp.int32, y.shape, 1)
            y = jnp.where(col < n_relu_cols, jnp.maximum(y, 0.0), y)
        o_ref[...] = y.astype(o_ref.dtype)

    return kernel


def _head_kernel(f_ref, w_ref, b_ref, o_ref):
    """Global-average-pool folded into the classifier weights: one MXU matmul + bias."""
    out = jnp.dot(f_ref[...], w_ref[...], preferred_element_type=jnp.float32) + b_ref[...]
    o_ref[...] = out


# ----------------------------------------------------------------------------
# pallas_call wrappers
# ----------------------------------------------------------------------------

def _pick_tm(M, cap=256):
    """16-row aligned (bf16 sublanes), >=2 grid steps when possible (v7x megacore),
    exact divisor of M when possible (avoids the XLA row-pad of patches/residual)."""
    if M <= 16:
        return 16
    tm = min(cap, _round_up((M + 1) // 2, 16))
    while M % tm != 0 and tm > 16:
        tm -= 16
    return tm


def _conv_pallas(patches, w_mat, bias2, n_relu_cols, residual=None, res_col_block=0,
                 tm_cap=256):
    """patches: [M, K] bf16 (K a 128-multiple), w_mat: [K, ncols] bf16 (BN-scale folded,
    ncols a 128-multiple), bias2: [1, ncols] f32, residual: bf16 array whose column block
    `res_col_block` (width ncols) is added before the final ReLU.  Returns [M, ncols] bf16."""
    M, K = patches.shape
    ncols = w_mat.shape[1]

    TM = _pick_tm(M, tm_cap)
    Mp = _round_up(M, TM)
    if Mp != M:
        patches = jnp.pad(patches, ((0, Mp - M), (0, 0)))
        if residual is not None:
            residual = jnp.pad(residual, ((0, Mp - M), (0, 0)))

    in_specs = [
        pl.BlockSpec((TM, K), lambda i: (i, 0)),      # patch-row tile, pipelined over the grid
        pl.BlockSpec((K, ncols), lambda i: (0, 0)),   # full weight matrix, resident
        pl.BlockSpec((1, ncols), lambda i: (0, 0)),   # folded-BN bias
    ]
    args = [patches, w_mat, bias2]
    if residual is not None:
        in_specs.append(
            pl.BlockSpec((TM, ncols), lambda i, cb=res_col_block: (i, cb)))
        args.append(residual)

    out = pl.pallas_call(
        _make_conv_kernel(n_relu_cols, ncols, residual is not None),
        out_shape=jax.ShapeDtypeStruct((Mp, ncols), jnp.bfloat16),
        grid=(Mp // TM,),
        in_specs=in_specs,
        out_specs=pl.BlockSpec((TM, ncols), lambda i: (i, 0)),
        compiler_params=pltpu.CompilerParams(
            dimension_semantics=("parallel",),
            vmem_limit_bytes=_VMEM_LIMIT),
    )(*args)
    return out[:M] if Mp != M else out


def _head_pallas(feat, params, hw):
    """feat: [N, hw*Cp] bf16.  GAP (1/hw) is folded into the classifier weights here, using
    the actual final spatial size; batch is padded to 16 rows for a full-sublane tile."""
    N, K = feat.shape
    w = params["head_w"]                                  # [Cp, ncls_p] f32
    cp = w.shape[0]
    assert K == hw * cp, (K, hw, cp)
    w_full = (jnp.tile(w, (hw, 1)) / float(hw)).astype(jnp.bfloat16)   # [hw*Cp, ncls_p]
    b = params["head_b"]                                  # [1, ncls_p] f32
    NC = w_full.shape[1]

    Np = _round_up(N, 16)
    if Np != N:
        feat = jnp.pad(feat, ((0, Np - N), (0, 0)))

    out = pl.pallas_call(
        _head_kernel,
        out_shape=jax.ShapeDtypeStruct((Np, NC), jnp.float32),
        grid=(1,),
        in_specs=[pl.BlockSpec((Np, K), lambda i: (0, 0)),
                  pl.BlockSpec((K, NC), lambda i: (0, 0)),
                  pl.BlockSpec((1, NC), lambda i: (0, 0))],
        out_specs=pl.BlockSpec((Np, NC), lambda i: (0, 0)),
        compiler_params=pltpu.CompilerParams(
            dimension_semantics=("arbitrary",),
            vmem_limit_bytes=_VMEM_LIMIT),
    )(feat, w_full, b)
    return out[:N]


# ----------------------------------------------------------------------------
# Glue: im2col (real-channel taps, single K pad), block topology
# ----------------------------------------------------------------------------

def _im2col(x_nhwc, cin_real, kh, kw, stride, padding):
    """Slice to the REAL channel count, concatenate the kh*kw taps, pad total K once to a
    128-multiple.  Returns bf16 patches [N*Ho*Wo, Kp], Ho, Wo."""
    x = x_nhwc[..., :cin_real]
    N, H, W, _ = x.shape
    if padding:
        x = jnp.pad(x, ((0, 0), (padding, padding), (padding, padding), (0, 0)))
    Ho = (H + 2 * padding - kh) // stride + 1
    Wo = (W + 2 * padding - kw) // stride + 1
    if kh == 1 and kw == 1:
        patches = x[:, ::stride, ::stride, :]
    else:
        cols = [x[:, i:i + (Ho - 1) * stride + 1:stride,
                  j:j + (Wo - 1) * stride + 1:stride, :]
                for i in range(kh) for j in range(kw)]
        patches = jnp.concatenate(cols, axis=-1)          # [N, Ho, Wo, kh*kw*cin_real]
    k_real = kh * kw * cin_real
    patches = patches.reshape(N * Ho * Wo, k_real)
    kp = _round_up(k_real, LANE)
    if kp != k_real:
        patches = jnp.pad(patches, ((0, 0), (0, kp - k_real)))
    return patches.astype(jnp.bfloat16), Ho, Wo


def _basic_block(x, p, stride):
    """out = relu(bn2(conv2(relu(bn1(conv1(x))))) + shortcut(x)) as two pallas_calls."""
    N, H, W, Cp = x.shape
    c1, c2 = p["conv1"], p["conv2"]
    cout_p = c1["n_relu_cols"]

    # conv1 (+ fused shortcut conv as extra output columns for downsample blocks)
    patches1, Ho, Wo = _im2col(x, p["cin"], c1["kh"], c1["kw"], stride, 1)
    y1 = _conv_pallas(patches1, c1["w"], c1["b"], c1["n_relu_cols"])

    if p["has_shortcut"]:
        act = y1[:, :cout_p]                       # relu(bn1(conv1(x)))
        residual, res_cb = y1, 1                   # bn_sc(conv_sc(x)) lives in cols [Cp:2Cp)
    else:
        act = y1
        residual, res_cb = x.reshape(N * H * W, Cp), 0   # identity shortcut

    act_nhwc = act.reshape(N, Ho, Wo, cout_p)

    # conv2 + residual + relu
    patches2, _, _ = _im2col(act_nhwc, p["planes"], c2["kh"], c2["kw"], 1, 1)
    y2 = _conv_pallas(patches2, c2["w"], c2["b"], c2["n_relu_cols"],
                      residual=residual, res_col_block=res_cb)
    return y2.reshape(N, Ho, Wo, cout_p)


def resnet_forward(x_nchw, params):
    """ResNet forward, returnt='out'. Input is NCHW like PyTorch."""
    x = jnp.transpose(x_nchw, (0, 2, 3, 1)).astype(jnp.bfloat16)   # NCHW -> NHWC bf16
    N = x.shape[0]

    st = params["stem"]
    patches, Ho, Wo = _im2col(x, x.shape[-1], st["kh"], st["kw"], 1, 1)
    out = _conv_pallas(patches, st["w"], st["b"], st["n_relu_cols"])
    out = out.reshape(N, Ho, Wo, st["n_relu_cols"])

    for layer_params in params["layers"]:
        for block_params, stride in layer_params:
            out = _basic_block(out, block_params, stride)

    N, H, W, Cp = out.shape
    feat = out.reshape(N, H * W * Cp)
    logits = _head_pallas(feat, params, H * W)
    return logits[:, :params["num_classes"]]


# ----------------------------------------------------------------------------
# Host-side parameter preparation (BN fold, shortcut fusion, K/C padding, bf16 cast)
# ----------------------------------------------------------------------------

def _prep_conv_bn(p, fuse_shortcut=None):
    w, scale, bias = p                                   # w: [KH,KW,Cin,Cout]
    kh, kw, cin, cout = w.shape
    cout_p = _round_up(cout, LANE)
    k_real = kh * kw * cin

    w2 = (w * scale[None, None, None, :]).reshape(k_real, cout)   # fold BN scale into weights
    w2 = jnp.pad(w2, ((0, 0), (0, cout_p - cout)))
    b = jnp.pad(bias, (0, cout_p - cout))

    if fuse_shortcut is not None:
        # A 1x1 stride-s shortcut conv reads exactly the CENTER tap of the 3x3 stride-s conv1
        # patch, so its weights become extra output columns of conv1's weight matrix.
        sw, sscale, sbias = fuse_shortcut                # sw: [1,1,Cin,Cout_sc]
        scout = sw.shape[3]
        scout_p = _round_up(scout, LANE)
        sw2 = sw[0, 0] * sscale[None, :]                 # [Cin, Cout_sc], BN scale folded
        center = (kh // 2) * kw + (kw // 2)
        sw_full = jnp.pad(sw2, ((center * cin, k_real - (center + 1) * cin),
                                (0, scout_p - scout)))
        w2 = jnp.concatenate([w2, sw_full], axis=1)
        b = jnp.concatenate([b, jnp.pad(sbias, (0, scout_p - scout))])

    kp = _round_up(k_real, LANE)                         # pad total K once (128-multiple)
    w2 = jnp.pad(w2, ((0, kp - k_real), (0, 0)))
    return {
        "w": w2.astype(jnp.bfloat16),
        "b": b.astype(jnp.float32).reshape(1, -1),
        "n_relu_cols": cout_p,                           # ReLU only the conv's own columns
        "kh": kh, "kw": kw,
    }


def prepare_params(params):
    prep = {"stem": _prep_conv_bn(params["stem"])}
    layers = []
    for layer in params["layers"]:
        lp = []
        for bp, s in layer:
            w1 = bp["conv1"][0]
            nbp = {
                "cin": int(w1.shape[2]),
                "planes": int(w1.shape[3]),
                "has_shortcut": "shortcut" in bp,
                "conv1": _prep_conv_bn(bp["conv1"], fuse_shortcut=bp.get("shortcut")),
                "conv2": _prep_conv_bn(bp["conv2"]),
            }
            lp.append((nbp, s))
        layers.append(lp)
    prep["layers"] = layers

    fc_w, fc_b = params["fc_w"], params["fc_b"]          # [feat_dim, ncls], [ncls]
    feat_dim, ncls = fc_w.shape
    cp = _round_up(feat_dim, LANE)
    ncls_p = _round_up(ncls, LANE)
    prep["head_w"] = jnp.pad(fc_w, ((0, cp - feat_dim), (0, ncls_p - ncls))).astype(jnp.float32)
    prep["head_b"] = jnp.pad(fc_b, (0, ncls_p - ncls)).astype(jnp.float32).reshape(1, ncls_p)
    prep["num_classes"] = ncls
    return prep


# ----------------------------------------------------------------------------
# Deterministic parameter initialization (synthetic, no checkpoint)
# ----------------------------------------------------------------------------

def _init_conv_bn(key, kh, kw, cin, cout):
    k1, k2, k3, k4, k5 = jax.random.split(key, 5)
    fan_in = kh * kw * cin
    w = jax.random.normal(k1, (kh, kw, cin, cout), jnp.float32) / jnp.sqrt(float(fan_in))
    gamma = jax.random.uniform(k2, (cout,), jnp.float32, 0.9, 1.1)
    beta = 0.01 * jax.random.normal(k3, (cout,), jnp.float32)
    running_mean = 0.01 * jax.random.normal(k4, (cout,), jnp.float32)
    running_var = jax.random.uniform(k5, (cout,), jnp.float32, 0.9, 1.1)
    scale = gamma / jnp.sqrt(running_var + 1e-5)           # inference-mode BN fold
    bias = beta - running_mean * scale
    return (w, scale, bias)


def init_resnet_params(key, nf=8, num_blocks=(2, 2, 2, 2), num_classes=10, in_ch=3):
    keys = iter(jax.random.split(key, 64))
    params = {"stem": _init_conv_bn(next(keys), 3, 3, in_ch, nf)}

    in_planes = nf
    layers = []
    for planes_mult, nblocks, stride0 in zip((1, 2, 4, 8), num_blocks, (1, 2, 2, 2)):
        planes = nf * planes_mult
        strides = [stride0] + [1] * (nblocks - 1)
        layer = []
        for s in strides:
            bp = {
                "conv1": _init_conv_bn(next(keys), 3, 3, in_planes, planes),
                "conv2": _init_conv_bn(next(keys), 3, 3, planes, planes),
            }
            if s != 1 or in_planes != planes:
                bp["shortcut"] = _init_conv_bn(next(keys), 1, 1, in_planes, planes)
            layer.append((bp, s))
            in_planes = planes
        layers.append(layer)
    params["layers"] = layers

    kw_, kb_ = jax.random.split(next(keys))
    feat_dim = nf * 8
    bound = 1.0 / jnp.sqrt(float(feat_dim))
    params["fc_w"] = jax.random.uniform(kw_, (feat_dim, num_classes), jnp.float32, -bound, bound)
    params["fc_b"] = jax.random.uniform(kb_, (num_classes,), jnp.float32, -bound, bound)
    return params


# ----------------------------------------------------------------------------
# Main
# ----------------------------------------------------------------------------

if __name__ == "__main__":
    key = jax.random.PRNGKey(0)
    k_params, k_x = jax.random.split(key)

    # ResNet18 topology at small width: nf=8, blocks=[2,2,2,2], 10 classes.
    params = init_resnet_params(k_params, nf=8, num_blocks=(2, 2, 2, 2), num_classes=10)
    prep = prepare_params(params)

    # PyTorch-style NCHW input: batch=2, 3 channels, 16x16 spatial.
    x = jax.random.normal(k_x, (2, 3, 16, 16), jnp.float32)

    fwd = jax.jit(functools.partial(resnet_forward, params=prep))
    logits = jax.block_until_ready(fwd(x))

    assert logits.shape == (2, 10), logits.shape
    assert bool(jnp.all(jnp.isfinite(logits)))
    print("KERNEL_OK")
</pallas_src>

<mosaic_0001>
module attributes {stable_mosaic.version = 11 : i64} {
  func.func @kernel(%arg0: i32, %arg1: memref<256x128xbf16, #tpu.memory_space<vmem>>, %arg2: memref<128x128xbf16, #tpu.memory_space<vmem>>, %arg3: memref<1x128xf32, #tpu.memory_space<vmem>>, %arg4: memref<256x128xbf16, #tpu.memory_space<vmem>>) attributes {dimension_semantics = [#tpu.dimension_semantics<parallel>], iteration_bounds = array<i64: 2>, scalar_prefetch = 0 : i64, scratch_operands = 0 : i64, tpu.core_type = #tpu.core_type<tc>, window_params = [{transform_indices = @transform_0, window_bounds = array<i64: 256, 128>}, {pipeline_mode = #tpu.pipeline_mode<synchronous>, transform_indices = @transform_1, window_bounds = array<i64: 128, 128>}, {pipeline_mode = #tpu.pipeline_mode<synchronous>, transform_indices = @transform_2, window_bounds = array<i64: 1, 128>}, {transform_indices = @transform_3, window_bounds = array<i64: 256, 128>}]} {
    %c0 = arith.constant 0 : index
    %c0_0 = arith.constant 0 : index
    %0 = vector.load %arg1[%c0, %c0_0] : memref<256x128xbf16, #tpu.memory_space<vmem>>, vector<256x128xbf16>
    %c0_1 = arith.constant 0 : index
    %c0_2 = arith.constant 0 : index
    %1 = vector.load %arg2[%c0_1, %c0_2] : memref<128x128xbf16, #tpu.memory_space<vmem>>, vector<128x128xbf16>
    %cst = arith.constant dense<0.000000e+00> : vector<256x128xf32>
    %2 = tpu.matmul %0, %1, %cst {dimension_numbers = #tpu.dot_dimension_numbers<[1], [0], [0], [1], [0, 0, 1, 1], [], []>} : vector<256x128xbf16>, vector<128x128xbf16>, vector<256x128xf32> -> vector<256x128xf32>
    %c0_3 = arith.constant 0 : index
    %c0_4 = arith.constant 0 : index
    %3 = vector.load %arg3[%c0_3, %c0_4] : memref<1x128xf32, #tpu.memory_space<vmem>>, vector<1x128xf32>
    %4 = vector.broadcast %3 : vector<1x128xf32> to vector<256x128xf32>
    %5 = arith.addf %2, %4 : vector<256x128xf32>
    %cst_5 = arith.constant 0.000000e+00 : f32
    %6 = vector.broadcast %cst_5 : f32 to vector<256x128xf32>
    %7 = arith.maximumf %5, %6 : vector<256x128xf32>
    %8 = arith.truncf %7 : vector<256x128xf32> to vector<256x128xbf16>
    %c0_6 = arith.constant 0 : index
    %c0_7 = arith.constant 0 : index
    %9 = vector.load %arg4[%c0_6, %c0_7] : memref<256x128xbf16, #tpu.memory_space<vmem>>, vector<256x128xbf16>
    tpu.vector_store %arg4[%c0_6, %c0_7], %8 {strides = array<i32>} : memref<256x128xbf16, #tpu.memory_space<vmem>>, vector<256x128xbf16>,
    return
  }
  func.func @transform_0(%arg0: i32) -> (i32, i32) {
    %c0_i32 = arith.constant 0 : i32
    %c0_i32_0 = arith.constant 0 : i32
    return %arg0, %c0_i32 : i32, i32
  }
  func.func @transform_1(%arg0: i32) -> (i32, i32) {
    %c0_i32 = arith.constant 0 : i32
    %c0_i32_0 = arith.constant 0 : i32
    %c0_i32_1 = arith.constant 0 : i32
    return %c0_i32, %c0_i32_0 : i32, i32
  }
  func.func @transform_2(%arg0: i32) -> (i32, i32) {
    %c0_i32 = arith.constant 0 : i32
    %c0_i32_0 = arith.constant 0 : i32
    %c0_i32_1 = arith.constant 0 : i32
    return %c0_i32, %c0_i32_0 : i32, i32
  }
  func.func @transform_3(%arg0: i32) -> (i32, i32) {
    %c0_i32 = arith.constant 0 : i32
    %c0_i32_0 = arith.constant 0 : i32
    return %arg0, %c0_i32 : i32, i32
  }
}

module attributes {stable_mosaic.version = 11 : i64} {
  func.func @kernel(%arg0: i32, %arg1: memref<256x128xbf16, #tpu.memory_space<vmem>>, %arg2: memref<128x128xbf16, #tpu.memory_space<vmem>>, %arg3: memref<1x128xf32, #tpu.memory_space<vmem>>, %arg4: memref<256x128xbf16, #tpu.memory_space<vmem>>, %arg5: memref<256x128xbf16, #tpu.memory_space<vmem>>) attributes {dimension_semantics = [#tpu.dimension_semantics<parallel>], iteration_bounds = array<i64: 2>, scalar_prefetch = 0 : i64, scratch_operands = 0 : i64, tpu.core_type = #tpu.core_type<tc>, window_params = [{transform_indices = @transform_0, window_bounds = array<i64: 256, 128>}, {pipeline_mode = #tpu.pipeline_mode<synchronous>, transform_indices = @transform_1, window_bounds = array<i64: 128, 128>}, {pipeline_mode = #tpu.pipeline_mode<synchronous>, transform_indices = @transform_2, window_bounds = array<i64: 1, 128>}, {transform_indices = @transform_3, window_bounds = array<i64: 256, 128>}, {transform_indices = @transform_4, window_bounds = array<i64: 256, 128>}]} {
    %c0 = arith.constant 0 : index
    %c0_0 = arith.constant 0 : index
    %0 = vector.load %arg1[%c0, %c0_0] : memref<256x128xbf16, #tpu.memory_space<vmem>>, vector<256x128xbf16>
    %c0_1 = arith.constant 0 : index
    %c0_2 = arith.constant 0 : index
    %1 = vector.load %arg2[%c0_1, %c0_2] : memref<128x128xbf16, #tpu.memory_space<vmem>>, vector<128x128xbf16>
    %cst = arith.constant dense<0.000000e+00> : vector<256x128xf32>
    %2 = tpu.matmul %0, %1, %cst {dimension_numbers = #tpu.dot_dimension_numbers<[1], [0], [0], [1], [0, 0, 1, 1], [], []>} : vector<256x128xbf16>, vector<128x128xbf16>, vector<256x128xf32> -> vector<256x128xf32>
    %c0_3 = arith.constant 0 : index
    %c0_4 = arith.constant 0 : index
    %3 = vector.load %arg3[%c0_3, %c0_4] : memref<1x128xf32, #tpu.memory_space<vmem>>, vector<1x128xf32>
    %4 = vector.broadcast %3 : vector<1x128xf32> to vector<256x128xf32>
    %5 = arith.addf %2, %4 : vector<256x128xf32>
    %c0_5 = arith.constant 0 : index
    %c0_6 = arith.constant 0 : index
    %6 = vector.load %arg4[%c0_5, %c0_6] : memref<256x128xbf16, #tpu.memory_space<vmem>>, vector<256x128xbf16>
    %7 = arith.extf %6 : vector<256x128xbf16> to vector<256x128xf32>
    %8 = arith.addf %5, %7 : vector<256x128xf32>
    %cst_7 = arith.constant 0.000000e+00 : f32
    %9 = vector.broadcast %cst_7 : f32 to vector<256x128xf32>
    %10 = arith.maximumf %8, %9 : vector<256x128xf32>
    %11 = arith.truncf %10 : vector<256x128xf32> to vector<256x128xbf16>
    %c0_8 = arith.constant 0 : index
    %c0_9 = arith.constant 0 : index
    %12 = vector.load %arg5[%c0_8, %c0_9] : memref<256x128xbf16, #tpu.memory_space<vmem>>, vector<256x128xbf16>
    tpu.vector_store %arg5[%c0_8, %c0_9], %11 {strides = array<i32>} : memref<256x128xbf16, #tpu.memory_space<vmem>>, vector<256x128xbf16>,
    return
  }
  func.func @transform_0(%arg0: i32) -> (i32, i32) {
    %c0_i32 = arith.constant 0 : i32
    %c0_i32_0 = arith.constant 0 : i32
    return %arg0, %c0_i32 : i32, i32
  }
  func.func @transform_1(%arg0: i32) -> (i32, i32) {
    %c0_i32 = arith.constant 0 : i32
    %c0_i32_0 = arith.constant 0 : i32
    %c0_i32_1 = arith.constant 0 : i32
    return %c0_i32, %c0_i32_0 : i32, i32
  }
  func.func @transform_2(%arg0: i32) -> (i32, i32) {
    %c0_i32 = arith.constant 0 : i32
    %c0_i32_0 = arith.constant 0 : i32
    %c0_i32_1 = arith.constant 0 : i32
    return %c0_i32, %c0_i32_0 : i32, i32
  }
  func.func @transform_3(%arg0: i32) -> (i32, i32) {
    %c0_i32 = arith.constant 0 : i32
    %c0_i32_0 = arith.constant 0 : i32
    return %arg0, %c0_i32 : i32, i32
  }
  func.func @transform_4(%arg0: i32) -> (i32, i32) {
    %c0_i32 = arith.constant 0 : i32
    %c0_i32_0 = arith.constant 0 : i32
    return %arg0, %c0_i32 : i32, i32
  }
}

module attributes {stable_mosaic.version = 11 : i64} {
  func.func @kernel(%arg0: i32, %arg1: memref<64x128xbf16, #tpu.memory_space<vmem>>, %arg2: memref<128x256xbf16, #tpu.memory_space<vmem>>, %arg3: memref<1x256xf32, #tpu.memory_space<vmem>>, %arg4: memref<64x256xbf16, #tpu.memory_space<vmem>>) attributes {dimension_semantics = [#tpu.dimension_semantics<parallel>], iteration_bounds = array<i64: 2>, scalar_prefetch = 0 : i64, scratch_operands = 0 : i64, tpu.core_type = #tpu.core_type<tc>, window_params = [{transform_indices = @transform_0, window_bounds = array<i64: 64, 128>}, {pipeline_mode = #tpu.pipeline_mode<synchronous>, transform_indices = @transform_1, window_bounds = array<i64: 128, 256>}, {pipeline_mode = #tpu.pipeline_mode<synchronous>, transform_indices = @transform_2, window_bounds = array<i64: 1, 256>}, {transform_indices = @transform_3, window_bounds = array<i64: 64, 256>}]} {
    %c0 = arith.constant 0 : index
    %c0_0 = arith.constant 0 : index
    %0 = vector.load %arg1[%c0, %c0_0] : memref<64x128xbf16, #tpu.memory_space<vmem>>, vector<64x128xbf16>
    %c0_1 = arith.constant 0 : index
    %c0_2 = arith.constant 0 : index
    %1 = vector.load %arg2[%c0_1, %c0_2] : memref<128x256xbf16, #tpu.memory_space<vmem>>, vector<128x256xbf16>
    %cst = arith.constant dense<0.000000e+00> : vector<64x256xf32>
    %2 = tpu.matmul %0, %1, %cst {dimension_numbers = #tpu.dot_dimension_numbers<[1], [0], [0], [1], [0, 0, 1, 1], [], []>} : vector<64x128xbf16>, vector<128x256xbf16>, vector<64x256xf32> -> vector<64x256xf32>
    %c0_3 = arith.constant 0 : index
    %c0_4 = arith.constant 0 : index
    %3 = vector.load %arg3[%c0_3, %c0_4] : memref<1x256xf32, #tpu.memory_space<vmem>>, vector<1x256xf32>
    %4 = vector.broadcast %3 : vector<1x256xf32> to vector<64x256xf32>
    %5 = arith.addf %2, %4 : vector<64x256xf32>
    %6 = tpu.iota {dimensions = array<i32: 1>} : vector<64x256xi32>
    %c128_i32 = arith.constant 128 : i32
    %7 = vector.broadcast %c128_i32 : i32 to vector<64x256xi32>
    %8 = arith.cmpi slt, %6, %7 : vector<64x256xi32>
    %cst_5 = arith.constant 0.000000e+00 : f32
    %9 = vector.broadcast %cst_5 : f32 to vector<64x256xf32>
    %10 = arith.maximumf %5, %9 : vector<64x256xf32>
    %11 = arith.select %8, %10, %5 : vector<64x256xi1>, vector<64x256xf32>
    %12 = arith.truncf %11 : vector<64x256xf32> to vector<64x256xbf16>
    %c0_6 = arith.constant 0 : index
    %c0_7 = arith.constant 0 : index
    %13 = vector.load %arg4[%c0_6, %c0_7] : memref<64x256xbf16, #tpu.memory_space<vmem>>, vector<64x256xbf16>
    tpu.vector_store %arg4[%c0_6, %c0_7], %12 {strides = array<i32>} : memref<64x256xbf16, #tpu.memory_space<vmem>>, vector<64x256xbf16>,
    return
  }
  func.func @transform_0(%arg0: i32) -> (i32, i32) {
    %c0_i32 = arith.constant 0 : i32
    %c0_i32_0 = arith.constant 0 : i32
    return %arg0, %c0_i32 : i32, i32
  }
  func.func @transform_1(%arg0: i32) -> (i32, i32) {
    %c0_i32 = arith.constant 0 : i32
    %c0_i32_0 = arith.constant 0 : i32
    %c0_i32_1 = arith.constant 0 : i32
    return %c0_i32, %c0_i32_0 : i32, i32
  }
  func.func @transform_2(%arg0: i32) -> (i32, i32) {
    %c0_i32 = arith.constant 0 : i32
    %c0_i32_0 = arith.constant 0 : i32
    %c0_i32_1 = arith.constant 0 : i32
    return %c0_i32, %c0_i32_0 : i32, i32
  }
  func.func @transform_3(%arg0: i32) -> (i32, i32) {
    %c0_i32 = arith.constant 0 : i32
    %c0_i32_0 = arith.constant 0 : i32
    return %arg0, %c0_i32 : i32, i32
  }
}

module attributes {stable_mosaic.version = 11 : i64} {
  func.func @kernel(%arg0: i32, %arg1: memref<64x256xbf16, #tpu.memory_space<vmem>>, %arg2: memref<256x128xbf16, #tpu.memory_space<vmem>>, %arg3: memref<1x128xf32, #tpu.memory_space<vmem>>, %arg4: memref<64x128xbf16, #tpu.memory_space<vmem>>) attributes {dimension_semantics = [#tpu.dimension_semantics<parallel>], iteration_bounds = array<i64: 2>, scalar_prefetch = 0 : i64, scratch_operands = 0 : i64, tpu.core_type = #tpu.core_type<tc>, window_params = [{transform_indices = @transform_0, window_bounds = array<i64: 64, 256>}, {pipeline_mode = #tpu.pipeline_mode<synchronous>, transform_indices = @transform_1, window_bounds = array<i64: 256, 128>}, {pipeline_mode = #tpu.pipeline_mode<synchronous>, transform_indices = @transform_2, window_bounds = array<i64: 1, 128>}, {transform_indices = @transform_3, window_bounds = array<i64: 64, 128>}]} {
    %c0 = arith.constant 0 : index
    %c0_0 = arith.constant 0 : index
    %0 = vector.load %arg1[%c0, %c0_0] : memref<64x256xbf16, #tpu.memory_space<vmem>>, vector<64x256xbf16>
    %c0_1 = arith.constant 0 : index
    %c0_2 = arith.constant 0 : index
    %1 = vector.load %arg2[%c0_1, %c0_2] : memref<256x128xbf16, #tpu.memory_space<vmem>>, vector<256x128xbf16>
    %cst = arith.constant dense<0.000000e+00> : vector<64x128xf32>
    %2 = tpu.matmul %0, %1, %cst {dimension_numbers = #tpu.dot_dimension_numbers<[1], [0], [0], [1], [0, 0, 1, 1], [], []>} : vector<64x256xbf16>, vector<256x128xbf16>, vector<64x128xf32> -> vector<64x128xf32>
    %c0_3 = arith.constant 0 : index
    %c0_4 = arith.constant 0 : index
    %3 = vector.load %arg3[%c0_3, %c0_4] : memref<1x128xf32, #tpu.memory_space<vmem>>, vector<1x128xf32>
    %4 = vector.broadcast %3 : vector<1x128xf32> to vector<64x128xf32>
    %5 = arith.addf %2, %4 : vector<64x128xf32>
    %cst_5 = arith.constant 0.000000e+00 : f32
    %6 = vector.broadcast %cst_5 : f32 to vector<64x128xf32>
    %7 = arith.maximumf %5, %6 : vector<64x128xf32>
    %8 = arith.truncf %7 : vector<64x128xf32> to vector<64x128xbf16>
    %c0_6 = arith.constant 0 : index
    %c0_7 = arith.constant 0 : index
    %9 = vector.load %arg4[%c0_6, %c0_7] : memref<64x128xbf16, #tpu.memory_space<vmem>>, vector<64x128xbf16>
    tpu.vector_store %arg4[%c0_6, %c0_7], %8 {strides = array<i32>} : memref<64x128xbf16, #tpu.memory_space<vmem>>, vector<64x128xbf16>,
    return
  }
  func.func @transform_0(%arg0: i32) -> (i32, i32) {
    %c0_i32 = arith.constant 0 : i32
    %c0_i32_0 = arith.constant 0 : i32
    return %arg0, %c0_i32 : i32, i32
  }
  func.func @transform_1(%arg0: i32) -> (i32, i32) {
    %c0_i32 = arith.constant 0 : i32
    %c0_i32_0 = arith.constant 0 : i32
    %c0_i32_1 = arith.constant 0 : i32
    return %c0_i32, %c0_i32_0 : i32, i32
  }
  func.func @transform_2(%arg0: i32) -> (i32, i32) {
    %c0_i32 = arith.constant 0 : i32
    %c0_i32_0 = arith.constant 0 : i32
    %c0_i32_1 = arith.constant 0 : i32
    return %c0_i32, %c0_i32_0 : i32, i32
  }
  func.func @transform_3(%arg0: i32) -> (i32, i32) {
    %c0_i32 = arith.constant 0 : i32
    %c0_i32_0 = arith.constant 0 : i32
    return %arg0, %c0_i32 : i32, i32
  }
}

module attributes {stable_mosaic.version = 11 : i64} {
  func.func @kernel(%arg0: i32, %arg1: memref<64x256xbf16, #tpu.memory_space<vmem>>, %arg2: memref<256x128xbf16, #tpu.memory_space<vmem>>, %arg3: memref<1x128xf32, #tpu.memory_space<vmem>>, %arg4: memref<64x128xbf16, #tpu.memory_space<vmem>>, %arg5: memref<64x128xbf16, #tpu.memory_space<vmem>>) attributes {dimension_semantics = [#tpu.dimension_semantics<parallel>], iteration_bounds = array<i64: 2>, scalar_prefetch = 0 : i64, scratch_operands = 0 : i64, tpu.core_type = #tpu.core_type<tc>, window_params = [{transform_indices = @transform_0, window_bounds = array<i64: 64, 256>}, {pipeline_mode = #tpu.pipeline_mode<synchronous>, transform_indices = @transform_1, window_bounds = array<i64: 256, 128>}, {pipeline_mode = #tpu.pipeline_mode<synchronous>, transform_indices = @transform_2, window_bounds = array<i64: 1, 128>}, {transform_indices = @transform_3, window_bounds = array<i64: 64, 128>}, {transform_indices = @transform_4, window_bounds = array<i64: 64, 128>}]} {
    %c0 = arith.constant 0 : index
    %c0_0 = arith.constant 0 : index
    %0 = vector.load %arg1[%c0, %c0_0] : memref<64x256xbf16, #tpu.memory_space<vmem>>, vector<64x256xbf16>
    %c0_1 = arith.constant 0 : index
    %c0_2 = arith.constant 0 : index
    %1 = vector.load %arg2[%c0_1, %c0_2] : memref<256x128xbf16, #tpu.memory_space<vmem>>, vector<256x128xbf16>
    %cst = arith.constant dense<0.000000e+00> : vector<64x128xf32>
    %2 = tpu.matmul %0, %1, %cst {dimension_numbers = #tpu.dot_dimension_numbers<[1], [0], [0], [1], [0, 0, 1, 1], [], []>} : vector<64x256xbf16>, vector<256x128xbf16>, vector<64x128xf32> -> vector<64x128xf32>
    %c0_3 = arith.constant 0 : index
    %c0_4 = arith.constant 0 : index
    %3 = vector.load %arg3[%c0_3, %c0_4] : memref<1x128xf32, #tpu.memory_space<vmem>>, vector<1x128xf32>
    %4 = vector.broadcast %3 : vector<1x128xf32> to vector<64x128xf32>
    %5 = arith.addf %2, %4 : vector<64x128xf32>
    %c0_5 = arith.constant 0 : index
    %c0_6 = arith.constant 0 : index
    %6 = vector.load %arg4[%c0_5, %c0_6] : memref<64x128xbf16, #tpu.memory_space<vmem>>, vector<64x128xbf16>
    %7 = arith.extf %6 : vector<64x128xbf16> to vector<64x128xf32>
    %8 = arith.addf %5, %7 : vector<64x128xf32>
    %cst_7 = arith.constant 0.000000e+00 : f32
    %9 = vector.broadcast %cst_7 : f32 to vector<64x128xf32>
    %10 = arith.maximumf %8, %9 : vector<64x128xf32>
    %11 = arith.truncf %10 : vector<64x128xf32> to vector<64x128xbf16>
    %c0_8 = arith.constant 0 : index
    %c0_9 = arith.constant 0 : index
    %12 = vector.load %arg5[%c0_8, %c0_9] : memref<64x128xbf16, #tpu.memory_space<vmem>>, vector<64x128xbf16>
    tpu.vector_store %arg5[%c0_8, %c0_9], %11 {strides = array<i32>} : memref<64x128xbf16, #tpu.memory_space<vmem>>, vector<64x128xbf16>,
    return
  }
  func.func @transform_0(%arg0: i32) -> (i32, i32) {
    %c0_i32 = arith.constant 0 : i32
    %c0_i32_0 = arith.constant 0 : i32
    return %arg0, %c0_i32 : i32, i32
  }
  func.func @transform_1(%arg0: i32) -> (i32, i32) {
    %c0_i32 = arith.constant 0 : i32
    %c0_i32_0 = arith.constant 0 : i32
    %c0_i32_1 = arith.constant 0 : i32
    return %c0_i32, %c0_i32_0 : i32, i32
  }
  func.func @transform_2(%arg0: i32) -> (i32, i32) {
    %c0_i32 = arith.constant 0 : i32
    %c0_i32_0 = arith.constant 0 : i32
    %c0_i32_1 = arith.constant 0 : i32
    return %c0_i32, %c0_i32_0 : i32, i32
  }
  func.func @transform_3(%arg0: i32) -> (i32, i32) {
    %c1_i32 = arith.constant 1 : i32
    %c0_i32 = arith.constant 0 : i32
    return %arg0, %c1_i32 : i32, i32
  }
  func.func @transform_4(%arg0: i32) -> (i32, i32) {
    %c0_i32 = arith.constant 0 : i32
    %c0_i32_0 = arith.constant 0 : i32
    return %arg0, %c0_i32 : i32, i32
  }
}

module attributes {stable_mosaic.version = 11 : i64} {
  func.func @kernel(%arg0: i32, %arg1: memref<64x256xbf16, #tpu.memory_space<vmem>>, %arg2: memref<256x128xbf16, #tpu.memory_space<vmem>>, %arg3: memref<1x128xf32, #tpu.memory_space<vmem>>, %arg4: memref<64x128xbf16, #tpu.memory_space<vmem>>, %arg5: memref<64x128xbf16, #tpu.memory_space<vmem>>) attributes {dimension_semantics = [#tpu.dimension_semantics<parallel>], iteration_bounds = array<i64: 2>, scalar_prefetch = 0 : i64, scratch_operands = 0 : i64, tpu.core_type = #tpu.core_type<tc>, window_params = [{transform_indices = @transform_0, window_bounds = array<i64: 64, 256>}, {pipeline_mode = #tpu.pipeline_mode<synchronous>, transform_indices = @transform_1, window_bounds = array<i64: 256, 128>}, {pipeline_mode = #tpu.pipeline_mode<synchronous>, transform_indices = @transform_2, window_bounds = array<i64: 1, 128>}, {transform_indices = @transform_3, window_bounds = array<i64: 64, 128>}, {transform_indices = @transform_4, window_bounds = array<i64: 64, 128>}]} {
    %c0 = arith.constant 0 : index
    %c0_0 = arith.constant 0 : index
    %0 = vector.load %arg1[%c0, %c0_0] : memref<64x256xbf16, #tpu.memory_space<vmem>>, vector<64x256xbf16>
    %c0_1 = arith.constant 0 : index
    %c0_2 = arith.constant 0 : index
    %1 = vector.load %arg2[%c0_1, %c0_2] : memref<256x128xbf16, #tpu.memory_space<vmem>>, vector<256x128xbf16>
    %cst = arith.constant dense<0.000000e+00> : vector<64x128xf32>
    %2 = tpu.matmul %0, %1, %cst {dimension_numbers = #tpu.dot_dimension_numbers<[1], [0], [0], [1], [0, 0, 1, 1], [], []>} : vector<64x256xbf16>, vector<256x128xbf16>, vector<64x128xf32> -> vector<64x128xf32>
    %c0_3 = arith.constant 0 : index
    %c0_4 = arith.constant 0 : index
    %3 = vector.load %arg3[%c0_3, %c0_4] : memref<1x128xf32, #tpu.memory_space<vmem>>, vector<1x128xf32>
    %4 = vector.broadcast %3 : vector<1x128xf32> to vector<64x128xf32>
    %5 = arith.addf %2, %4 : vector<64x128xf32>
    %c0_5 = arith.constant 0 : index
    %c0_6 = arith.constant 0 : index
    %6 = vector.load %arg4[%c0_5, %c0_6] : memref<64x128xbf16, #tpu.memory_space<vmem>>, vector<64x128xbf16>
    %7 = arith.extf %6 : vector<64x128xbf16> to vector<64x128xf32>
    %8 = arith.addf %5, %7 : vector<64x128xf32>
    %cst_7 = arith.constant 0.000000e+00 : f32
    %9 = vector.broadcast %cst_7 : f32 to vector<64x128xf32>
    %10 = arith.maximumf %8, %9 : vector<64x128xf32>
    %11 = arith.truncf %10 : vector<64x128xf32> to vector<64x128xbf16>
    %c0_8 = arith.constant 0 : index
    %c0_9 = arith.constant 0 : index
    %12 = vector.load %arg5[%c0_8, %c0_9] : memref<64x128xbf16, #tpu.memory_space<vmem>>, vector<64x128xbf16>
    tpu.vector_store %arg5[%c0_8, %c0_9], %11 {strides = array<i32>} : memref<64x128xbf16, #tpu.memory_space<vmem>>, vector<64x128xbf16>,
    return
  }
  func.func @transform_0(%arg0: i32) -> (i32, i32) {
    %c0_i32 = arith.constant 0 : i32
    %c0_i32_0 = arith.constant 0 : i32
    return %arg0, %c0_i32 : i32, i32
  }
  func.func @transform_1(%arg0: i32) -> (i32, i32) {
    %c0_i32 = arith.constant 0 : i32
    %c0_i32_0 = arith.constant 0 : i32
    %c0_i32_1 = arith.constant 0 : i32
    return %c0_i32, %c0_i32_0 : i32, i32
  }
  func.func @transform_2(%arg0: i32) -> (i32, i32) {
    %c0_i32 = arith.constant 0 : i32
    %c0_i32_0 = arith.constant 0 : i32
    %c0_i32_1 = arith.constant 0 : i32
    return %c0_i32, %c0_i32_0 : i32, i32
  }
  func.func @transform_3(%arg0: i32) -> (i32, i32) {
    %c0_i32 = arith.constant 0 : i32
    %c0_i32_0 = arith.constant 0 : i32
    return %arg0, %c0_i32 : i32, i32
  }
  func.func @transform_4(%arg0: i32) -> (i32, i32) {
    %c0_i32 = arith.constant 0 : i32
    %c0_i32_0 = arith.constant 0 : i32
    return %arg0, %c0_i32 : i32, i32
  }
}

module attributes {stable_mosaic.version = 11 : i64} {
  func.func @kernel(%arg0: i32, %arg1: memref<16x384xbf16, #tpu.memory_space<vmem>>, %arg2: memref<384x128xbf16, #tpu.memory_space<vmem>>, %arg3: memref<1x128xf32, #tpu.memory_space<vmem>>, %arg4: memref<16x128xbf16, #tpu.memory_space<vmem>>, %arg5: memref<16x128xbf16, #tpu.memory_space<vmem>>) attributes {dimension_semantics = [#tpu.dimension_semantics<parallel>], iteration_bounds = array<i64: 2>, scalar_prefetch = 0 : i64, scratch_operands = 0 : i64, tpu.core_type = #tpu.core_type<tc>, window_params = [{transform_indices = @transform_0, window_bounds = array<i64: 16, 384>}, {pipeline_mode = #tpu.pipeline_mode<synchronous>, transform_indices = @transform_1, window_bounds = array<i64: 384, 128>}, {pipeline_mode = #tpu.pipeline_mode<synchronous>, transform_indices = @transform_2, window_bounds = array<i64: 1, 128>}, {transform_indices = @transform_3, window_bounds = array<i64: 16, 128>}, {transform_indices = @transform_4, window_bounds = array<i64: 16, 128>}]} {
    %c0 = arith.constant 0 : index
    %c0_0 = arith.constant 0 : index
    %0 = vector.load %arg1[%c0, %c0_0] : memref<16x384xbf16, #tpu.memory_space<vmem>>, vector<16x384xbf16>
    %c0_1 = arith.constant 0 : index
    %c0_2 = arith.constant 0 : index
    %1 = vector.load %arg2[%c0_1, %c0_2] : memref<384x128xbf16, #tpu.memory_space<vmem>>, vector<384x128xbf16>
    %cst = arith.constant dense<0.000000e+00> : vector<16x128xf32>
    %2 = tpu.matmul %0, %1, %cst {dimension_numbers = #tpu.dot_dimension_numbers<[1], [0], [0], [1], [0, 0, 1, 1], [], []>} : vector<16x384xbf16>, vector<384x128xbf16>, vector<16x128xf32> -> vector<16x128xf32>
    %c0_3 = arith.constant 0 : index
    %c0_4 = arith.constant 0 : index
    %3 = vector.load %arg3[%c0_3, %c0_4] : memref<1x128xf32, #tpu.memory_space<vmem>>, vector<1x128xf32>
    %4 = vector.broadcast %3 : vector<1x128xf32> to vector<16x128xf32>
    %5 = arith.addf %2, %4 : vector<16x128xf32>
    %c0_5 = arith.constant 0 : index
    %c0_6 = arith.constant 0 : index
    %6 = vector.load %arg4[%c0_5, %c0_6] : memref<16x128xbf16, #tpu.memory_space<vmem>>, vector<16x128xbf16>
    %7 = arith.extf %6 : vector<16x128xbf16> to vector<16x128xf32>
    %8 = arith.addf %5, %7 : vector<16x128xf32>
    %cst_7 = arith.constant 0.000000e+00 : f32
    %9 = vector.broadcast %cst_7 : f32 to vector<16x128xf32>
    %10 = arith.maximumf %8, %9 : vector<16x128xf32>
    %11 = arith.truncf %10 : vector<16x128xf32> to vector<16x128xbf16>
    %c0_8 = arith.constant 0 : index
    %c0_9 = arith.constant 0 : index
    %12 = vector.load %arg5[%c0_8, %c0_9] : memref<16x128xbf16, #tpu.memory_space<vmem>>, vector<16x128xbf16>
    tpu.vector_store %arg5[%c0_8, %c0_9], %11 {strides = array<i32>} : memref<16x128xbf16, #tpu.memory_space<vmem>>, vector<16x128xbf16>,
    return
  }
  func.func @transform_0(%arg0: i32) -> (i32, i32) {
    %c0_i32 = arith.constant 0 : i32
    %c0_i32_0 = arith.constant 0 : i32
    return %arg0, %c0_i32 : i32, i32
  }
  func.func @transform_1(%arg0: i32) -> (i32, i32) {
    %c0_i32 = arith.constant 0 : i32
    %c0_i32_0 = arith.constant 0 : i32
    %c0_i32_1 = arith.constant 0 : i32
    return %c0_i32, %c0_i32_0 : i32, i32
  }
  func.func @transform_2(%arg0: i32) -> (i32, i32) {
    %c0_i32 = arith.constant 0 : i32
    %c0_i32_0 = arith.constant 0 : i32
    %c0_i32_1 = arith.constant 0 : i32
    return %c0_i32, %c0_i32_0 : i32, i32
  }
  func.func @transform_3(%arg0: i32) -> (i32, i32) {
    %c1_i32 = arith.constant 1 : i32
    %c0_i32 = arith.constant 0 : i32
    return %arg0, %c1_i32 : i32, i32
  }
  func.func @transform_4(%arg0: i32) -> (i32, i32) {
    %c0_i32 = arith.constant 0 : i32
    %c0_i32_0 = arith.constant 0 : i32
    return %arg0, %c0_i32 : i32, i32
  }
}

module attributes {stable_mosaic.version = 11 : i64} {
  func.func @kernel(%arg0: i32, %arg1: memref<16x384xbf16, #tpu.memory_space<vmem>>, %arg2: memref<384x128xbf16, #tpu.memory_space<vmem>>, %arg3: memref<1x128xf32, #tpu.memory_space<vmem>>, %arg4: memref<16x128xbf16, #tpu.memory_space<vmem>>) attributes {dimension_semantics = [#tpu.dimension_semantics<parallel>], iteration_bounds = array<i64: 2>, scalar_prefetch = 0 : i64, scratch_operands = 0 : i64, tpu.core_type = #tpu.core_type<tc>, window_params = [{transform_indices = @transform_0, window_bounds = array<i64: 16, 384>}, {pipeline_mode = #tpu.pipeline_mode<synchronous>, transform_indices = @transform_1, window_bounds = array<i64: 384, 128>}, {pipeline_mode = #tpu.pipeline_mode<synchronous>, transform_indices = @transform_2, window_bounds = array<i64: 1, 128>}, {transform_indices = @transform_3, window_bounds = array<i64: 16, 128>}]} {
    %c0 = arith.constant 0 : index
    %c0_0 = arith.constant 0 : index
    %0 = vector.load %arg1[%c0, %c0_0] : memref<16x384xbf16, #tpu.memory_space<vmem>>, vector<16x384xbf16>
    %c0_1 = arith.constant 0 : index
    %c0_2 = arith.constant 0 : index
    %1 = vector.load %arg2[%c0_1, %c0_2] : memref<384x128xbf16, #tpu.memory_space<vmem>>, vector<384x128xbf16>
    %cst = arith.constant dense<0.000000e+00> : vector<16x128xf32>
    %2 = tpu.matmul %0, %1, %cst {dimension_numbers = #tpu.dot_dimension_numbers<[1], [0], [0], [1], [0, 0, 1, 1], [], []>} : vector<16x384xbf16>, vector<384x128xbf16>, vector<16x128xf32> -> vector<16x128xf32>
    %c0_3 = arith.constant 0 : index
    %c0_4 = arith.constant 0 : index
    %3 = vector.load %arg3[%c0_3, %c0_4] : memref<1x128xf32, #tpu.memory_space<vmem>>, vector<1x128xf32>
    %4 = vector.broadcast %3 : vector<1x128xf32> to vector<16x128xf32>
    %5 = arith.addf %2, %4 : vector<16x128xf32>
    %cst_5 = arith.constant 0.000000e+00 : f32
    %6 = vector.broadcast %cst_5 : f32 to vector<16x128xf32>
    %7 = arith.maximumf %5, %6 : vector<16x128xf32>
    %8 = arith.truncf %7 : vector<16x128xf32> to vector<16x128xbf16>
    %c0_6 = arith.constant 0 : index
    %c0_7 = arith.constant 0 : index
    %9 = vector.load %arg4[%c0_6, %c0_7] : memref<16x128xbf16, #tpu.memory_space<vmem>>, vector<16x128xbf16>
    tpu.vector_store %arg4[%c0_6, %c0_7], %8 {strides = array<i32>} : memref<16x128xbf16, #tpu.memory_space<vmem>>, vector<16x128xbf16>,
    return
  }
  func.func @transform_0(%arg0: i32) -> (i32, i32) {
    %c0_i32 = arith.constant 0 : i32
    %c0_i32_0 = arith.constant 0 : i32
    return %arg0, %c0_i32 : i32, i32
  }
  func.func @transform_1(%arg0: i32) -> (i32, i32) {
    %c0_i32 = arith.constant 0 : i32
    %c0_i32_0 = arith.constant 0 : i32
    %c0_i32_1 = arith.constant 0 : i32
    return %c0_i32, %c0_i32_0 : i32, i32
  }
  func.func @transform_2(%arg0: i32) -> (i32, i32) {
    %c0_i32 = arith.constant 0 : i32
    %c0_i32_0 = arith.constant 0 : i32
    %c0_i32_1 = arith.constant 0 : i32
    return %c0_i32, %c0_i32_0 : i32, i32
  }
  func.func @transform_3(%arg0: i32) -> (i32, i32) {
    %c0_i32 = arith.constant 0 : i32
    %c0_i32_0 = arith.constant 0 : i32
    return %arg0, %c0_i32 : i32, i32
  }
}

module attributes {stable_mosaic.version = 11 : i64} {
  func.func @kernel(%arg0: i32, %arg1: memref<16x256xbf16, #tpu.memory_space<vmem>>, %arg2: memref<256x256xbf16, #tpu.memory_space<vmem>>, %arg3: memref<1x256xf32, #tpu.memory_space<vmem>>, %arg4: memref<16x256xbf16, #tpu.memory_space<vmem>>) attributes {dimension_semantics = [#tpu.dimension_semantics<parallel>], iteration_bounds = array<i64: 2>, scalar_prefetch = 0 : i64, scratch_operands = 0 : i64, tpu.core_type = #tpu.core_type<tc>, window_params = [{transform_indices = @transform_0, window_bounds = array<i64: 16, 256>}, {pipeline_mode = #tpu.pipeline_mode<synchronous>, transform_indices = @transform_1, window_bounds = array<i64: 256, 256>}, {pipeline_mode = #tpu.pipeline_mode<synchronous>, transform_indices = @transform_2, window_bounds = array<i64: 1, 256>}, {transform_indices = @transform_3, window_bounds = array<i64: 16, 256>}]} {
    %c0 = arith.constant 0 : index
    %c0_0 = arith.constant 0 : index
    %0 = vector.load %arg1[%c0, %c0_0] : memref<16x256xbf16, #tpu.memory_space<vmem>>, vector<16x256xbf16>
    %c0_1 = arith.constant 0 : index
    %c0_2 = arith.constant 0 : index
    %1 = vector.load %arg2[%c0_1, %c0_2] : memref<256x256xbf16, #tpu.memory_space<vmem>>, vector<256x256xbf16>
    %cst = arith.constant dense<0.000000e+00> : vector<16x256xf32>
    %2 = tpu.matmul %0, %1, %cst {dimension_numbers = #tpu.dot_dimension_numbers<[1], [0], [0], [1], [0, 0, 1, 1], [], []>} : vector<16x256xbf16>, vector<256x256xbf16>, vector<16x256xf32> -> vector<16x256xf32>
    %c0_3 = arith.constant 0 : index
    %c0_4 = arith.constant 0 : index
    %3 = vector.load %arg3[%c0_3, %c0_4] : memref<1x256xf32, #tpu.memory_space<vmem>>, vector<1x256xf32>
    %4 = vector.broadcast %3 : vector<1x256xf32> to vector<16x256xf32>
    %5 = arith.addf %2, %4 : vector<16x256xf32>
    %6 = tpu.iota {dimensions = array<i32: 1>} : vector<16x256xi32>
    %c128_i32 = arith.constant 128 : i32
    %7 = vector.broadcast %c128_i32 : i32 to vector<16x256xi32>
    %8 = arith.cmpi slt, %6, %7 : vector<16x256xi32>
    %cst_5 = arith.constant 0.000000e+00 : f32
    %9 = vector.broadcast %cst_5 : f32 to vector<16x256xf32>
    %10 = arith.maximumf %5, %9 : vector<16x256xf32>
    %11 = arith.select %8, %10, %5 : vector<16x256xi1>, vector<16x256xf32>
    %12 = arith.truncf %11 : vector<16x256xf32> to vector<16x256xbf16>
    %c0_6 = arith.constant 0 : index
    %c0_7 = arith.constant 0 : index
    %13 = vector.load %arg4[%c0_6, %c0_7] : memref<16x256xbf16, #tpu.memory_space<vmem>>, vector<16x256xbf16>
    tpu.vector_store %arg4[%c0_6, %c0_7], %12 {strides = array<i32>} : memref<16x256xbf16, #tpu.memory_space<vmem>>, vector<16x256xbf16>,
    return
  }
  func.func @transform_0(%arg0: i32) -> (i32, i32) {
    %c0_i32 = arith.constant 0 : i32
    %c0_i32_0 = arith.constant 0 : i32
    return %arg0, %c0_i32 : i32, i32
  }
  func.func @transform_1(%arg0: i32) -> (i32, i32) {
    %c0_i32 = arith.constant 0 : i32
    %c0_i32_0 = arith.constant 0 : i32
    %c0_i32_1 = arith.constant 0 : i32
    return %c0_i32, %c0_i32_0 : i32, i32
  }
  func.func @transform_2(%arg0: i32) -> (i32, i32) {
    %c0_i32 = arith.constant 0 : i32
    %c0_i32_0 = arith.constant 0 : i32
    %c0_i32_1 = arith.constant 0 : i32
    return %c0_i32, %c0_i32_0 : i32, i32
  }
  func.func @transform_3(%arg0: i32) -> (i32, i32) {
    %c0_i32 = arith.constant 0 : i32
    %c0_i32_0 = arith.constant 0 : i32
    return %arg0, %c0_i32 : i32, i32
  }
}

module attributes {stable_mosaic.version = 11 : i64} {
  func.func @kernel(%arg0: i32, %arg1: memref<16x384xbf16, #tpu.memory_space<vmem>>, %arg2: memref<384x128xbf16, #tpu.memory_space<vmem>>, %arg3: memref<1x128xf32, #tpu.memory_space<vmem>>, %arg4: memref<16x128xbf16, #tpu.memory_space<vmem>>, %arg5: memref<16x128xbf16, #tpu.memory_space<vmem>>) attributes {dimension_semantics = [#tpu.dimension_semantics<parallel>], iteration_bounds = array<i64: 2>, scalar_prefetch = 0 : i64, scratch_operands = 0 : i64, tpu.core_type = #tpu.core_type<tc>, window_params = [{transform_indices = @transform_0, window_bounds = array<i64: 16, 384>}, {pipeline_mode = #tpu.pipeline_mode<synchronous>, transform_indices = @transform_1, window_bounds = array<i64: 384, 128>}, {pipeline_mode = #tpu.pipeline_mode<synchronous>, transform_indices = @transform_2, window_bounds = array<i64: 1, 128>}, {transform_indices = @transform_3, window_bounds = array<i64: 16, 128>}, {transform_indices = @transform_4, window_bounds = array<i64: 16, 128>}]} {
    %c0 = arith.constant 0 : index
    %c0_0 = arith.constant 0 : index
    %0 = vector.load %arg1[%c0, %c0_0] : memref<16x384xbf16, #tpu.memory_space<vmem>>, vector<16x384xbf16>
    %c0_1 = arith.constant 0 : index
    %c0_2 = arith.constant 0 : index
    %1 = vector.load %arg2[%c0_1, %c0_2] : memref<384x128xbf16, #tpu.memory_space<vmem>>, vector<384x128xbf16>
    %cst = arith.constant dense<0.000000e+00> : vector<16x128xf32>
    %2 = tpu.matmul %0, %1, %cst {dimension_numbers = #tpu.dot_dimension_numbers<[1], [0], [0], [1], [0, 0, 1, 1], [], []>} : vector<16x384xbf16>, vector<384x128xbf16>, vector<16x128xf32> -> vector<16x128xf32>
    %c0_3 = arith.constant 0 : index
    %c0_4 = arith.constant 0 : index
    %3 = vector.load %arg3[%c0_3, %c0_4] : memref<1x128xf32, #tpu.memory_space<vmem>>, vector<1x128xf32>
    %4 = vector.broadcast %3 : vector<1x128xf32> to vector<16x128xf32>
    %5 = arith.addf %2, %4 : vector<16x128xf32>
    %c0_5 = arith.constant 0 : index
    %c0_6 = arith.constant 0 : index
    %6 = vector.load %arg4[%c0_5, %c0_6] : memref<16x128xbf16, #tpu.memory_space<vmem>>, vector<16x128xbf16>
    %7 = arith.extf %6 : vector<16x128xbf16> to vector<16x128xf32>
    %8 = arith.addf %5, %7 : vector<16x128xf32>
    %cst_7 = arith.constant 0.000000e+00 : f32
    %9 = vector.broadcast %cst_7 : f32 to vector<16x128xf32>
    %10 = arith.maximumf %8, %9 : vector<16x128xf32>
    %11 = arith.truncf %10 : vector<16x128xf32> to vector<16x128xbf16>
    %c0_8 = arith.constant 0 : index
    %c0_9 = arith.constant 0 : index
    %12 = vector.load %arg5[%c0_8, %c0_9] : memref<16x128xbf16, #tpu.memory_space<vmem>>, vector<16x128xbf16>
    tpu.vector_store %arg5[%c0_8, %c0_9], %11 {strides = array<i32>} : memref<16x128xbf16, #tpu.memory_space<vmem>>, vector<16x128xbf16>,
    return
  }
  func.func @transform_0(%arg0: i32) -> (i32, i32) {
    %c0_i32 = arith.constant 0 : i32
    %c0_i32_0 = arith.constant 0 : i32
    return %arg0, %c0_i32 : i32, i32
  }
  func.func @transform_1(%arg0: i32) -> (i32, i32) {
    %c0_i32 = arith.constant 0 : i32
    %c0_i32_0 = arith.constant 0 : i32
    %c0_i32_1 = arith.constant 0 : i32
    return %c0_i32, %c0_i32_0 : i32, i32
  }
  func.func @transform_2(%arg0: i32) -> (i32, i32) {
    %c0_i32 = arith.constant 0 : i32
    %c0_i32_0 = arith.constant 0 : i32
    %c0_i32_1 = arith.constant 0 : i32
    return %c0_i32, %c0_i32_0 : i32, i32
  }
  func.func @transform_3(%arg0: i32) -> (i32, i32) {
    %c0_i32 = arith.constant 0 : i32
    %c0_i32_0 = arith.constant 0 : i32
    return %arg0, %c0_i32 : i32, i32
  }
  func.func @transform_4(%arg0: i32) -> (i32, i32) {
    %c0_i32 = arith.constant 0 : i32
    %c0_i32_0 = arith.constant 0 : i32
    return %arg0, %c0_i32 : i32, i32
  }
}

module attributes {stable_mosaic.version = 11 : i64} {
  func.func @kernel(%arg0: i32, %arg1: memref<16x384xbf16, #tpu.memory_space<vmem>>, %arg2: memref<384x256xbf16, #tpu.memory_space<vmem>>, %arg3: memref<1x256xf32, #tpu.memory_space<vmem>>, %arg4: memref<16x256xbf16, #tpu.memory_space<vmem>>) attributes {dimension_semantics = [#tpu.dimension_semantics<parallel>], iteration_bounds = array<i64: 1>, scalar_prefetch = 0 : i64, scratch_operands = 0 : i64, tpu.core_type = #tpu.core_type<tc>, window_params = [{transform_indices = @transform_0, window_bounds = array<i64: 16, 384>}, {pipeline_mode = #tpu.pipeline_mode<synchronous>, transform_indices = @transform_1, window_bounds = array<i64: 384, 256>}, {pipeline_mode = #tpu.pipeline_mode<synchronous>, transform_indices = @transform_2, window_bounds = array<i64: 1, 256>}, {transform_indices = @transform_3, window_bounds = array<i64: 16, 256>}]} {
    %c0 = arith.constant 0 : index
    %c0_0 = arith.constant 0 : index
    %0 = vector.load %arg1[%c0, %c0_0] : memref<16x384xbf16, #tpu.memory_space<vmem>>, vector<16x384xbf16>
    %c0_1 = arith.constant 0 : index
    %c0_2 = arith.constant 0 : index
    %1 = vector.load %arg2[%c0_1, %c0_2] : memref<384x256xbf16, #tpu.memory_space<vmem>>, vector<384x256xbf16>
    %cst = arith.constant dense<0.000000e+00> : vector<16x256xf32>
    %2 = tpu.matmul %0, %1, %cst {dimension_numbers = #tpu.dot_dimension_numbers<[1], [0], [0], [1], [0, 0, 1, 1], [], []>} : vector<16x384xbf16>, vector<384x256xbf16>, vector<16x256xf32> -> vector<16x256xf32>
    %c0_3 = arith.constant 0 : index
    %c0_4 = arith.constant 0 : index
    %3 = vector.load %arg3[%c0_3, %c0_4] : memref<1x256xf32, #tpu.memory_space<vmem>>, vector<1x256xf32>
    %4 = vector.broadcast %3 : vector<1x256xf32> to vector<16x256xf32>
    %5 = arith.addf %2, %4 : vector<16x256xf32>
    %6 = tpu.iota {dimensions = array<i32: 1>} : vector<16x256xi32>
    %c128_i32 = arith.constant 128 : i32
    %7 = vector.broadcast %c128_i32 : i32 to vector<16x256xi32>
    %8 = arith.cmpi slt, %6, %7 : vector<16x256xi32>
    %cst_5 = arith.constant 0.000000e+00 : f32
    %9 = vector.broadcast %cst_5 : f32 to vector<16x256xf32>
    %10 = arith.maximumf %5, %9 : vector<16x256xf32>
    %11 = arith.select %8, %10, %5 : vector<16x256xi1>, vector<16x256xf32>
    %12 = arith.truncf %11 : vector<16x256xf32> to vector<16x256xbf16>
    %c0_6 = arith.constant 0 : index
    %c0_7 = arith.constant 0 : index
    %13 = vector.load %arg4[%c0_6, %c0_7] : memref<16x256xbf16, #tpu.memory_space<vmem>>, vector<16x256xbf16>
    tpu.vector_store %arg4[%c0_6, %c0_7], %12 {strides = array<i32>} : memref<16x256xbf16, #tpu.memory_space<vmem>>, vector<16x256xbf16>,
    return
  }
  func.func @transform_0(%arg0: i32) -> (i32, i32) {
    %c0_i32 = arith.constant 0 : i32
    %c0_i32_0 = arith.constant 0 : i32
    return %arg0, %c0_i32 : i32, i32
  }
  func.func @transform_1(%arg0: i32) -> (i32, i32) {
    %c0_i32 = arith.constant 0 : i32
    %c0_i32_0 = arith.constant 0 : i32
    %c0_i32_1 = arith.constant 0 : i32
    return %c0_i32, %c0_i32_0 : i32, i32
  }
  func.func @transform_2(%arg0: i32) -> (i32, i32) {
    %c0_i32 = arith.constant 0 : i32
    %c0_i32_0 = arith.constant 0 : i32
    %c0_i32_1 = arith.constant 0 : i32
    return %c0_i32, %c0_i32_0 : i32, i32
  }
  func.func @transform_3(%arg0: i32) -> (i32, i32) {
    %c0_i32 = arith.constant 0 : i32
    %c0_i32_0 = arith.constant 0 : i32
    return %arg0, %c0_i32 : i32, i32
  }
}

module attributes {stable_mosaic.version = 11 : i64} {
  func.func @kernel(%arg0: i32, %arg1: memref<16x640xbf16, #tpu.memory_space<vmem>>, %arg2: memref<640x128xbf16, #tpu.memory_space<vmem>>, %arg3: memref<1x128xf32, #tpu.memory_space<vmem>>, %arg4: memref<16x128xbf16, #tpu.memory_space<vmem>>) attributes {dimension_semantics = [#tpu.dimension_semantics<parallel>], iteration_bounds = array<i64: 1>, scalar_prefetch = 0 : i64, scratch_operands = 0 : i64, tpu.core_type = #tpu.core_type<tc>, window_params = [{transform_indices = @transform_0, window_bounds = array<i64: 16, 640>}, {pipeline_mode = #tpu.pipeline_mode<synchronous>, transform_indices = @transform_1, window_bounds = array<i64: 640, 128>}, {pipeline_mode = #tpu.pipeline_mode<synchronous>, transform_indices = @transform_2, window_bounds = array<i64: 1, 128>}, {transform_indices = @transform_3, window_bounds = array<i64: 16, 128>}]} {
    %c0 = arith.constant 0 : index
    %c0_0 = arith.constant 0 : index
    %0 = vector.load %arg1[%c0, %c0_0] : memref<16x640xbf16, #tpu.memory_space<vmem>>, vector<16x640xbf16>
    %c0_1 = arith.constant 0 : index
    %c0_2 = arith.constant 0 : index
    %1 = vector.load %arg2[%c0_1, %c0_2] : memref<640x128xbf16, #tpu.memory_space<vmem>>, vector<640x128xbf16>
    %cst = arith.constant dense<0.000000e+00> : vector<16x128xf32>
    %2 = tpu.matmul %0, %1, %cst {dimension_numbers = #tpu.dot_dimension_numbers<[1], [0], [0], [1], [0, 0, 1, 1], [], []>} : vector<16x640xbf16>, vector<640x128xbf16>, vector<16x128xf32> -> vector<16x128xf32>
    %c0_3 = arith.constant 0 : index
    %c0_4 = arith.constant 0 : index
    %3 = vector.load %arg3[%c0_3, %c0_4] : memref<1x128xf32, #tpu.memory_space<vmem>>, vector<1x128xf32>
    %4 = vector.broadcast %3 : vector<1x128xf32> to vector<16x128xf32>
    %5 = arith.addf %2, %4 : vector<16x128xf32>
    %cst_5 = arith.constant 0.000000e+00 : f32
    %6 = vector.broadcast %cst_5 : f32 to vector<16x128xf32>
    %7 = arith.maximumf %5, %6 : vector<16x128xf32>
    %8 = arith.truncf %7 : vector<16x128xf32> to vector<16x128xbf16>
    %c0_6 = arith.constant 0 : index
    %c0_7 = arith.constant 0 : index
    %9 = vector.load %arg4[%c0_6, %c0_7] : memref<16x128xbf16, #tpu.memory_space<vmem>>, vector<16x128xbf16>
    tpu.vector_store %arg4[%c0_6, %c0_7], %8 {strides = array<i32>} : memref<16x128xbf16, #tpu.memory_space<vmem>>, vector<16x128xbf16>,
    return
  }
  func.func @transform_0(%arg0: i32) -> (i32, i32) {
    %c0_i32 = arith.constant 0 : i32
    %c0_i32_0 = arith.constant 0 : i32
    return %arg0, %c0_i32 : i32, i32
  }
  func.func @transform_1(%arg0: i32) -> (i32, i32) {
    %c0_i32 = arith.constant 0 : i32
    %c0_i32_0 = arith.constant 0 : i32
    %c0_i32_1 = arith.constant 0 : i32
    return %c0_i32, %c0_i32_0 : i32, i32
  }
  func.func @transform_2(%arg0: i32) -> (i32, i32) {
    %c0_i32 = arith.constant 0 : i32
    %c0_i32_0 = arith.constant 0 : i32
    %c0_i32_1 = arith.constant 0 : i32
    return %c0_i32, %c0_i32_0 : i32, i32
  }
  func.func @transform_3(%arg0: i32) -> (i32, i32) {
    %c0_i32 = arith.constant 0 : i32
    %c0_i32_0 = arith.constant 0 : i32
    return %arg0, %c0_i32 : i32, i32
  }
}

module attributes {stable_mosaic.version = 11 : i64} {
  func.func @_head_kernel(%arg0: i32, %arg1: memref<16x512xbf16, #tpu.memory_space<vmem>>, %arg2: memref<512x128xbf16, #tpu.memory_space<vmem>>, %arg3: memref<1x128xf32, #tpu.memory_space<vmem>>, %arg4: memref<16x128xf32, #tpu.memory_space<vmem>>) attributes {dimension_semantics = [#tpu.dimension_semantics<arbitrary>], iteration_bounds = array<i64: 1>, scalar_prefetch = 0 : i64, scratch_operands = 0 : i64, tpu.core_type = #tpu.core_type<tc>, window_params = [{pipeline_mode = #tpu.pipeline_mode<synchronous>, transform_indices = @transform_0, window_bounds = array<i64: 16, 512>}, {pipeline_mode = #tpu.pipeline_mode<synchronous>, transform_indices = @transform_1, window_bounds = array<i64: 512, 128>}, {pipeline_mode = #tpu.pipeline_mode<synchronous>, transform_indices = @transform_2, window_bounds = array<i64: 1, 128>}, {pipeline_mode = #tpu.pipeline_mode<synchronous>, transform_indices = @transform_3, window_bounds = array<i64: 16, 128>}]} {
    %c0 = arith.constant 0 : index
    %c0_0 = arith.constant 0 : index
    %0 = vector.load %arg1[%c0, %c0_0] : memref<16x512xbf16, #tpu.memory_space<vmem>>, vector<16x512xbf16>
    %c0_1 = arith.constant 0 : index
    %c0_2 = arith.constant 0 : index
    %1 = vector.load %arg2[%c0_1, %c0_2] : memref<512x128xbf16, #tpu.memory_space<vmem>>, vector<512x128xbf16>
    %cst = arith.constant dense<0.000000e+00> : vector<16x128xf32>
    %2 = tpu.matmul %0, %1, %cst {dimension_numbers = #tpu.dot_dimension_numbers<[1], [0], [0], [1], [0, 0, 1, 1], [], []>} : vector<16x512xbf16>, vector<512x128xbf16>, vector<16x128xf32> -> vector<16x128xf32>
    %c0_3 = arith.constant 0 : index
    %c0_4 = arith.constant 0 : index
    %3 = vector.load %arg3[%c0_3, %c0_4] : memref<1x128xf32, #tpu.memory_space<vmem>>, vector<1x128xf32>
    %4 = vector.broadcast %3 : vector<1x128xf32> to vector<16x128xf32>
    %5 = arith.addf %2, %4 : vector<16x128xf32>
    %c0_5 = arith.constant 0 : index
    %c0_6 = arith.constant 0 : index
    %6 = vector.load %arg4[%c0_5, %c0_6] : memref<16x128xf32, #tpu.memory_space<vmem>>, vector<16x128xf32>
    tpu.vector_store %arg4[%c0_5, %c0_6], %5 {strides = array<i32>} : memref<16x128xf32, #tpu.memory_space<vmem>>, vector<16x128xf32>,
    return
  }
  func.func @transform_0(%arg0: i32) -> (i32, i32) {
    %c0_i32 = arith.constant 0 : i32
    %c0_i32_0 = arith.constant 0 : i32
    %c0_i32_1 = arith.constant 0 : i32
    return %c0_i32, %c0_i32_0 : i32, i32
  }
  func.func @transform_1(%arg0: i32) -> (i32, i32) {
    %c0_i32 = arith.constant 0 : i32
    %c0_i32_0 = arith.constant 0 : i32
    %c0_i32_1 = arith.constant 0 : i32
    return %c0_i32, %c0_i32_0 : i32, i32
  }
  func.func @transform_2(%arg0: i32) -> (i32, i32) {
    %c0_i32 = arith.constant 0 : i32
    %c0_i32_0 = arith.constant 0 : i32
    %c0_i32_1 = arith.constant 0 : i32
    return %c0_i32, %c0_i32_0 : i32, i32
  }
  func.func @transform_3(%arg0: i32) -> (i32, i32) {
    %c0_i32 = arith.constant 0 : i32
    %c0_i32_0 = arith.constant 0 : i32
    %c0_i32_1 = arith.constant 0 : i32
    return %c0_i32, %c0_i32_0 : i32, i32
  }
}

module attributes {stable_mosaic.version = 11 : i64} {
  func.func @kernel(%arg0: i32, %arg1: memref<16x640xbf16, #tpu.memory_space<vmem>>, %arg2: memref<640x128xbf16, #tpu.memory_space<vmem>>, %arg3: memref<1x128xf32, #tpu.memory_space<vmem>>, %arg4: memref<16x128xbf16, #tpu.memory_space<vmem>>, %arg5: memref<16x128xbf16, #tpu.memory_space<vmem>>) attributes {dimension_semantics = [#tpu.dimension_semantics<parallel>], iteration_bounds = array<i64: 1>, scalar_prefetch = 0 : i64, scratch_operands = 0 : i64, tpu.core_type = #tpu.core_type<tc>, window_params = [{transform_indices = @transform_0, window_bounds = array<i64: 16, 640>}, {pipeline_mode = #tpu.pipeline_mode<synchronous>, transform_indices = @transform_1, window_bounds = array<i64: 640, 128>}, {pipeline_mode = #tpu.pipeline_mode<synchronous>, transform_indices = @transform_2, window_bounds = array<i64: 1, 128>}, {transform_indices = @transform_3, window_bounds = array<i64: 16, 128>}, {transform_indices = @transform_4, window_bounds = array<i64: 16, 128>}]} {
    %c0 = arith.constant 0 : index
    %c0_0 = arith.constant 0 : index
    %0 = vector.load %arg1[%c0, %c0_0] : memref<16x640xbf16, #tpu.memory_space<vmem>>, vector<16x640xbf16>
    %c0_1 = arith.constant 0 : index
    %c0_2 = arith.constant 0 : index
    %1 = vector.load %arg2[%c0_1, %c0_2] : memref<640x128xbf16, #tpu.memory_space<vmem>>, vector<640x128xbf16>
    %cst = arith.constant dense<0.000000e+00> : vector<16x128xf32>
    %2 = tpu.matmul %0, %1, %cst {dimension_numbers = #tpu.dot_dimension_numbers<[1], [0], [0], [1], [0, 0, 1, 1], [], []>} : vector<16x640xbf16>, vector<640x128xbf16>, vector<16x128xf32> -> vector<16x128xf32>
    %c0_3 = arith.constant 0 : index
    %c0_4 = arith.constant 0 : index
    %3 = vector.load %arg3[%c0_3, %c0_4] : memref<1x128xf32, #tpu.memory_space<vmem>>, vector<1x128xf32>
    %4 = vector.broadcast %3 : vector<1x128xf32> to vector<16x128xf32>
    %5 = arith.addf %2, %4 : vector<16x128xf32>
    %c0_5 = arith.constant 0 : index
    %c0_6 = arith.constant 0 : index
    %6 = vector.load %arg4[%c0_5, %c0_6] : memref<16x128xbf16, #tpu.memory_space<vmem>>, vector<16x128xbf16>
    %7 = arith.extf %6 : vector<16x128xbf16> to vector<16x128xf32>
    %8 = arith.addf %5, %7 : vector<16x128xf32>
    %cst_7 = arith.constant 0.000000e+00 : f32
    %9 = vector.broadcast %cst_7 : f32 to vector<16x128xf32>
    %10 = arith.maximumf %8, %9 : vector<16x128xf32>
    %11 = arith.truncf %10 : vector<16x128xf32> to vector<16x128xbf16>
    %c0_8 = arith.constant 0 : index
    %c0_9 = arith.constant 0 : index
    %12 = vector.load %arg5[%c0_8, %c0_9] : memref<16x128xbf16, #tpu.memory_space<vmem>>, vector<16x128xbf16>
    tpu.vector_store %arg5[%c0_8, %c0_9], %11 {strides = array<i32>} : memref<16x128xbf16, #tpu.memory_space<vmem>>, vector<16x128xbf16>,
    return
  }
  func.func @transform_0(%arg0: i32) -> (i32, i32) {
    %c0_i32 = arith.constant 0 : i32
    %c0_i32_0 = arith.constant 0 : i32
    return %arg0, %c0_i32 : i32, i32
  }
  func.func @transform_1(%arg0: i32) -> (i32, i32) {
    %c0_i32 = arith.constant 0 : i32
    %c0_i32_0 = arith.constant 0 : i32
    %c0_i32_1 = arith.constant 0 : i32
    return %c0_i32, %c0_i32_0 : i32, i32
  }
  func.func @transform_2(%arg0: i32) -> (i32, i32) {
    %c0_i32 = arith.constant 0 : i32
    %c0_i32_0 = arith.constant 0 : i32
    %c0_i32_1 = arith.constant 0 : i32
    return %c0_i32, %c0_i32_0 : i32, i32
  }
  func.func @transform_3(%arg0: i32) -> (i32, i32) {
    %c0_i32 = arith.constant 0 : i32
    %c0_i32_0 = arith.constant 0 : i32
    return %arg0, %c0_i32 : i32, i32
  }
  func.func @transform_4(%arg0: i32) -> (i32, i32) {
    %c0_i32 = arith.constant 0 : i32
    %c0_i32_0 = arith.constant 0 : i32
    return %arg0, %c0_i32 : i32, i32
  }
}

module attributes {stable_mosaic.version = 11 : i64} {
  func.func @kernel(%arg0: i32, %arg1: memref<16x640xbf16, #tpu.memory_space<vmem>>, %arg2: memref<640x128xbf16, #tpu.memory_space<vmem>>, %arg3: memref<1x128xf32, #tpu.memory_space<vmem>>, %arg4: memref<16x128xbf16, #tpu.memory_space<vmem>>, %arg5: memref<16x128xbf16, #tpu.memory_space<vmem>>) attributes {dimension_semantics = [#tpu.dimension_semantics<parallel>], iteration_bounds = array<i64: 1>, scalar_prefetch = 0 : i64, scratch_operands = 0 : i64, tpu.core_type = #tpu.core_type<tc>, window_params = [{transform_indices = @transform_0, window_bounds = array<i64: 16, 640>}, {pipeline_mode = #tpu.pipeline_mode<synchronous>, transform_indices = @transform_1, window_bounds = array<i64: 640, 128>}, {pipeline_mode = #tpu.pipeline_mode<synchronous>, transform_indices = @transform_2, window_bounds = array<i64: 1, 128>}, {transform_indices = @transform_3, window_bounds = array<i64: 16, 128>}, {transform_indices = @transform_4, window_bounds = array<i64: 16, 128>}]} {
    %c0 = arith.constant 0 : index
    %c0_0 = arith.constant 0 : index
    %0 = vector.load %arg1[%c0, %c0_0] : memref<16x640xbf16, #tpu.memory_space<vmem>>, vector<16x640xbf16>
    %c0_1 = arith.constant 0 : index
    %c0_2 = arith.constant 0 : index
    %1 = vector.load %arg2[%c0_1, %c0_2] : memref<640x128xbf16, #tpu.memory_space<vmem>>, vector<640x128xbf16>
    %cst = arith.constant dense<0.000000e+00> : vector<16x128xf32>
    %2 = tpu.matmul %0, %1, %cst {dimension_numbers = #tpu.dot_dimension_numbers<[1], [0], [0], [1], [0, 0, 1, 1], [], []>} : vector<16x640xbf16>, vector<640x128xbf16>, vector<16x128xf32> -> vector<16x128xf32>
    %c0_3 = arith.constant 0 : index
    %c0_4 = arith.constant 0 : index
    %3 = vector.load %arg3[%c0_3, %c0_4] : memref<1x128xf32, #tpu.memory_space<vmem>>, vector<1x128xf32>
    %4 = vector.broadcast %3 : vector<1x128xf32> to vector<16x128xf32>
    %5 = arith.addf %2, %4 : vector<16x128xf32>
    %c0_5 = arith.constant 0 : index
    %c0_6 = arith.constant 0 : index
    %6 = vector.load %arg4[%c0_5, %c0_6] : memref<16x128xbf16, #tpu.memory_space<vmem>>, vector<16x128xbf16>
    %7 = arith.extf %6 : vector<16x128xbf16> to vector<16x128xf32>
    %8 = arith.addf %5, %7 : vector<16x128xf32>
    %cst_7 = arith.constant 0.000000e+00 : f32
    %9 = vector.broadcast %cst_7 : f32 to vector<16x128xf32>
    %10 = arith.maximumf %8, %9 : vector<16x128xf32>
    %11 = arith.truncf %10 : vector<16x128xf32> to vector<16x128xbf16>
    %c0_8 = arith.constant 0 : index
    %c0_9 = arith.constant 0 : index
    %12 = vector.load %arg5[%c0_8, %c0_9] : memref<16x128xbf16, #tpu.memory_space<vmem>>, vector<16x128xbf16>
    tpu.vector_store %arg5[%c0_8, %c0_9], %11 {strides = array<i32>} : memref<16x128xbf16, #tpu.memory_space<vmem>>, vector<16x128xbf16>,
    return
  }
  func.func @transform_0(%arg0: i32) -> (i32, i32) {
    %c0_i32 = arith.constant 0 : i32
    %c0_i32_0 = arith.constant 0 : i32
    return %arg0, %c0_i32 : i32, i32
  }
  func.func @transform_1(%arg0: i32) -> (i32, i32) {
    %c0_i32 = arith.constant 0 : i32
    %c0_i32_0 = arith.constant 0 : i32
    %c0_i32_1 = arith.constant 0 : i32
    return %c0_i32, %c0_i32_0 : i32, i32
  }
  func.func @transform_2(%arg0: i32) -> (i32, i32) {
    %c0_i32 = arith.constant 0 : i32
    %c0_i32_0 = arith.constant 0 : i32
    %c0_i32_1 = arith.constant 0 : i32
    return %c0_i32, %c0_i32_0 : i32, i32
  }
  func.func @transform_3(%arg0: i32) -> (i32, i32) {
    %c1_i32 = arith.constant 1 : i32
    %c0_i32 = arith.constant 0 : i32
    return %arg0, %c1_i32 : i32, i32
  }
  func.func @transform_4(%arg0: i32) -> (i32, i32) {
    %c0_i32 = arith.constant 0 : i32
    %c0_i32_0 = arith.constant 0 : i32
    return %arg0, %c0_i32 : i32, i32
  }
}

</mosaic_0001>

<bundles_post_ra>
// kernel: resnet_forward.18
= control target key start
LH: loop header
LB: loop body
LE: loop exit
PB: predicated region body
PF: predicated region fallthrough
CT: control target
= control target key end

     0   :  { %s1126_s12 = smov 0   ;;  %s1247_s0 = inlined_call_operand.vmem [shape: bf16[512,128], index: 0, kind: input, shape index: {}]   ;;  %s1248_s1 = inlined_call_operand.vmem [shape: bf16[128,128], index: 1, kind: input, shape index: {}]   ;;  %s1249_s2 = inlined_call_operand.vmem [shape: f32[1,128], index: 2, kind: input, shape index: {}]   ;;  %s1250_s3 = inlined_call_operand.vmem [shape: bf16[512,128], index: 3, kind: output, shape index: {}]  }
   0x1 LB: > { %s783_s13 = sadd.s32 4294967295, %s1104_s12   ;;  %p787_p0 = scmp.ge.s32.totalorder %s1104_s12, 1  ;;  %s1104_s12 = sphi %s1126_s12, %s13_s12  }
   0x2   : > { %p138_p1 = scmp.lt.s32.totalorder %s1104_s12, 3 }
   0x4   : > { %p139_p2 = pnand %p787_p0, %p138_p1 }
   0x5   : > { %v1074_v0 = vld [vmem:[%s1248_s1] sm:$0xff] (!%p139_p2)   ;;  %s788_s16 = sshll.u32 (!%p139_p2), %s783_s13, 5  ;;  %v1075_v1 = vld [vmem:[%s1248_s1 + $0x8] sm:$0xff] (!%p139_p2)   ;;  %v1076_v2 = vld [vmem:[%s1248_s1 + $0x10] sm:$0xff] (!%p139_p2)  }
   0x6   : > { %142 = sbr.rel (%p139_p2) target bundleno = 284 (0x11c), region = 32  ;;  %p163_p3 = scmp.lt.s32.totalorder (!%p139_p2), %s788_s16, 63  ;;  %1002 = vmatprep.subr.bf16.mxu0 (!%p139_p2), %v1074_v0  ;;  %1050 = vmatprep.subr.bf16.mxu1 (!%p139_p2), %v1074_v0  ;;  %v1077_v3 = vld [vmem:[%s1248_s1 + $0x18] sm:$0xff] (!%p139_p2)   ;;  %v1078_v6 = vld [vmem:[%s1248_s1 + $0x20] sm:$0xff] (!%p139_p2)   ;;  %v1079_v7 = vld [vmem:[%s1248_s1 + $0x28] sm:$0xff] (!%p139_p2)  }
   0x7   : > { %1003 = vmatpush3.bf16.msra.mxu0 (!%p139_p2), %v1074_v0  ;;  %1058 = vmatpush3.bf16.msra.mxu1 (!%p139_p2), %v1074_v0  ;;  %v1080_v8 = vld [vmem:[%s1248_s1 + $0x30] sm:$0xff] (!%p139_p2)   ;;  %v1081_v9 = vld [vmem:[%s1248_s1 + $0x38] sm:$0xff] (!%p139_p2)   ;;  %v1187_v24 = vld [vmem:[%s1249_s2] ss:$0 sm:$0xff] (!%p139_p2) }
   0x8   : > { %1004 = vmatprep.subr.bf16.mxu0 (!%p139_p2), %v1075_v1  ;;  %1051 = vmatprep.subr.bf16.mxu1 (!%p139_p2), %v1075_v1 }
   0xb   : > { %1005 = vmatpush3.bf16.msra.mxu0 (!%p139_p2), %v1075_v1  ;;  %1059 = vmatpush3.bf16.msra.mxu1 (!%p139_p2), %v1075_v1 }
   0xc   : > { %1006 = vmatprep.subr.bf16.mxu0 (!%p139_p2), %v1076_v2  ;;  %1052 = vmatprep.subr.bf16.mxu1 (!%p139_p2), %v1076_v2 }
   0xd   : > { %s1252_s16 = smov (!%p163_p3, %s788_s16), 63 }
   0xe   : > { %s789_s21 = sshll.u32 %s1252_s16, 2 }
   0xf   : > { %s1151_s24 = scalar_lea.vmem %s1247_s0, %s789_s21  ;;  %1007 = vmatpush3.bf16.msra.mxu0 %v1076_v2  ;;  %1060 = vmatpush3.bf16.msra.mxu1 %v1076_v2  ;;  %s1202_s13 = scalar_lea.vmem %s1250_s3, %s789_s21 }
  0x10   : > { %v1082_v4 = vld [vmem:[%s1151_s24] sm:$0xff]   ;;  %1008 = vmatprep.subr.bf16.mxu0 %v1077_v3  ;;  %1053 = vmatprep.subr.bf16.mxu1 %v1077_v3  ;;  %v1084_v10 = vld [vmem:[%s1151_s24 + $0x8] sm:$0xff]   ;;  %v1086_v12 = vld [vmem:[%s1151_s24 + $0x10] sm:$0xff]  }
  0x11   : > { %v1083_v5 = vld [vmem:[%s1151_s24 + $0x40] sm:$0xff]   ;;  %1018 = vmatprep.mubr.bf16.mxu0 %v1082_v4  ;;  %v1085_v11 = vld [vmem:[%s1151_s24 + $0x48] sm:$0xff]   ;;  %v1087_v13 = vld [vmem:[%s1151_s24 + $0x50] sm:$0xff]  }
  0x12   : > { %1034 = vmatprep.mubr.bf16.mxu1 %v1083_v5  ;;  %v1088_v14 = vld [vmem:[%s1151_s24 + $0x18] sm:$0xff]   ;;  %v1090_v16 = vld [vmem:[%s1151_s24 + $0x20] sm:$0xff]   ;;  %v1092_v18 = vld [vmem:[%s1151_s24 + $0x28] sm:$0xff]  }
  0x13   : > { %1009 = vmatpush3.bf16.msra.mxu0 %v1077_v3  ;;  %1061 = vmatpush3.bf16.msra.mxu1 %v1077_v3  ;;  %v1089_v15 = vld [vmem:[%s1151_s24 + $0x58] sm:$0xff]   ;;  %v1091_v17 = vld [vmem:[%s1151_s24 + $0x60] sm:$0xff]   ;;  %v1093_v19 = vld [vmem:[%s1151_s24 + $0x68] sm:$0xff]  }
  0x14   : > { %1010 = vmatprep.subr.bf16.mxu0 %v1078_v6  ;;  %1054 = vmatprep.subr.bf16.mxu1 %v1078_v6  ;;  %v1094_v20 = vld [vmem:[%s1151_s24 + $0x30] sm:$0xff]   ;;  %v1096_v22 = vld [vmem:[%s1151_s24 + $0x38] sm:$0xff]  }
  0x15   : > { %v1095_v21 = vld [vmem:[%s1151_s24 + $0x70] sm:$0xff]   ;;  %v1097_v23 = vld [vmem:[%s1151_s24 + $0x78] sm:$0xff]  }
  0x17   : > { %1011 = vmatpush3.bf16.msra.mxu0 %v1078_v6  ;;  %1062 = vmatpush3.bf16.msra.mxu1 %v1078_v6 }
  0x18   : > { %1012 = vmatprep.subr.bf16.mxu0 %v1079_v7  ;;  %1055 = vmatprep.subr.bf16.mxu1 %v1079_v7 }
  0x1b   : > { %1013 = vmatpush3.bf16.msra.mxu0 %v1079_v7  ;;  %1063 = vmatpush3.bf16.msra.mxu1 %v1079_v7 }
  0x1c   : > { %1014 = vmatprep.subr.bf16.mxu0 %v1080_v8  ;;  %1056 = vmatprep.subr.bf16.mxu1 %v1080_v8 }
  0x1f   : > { %1015 = vmatpush3.bf16.msra.mxu0 %v1080_v8  ;;  %1064 = vmatpush3.bf16.msra.mxu1 %v1080_v8 }
  0x20   : > { %1016 = vmatprep.subr.bf16.mxu0 %v1081_v9  ;;  %1057 = vmatprep.subr.bf16.mxu1 %v1081_v9 }
  0x23   : > { %1017 = vmatpush3.bf16.msra.mxu0 %v1081_v9  ;;  %1065 = vmatpush3.bf16.msra.mxu1 %v1081_v9 }
  0x26   : > { %1019 = vmatmul.mubr.bf16.vlgmr.msra.gmra.mrb[0].mxu0 %v1084_v10  ;;  %1035 = vmatmul.mubr.bf16.vlgmr.msra.gmra.mrb[0].mxu1 %v1085_v11 }
  0x27   : > { %1022 = vmatprep.mubr.bf16.mxu0 %v1086_v12  ;;  %1038 = vmatprep.mubr.bf16.mxu1 %v1087_v13 }
  0x2e   : > { %1023 = vmatmul.mubr.bf16.gmra.mrb[4].mxu0 %v1088_v14  ;;  %1039 = vmatmul.mubr.bf16.gmra.mrb[4].mxu1 %v1089_v15 }
  0x2f   : > { %1026 = vmatprep.mubr.bf16.mxu0 %v1090_v16  ;;  %1042 = vmatprep.mubr.bf16.mxu1 %v1091_v17 }
  0x36   : > { %1027 = vmatmul.mubr.bf16.gmra.mrb[8].mxu0 %v1092_v18  ;;  %1043 = vmatmul.mubr.bf16.gmra.mrb[8].mxu1 %v1093_v19 }
  0x37   : > { %1030 = vmatprep.mubr.bf16.mxu0 %v1094_v20  ;;  %1046 = vmatprep.mubr.bf16.mxu1 %v1095_v21 }
  0x3e   : > { %1031 = vmatmul.mubr.bf16.gmra.mrb[12].mxu0 %v1096_v22  ;;  %1047 = vmatmul.mubr.bf16.gmra.mrb[12].mxu1 %v1097_v23 }
  0xf9   : > { %v1020_v25 = vpop.f32.mrb[0].mxu0  ;;  %v1036_v26 = vpop.f32.mrb[0].mxu1 }
  0xfa   : > { %v417_v27 = vadd.f32 %v1020_v25, %v1187_v24  ;;  %v481_v28 = vadd.f32 %v1036_v26, %v1187_v24  ;;  %v408_v29 = vpop.f32.mrb[1].mxu0  ;;  %v472_v30 = vpop.f32.mrb[1].mxu1 }
  0xfb   : > { %v409_v31 = vadd.f32 %v1187_v24, %v408_v29  ;;  %v473_v32 = vadd.f32 %v1187_v24, %v472_v30  ;;  %v1021_v33 = vpop.f32.mrb[2].mxu0  ;;  %v1037_v34 = vpop.f32.mrb[2].mxu1 }
  0xfc   : > { %v420_v35 = vadd.f32 %v1021_v33, %v1187_v24  ;;  %v484_v36 = vadd.f32 %v1037_v34, %v1187_v24  ;;  %v411_v37 = vpop.f32.mrb[3].mxu0  ;;  %v475_v38 = vpop.f32.mrb[3].mxu1  ;;  %v537_v41 = vmax.f32 %v417_v27, 0.0  ;;  %v553_v42 = vmax.f32 %v481_v28, 0.0 }
  0xfd   : > { %v412_v39 = vadd.f32 %v1187_v24, %v411_v37  ;;  %v476_v40 = vadd.f32 %v1187_v24, %v475_v38  ;;  %v535_v45 = vmax.f32 %v409_v31, 0.0  ;;  %v551_v46 = vmax.f32 %v473_v32, 0.0 }
  0xfe   : > { %v538_v43 = vmax.f32 %v420_v35, 0.0  ;;  %v554_v44 = vmax.f32 %v484_v36, 0.0 }
  0xff   : > { %v536_v47 = vmax.f32 %v412_v39, 0.0  ;;  %v552_v48 = vmax.f32 %v476_v40, 0.0 }
 0x100   : > { %v891_v49 = vpack.c.bf16 %v538_v43, %v537_v41  ;;  %v931_v50 = vpack.c.bf16 %v554_v44, %v553_v42 }
 0x101   : > { %v886_v51 = vpack.c.bf16 %v536_v47, %v535_v45  ;;  %v926_v52 = vpack.c.bf16 %v552_v48, %v551_v46  ;;  %v1024_v53 = vpop.f32.mrb[4].mxu0  ;;  %v1040_v54 = vpop.f32.mrb[4].mxu1 }
 0x102   : > { %963 = vst [vmem:[%s1202_s13 + $0x8] sm:$0xff] %v891_v49   ;;  %971 = vst [vmem:[%s1202_s13 + $0x48] sm:$0xff] %v931_v50   ;;  %v433_v55 = vadd.f32 %v1024_v53, %v1187_v24  ;;  %v497_v56 = vadd.f32 %v1040_v54, %v1187_v24  ;;  %v424_v57 = vpop.f32.mrb[5].mxu0  ;;  %v488_v58 = vpop.f32.mrb[5].mxu1 }
 0x103   : > { %887 = vst [vmem:[%s1202_s13] sm:$0xff] %v886_v51   ;;  %970 = vst [vmem:[%s1202_s13 + $0x40] sm:$0xff] %v926_v52   ;;  %v425_v59 = vadd.f32 %v1187_v24, %v424_v57  ;;  %v489_v60 = vadd.f32 %v1187_v24, %v488_v58  ;;  %v1025_v61 = vpop.f32.mrb[6].mxu0  ;;  %v1041_v62 = vpop.f32.mrb[6].mxu1 }
 0x104   : > { %v436_v63 = vadd.f32 %v1025_v61, %v1187_v24  ;;  %v500_v0 = vadd.f32 %v1041_v62, %v1187_v24  ;;  %v427_v1 = vpop.f32.mrb[7].mxu0  ;;  %v491_v2 = vpop.f32.mrb[7].mxu1  ;;  %v541_v5 = vmax.f32 %v433_v55, 0.0  ;;  %v557_v6 = vmax.f32 %v497_v56, 0.0 }
 0x105   : > { %v428_v3 = vadd.f32 %v1187_v24, %v427_v1  ;;  %v492_v4 = vadd.f32 %v1187_v24, %v491_v2  ;;  %v539_v9 = vmax.f32 %v425_v59, 0.0  ;;  %v555_v10 = vmax.f32 %v489_v60, 0.0 }
 0x106   : > { %v542_v7 = vmax.f32 %v436_v63, 0.0  ;;  %v558_v8 = vmax.f32 %v500_v0, 0.0 }
 0x107   : > { %v540_v11 = vmax.f32 %v428_v3, 0.0  ;;  %v556_v12 = vmax.f32 %v492_v4, 0.0 }
 0x108   : > { %v901_v13 = vpack.c.bf16 %v542_v7, %v541_v5  ;;  %v941_v14 = vpack.c.bf16 %v558_v8, %v557_v6 }
 0x109   : > { %v896_v15 = vpack.c.bf16 %v540_v11, %v539_v9  ;;  %v936_v16 = vpack.c.bf16 %v556_v12, %v555_v10  ;;  %v1028_v17 = vpop.f32.mrb[8].mxu0  ;;  %v1044_v18 = vpop.f32.mrb[8].mxu1 }
 0x10a   : > { %965 = vst [vmem:[%s1202_s13 + $0x18] sm:$0xff] %v901_v13   ;;  %973 = vst [vmem:[%s1202_s13 + $0x58] sm:$0xff] %v941_v14   ;;  %v449_v19 = vadd.f32 %v1028_v17, %v1187_v24  ;;  %v513_v20 = vadd.f32 %v1044_v18, %v1187_v24  ;;  %v440_v21 = vpop.f32.mrb[9].mxu0  ;;  %v504_v22 = vpop.f32.mrb[9].mxu1 }
 0x10b   : > { %964 = vst [vmem:[%s1202_s13 + $0x10] sm:$0xff] %v896_v15   ;;  %972 = vst [vmem:[%s1202_s13 + $0x50] sm:$0xff] %v936_v16   ;;  %v441_v23 = vadd.f32 %v1187_v24, %v440_v21  ;;  %v505_v25 = vadd.f32 %v1187_v24, %v504_v22  ;;  %v1029_v26 = vpop.f32.mrb[10].mxu0  ;;  %v1045_v27 = vpop.f32.mrb[10].mxu1 }
 0x10c   : > { %v452_v28 = vadd.f32 %v1029_v26, %v1187_v24  ;;  %v516_v29 = vadd.f32 %v1045_v27, %v1187_v24  ;;  %v443_v30 = vpop.f32.mrb[11].mxu0  ;;  %v507_v31 = vpop.f32.mrb[11].mxu1  ;;  %v545_v34 = vmax.f32 %v449_v19, 0.0  ;;  %v561_v35 = vmax.f32 %v513_v20, 0.0 }
 0x10d   : > { %v444_v32 = vadd.f32 %v1187_v24, %v443_v30  ;;  %v508_v33 = vadd.f32 %v1187_v24, %v507_v31  ;;  %v543_v38 = vmax.f32 %v441_v23, 0.0  ;;  %v559_v39 = vmax.f32 %v505_v25, 0.0 }
 0x10e   : > { %v546_v36 = vmax.f32 %v452_v28, 0.0  ;;  %v562_v37 = vmax.f32 %v516_v29, 0.0 }
 0x10f   : > { %v544_v40 = vmax.f32 %v444_v32, 0.0  ;;  %v560_v41 = vmax.f32 %v508_v33, 0.0 }
 0x110   : > { %v911_v42 = vpack.c.bf16 %v546_v36, %v545_v34  ;;  %v951_v43 = vpack.c.bf16 %v562_v37, %v561_v35 }
 0x111   : > { %v906_v44 = vpack.c.bf16 %v544_v40, %v543_v38  ;;  %v946_v45 = vpack.c.bf16 %v560_v41, %v559_v39  ;;  %v1032_v46 = vpop.f32.mrb[12].mxu0  ;;  %v1048_v47 = vpop.f32.mrb[12].mxu1 }
 0x112   : > { %967 = vst [vmem:[%s1202_s13 + $0x28] sm:$0xff] %v911_v42   ;;  %975 = vst [vmem:[%s1202_s13 + $0x68] sm:$0xff] %v951_v43   ;;  %v465_v48 = vadd.f32 %v1032_v46, %v1187_v24  ;;  %v529_v49 = vadd.f32 %v1048_v47, %v1187_v24  ;;  %v456_v50 = vpop.f32.mrb[13].mxu0  ;;  %v520_v51 = vpop.f32.mrb[13].mxu1 }
 0x113   : > { %966 = vst [vmem:[%s1202_s13 + $0x20] sm:$0xff] %v906_v44   ;;  %974 = vst [vmem:[%s1202_s13 + $0x60] sm:$0xff] %v946_v45   ;;  %v457_v52 = vadd.f32 %v1187_v24, %v456_v50  ;;  %v521_v53 = vadd.f32 %v1187_v24, %v520_v51  ;;  %v1033_v54 = vpop.f32.mrb[14].mxu0  ;;  %v1049_v55 = vpop.f32.mrb[14].mxu1 }
 0x114   : > { %v468_v56 = vadd.f32 %v1033_v54, %v1187_v24  ;;  %v532_v57 = vadd.f32 %v1049_v55, %v1187_v24  ;;  %v459_v58 = vpop.f32.mrb[15].mxu0  ;;  %v523_v59 = vpop.f32.mrb[15].mxu1  ;;  %v549_v62 = vmax.f32 %v465_v48, 0.0  ;;  %v565_v63 = vmax.f32 %v529_v49, 0.0 }
 0x115   : > { %v460_v60 = vadd.f32 %v1187_v24, %v459_v58  ;;  %v524_v61 = vadd.f32 %v1187_v24, %v523_v59  ;;  %v547_v2 = vmax.f32 %v457_v52, 0.0  ;;  %v563_v3 = vmax.f32 %v521_v53, 0.0 }
 0x116   : > { %v550_v0 = vmax.f32 %v468_v56, 0.0  ;;  %v566_v1 = vmax.f32 %v532_v57, 0.0 }
 0x117   : > { %v548_v4 = vmax.f32 %v460_v60, 0.0  ;;  %v564_v5 = vmax.f32 %v524_v61, 0.0 }
 0x118   : > { %v921_v6 = vpack.c.bf16 %v550_v0, %v549_v62  ;;  %v961_v7 = vpack.c.bf16 %v566_v1, %v565_v63 }
 0x119   : > { %v916_v8 = vpack.c.bf16 %v548_v4, %v547_v2  ;;  %v956_v9 = vpack.c.bf16 %v564_v5, %v563_v3 }
 0x11a   : > { %969 = vst [vmem:[%s1202_s13 + $0x38] sm:$0xff] %v921_v6   ;;  %977 = vst [vmem:[%s1202_s13 + $0x78] sm:$0xff] %v961_v7  }
 0x11b   : > { %968 = vst [vmem:[%s1202_s13 + $0x30] sm:$0xff] %v916_v8   ;;  %976 = vst [vmem:[%s1202_s13 + $0x70] sm:$0xff] %v956_v9  }
 0x11c PF: > { %s13_s12 = sadd.s32 1, %s1104_s12  }
 0x11d   : > { %p10_p4 = scmp.ge.s32.totalorder %s13_s12, 4  }
 0x11f   :  { %12 = sbr.rel (!%p10_p4) target bundleno = 1 (0x1), region = 62 }

// kernel: resnet_forward.20
= control target key start
LH: loop header
LB: loop body
LE: loop exit
PB: predicated region body
PF: predicated region fallthrough
CT: control target
= control target key end

     0   :  { %s1369_s15 = smov 0   ;;  %s1597_s0 = inlined_call_operand.vmem [shape: bf16[512,128], index: 0, kind: input, shape index: {}]   ;;  %s1598_s1 = inlined_call_operand.vmem [shape: bf16[128,128], index: 1, kind: input, shape index: {}]   ;;  %s1599_s2 = inlined_call_operand.vmem [shape: f32[1,128], index: 2, kind: input, shape index: {}]   ;;  %s1600_s3 = inlined_call_operand.vmem [shape: bf16[512,128], index: 3, kind: input, shape index: {}]   ;;  %s1601_s4 = inlined_call_operand.vmem [shape: bf16[512,128], index: 4, kind: output, shape index: {}]  }
   0x1 LB: > { %s940_s16 = sadd.s32 4294967295, %s1342_s15   ;;  %p944_p0 = scmp.ge.s32.totalorder %s1342_s15, 1  ;;  %s1342_s15 = sphi %s1369_s15, %s14_s15  }
   0x2   : > { %p174_p1 = scmp.lt.s32.totalorder %s1342_s15, 3 }
   0x4   : > { %p175_p2 = pnand %p944_p0, %p174_p1 }
   0x5   : > { %v1312_v0 = vld [vmem:[%s1598_s1] sm:$0xff] (!%p175_p2)   ;;  %s945_s19 = sshll.u32 (!%p175_p2), %s940_s16, 5  ;;  %v1313_v1 = vld [vmem:[%s1598_s1 + $0x8] sm:$0xff] (!%p175_p2)   ;;  %v1314_v2 = vld [vmem:[%s1598_s1 + $0x10] sm:$0xff] (!%p175_p2)  }
   0x6   : > { %178 = sbr.rel (%p175_p2) target bundleno = 287 (0x11f), region = 36  ;;  %p206_p3 = scmp.lt.s32.totalorder (!%p175_p2), %s945_s19, 63  ;;  %1240 = vmatprep.subr.bf16.mxu0 (!%p175_p2), %v1312_v0  ;;  %1288 = vmatprep.subr.bf16.mxu1 (!%p175_p2), %v1312_v0  ;;  %v1315_v3 = vld [vmem:[%s1598_s1 + $0x18] sm:$0xff] (!%p175_p2)   ;;  %v1316_v6 = vld [vmem:[%s1598_s1 + $0x20] sm:$0xff] (!%p175_p2)   ;;  %v1317_v7 = vld [vmem:[%s1598_s1 + $0x28] sm:$0xff] (!%p175_p2)  }
   0x7   : > { %1241 = vmatpush3.bf16.msra.mxu0 (!%p175_p2), %v1312_v0  ;;  %1296 = vmatpush3.bf16.msra.mxu1 (!%p175_p2), %v1312_v0  ;;  %v1318_v8 = vld [vmem:[%s1598_s1 + $0x30] sm:$0xff] (!%p175_p2)   ;;  %v1319_v9 = vld [vmem:[%s1598_s1 + $0x38] sm:$0xff] (!%p175_p2)   ;;  %v1450_v36 = vld [vmem:[%s1599_s2] ss:$0 sm:$0xff] (!%p175_p2) }
   0x8   : > { %1242 = vmatprep.subr.bf16.mxu0 (!%p175_p2), %v1313_v1  ;;  %1289 = vmatprep.subr.bf16.mxu1 (!%p175_p2), %v1313_v1 }
   0xb   : > { %1243 = vmatpush3.bf16.msra.mxu0 (!%p175_p2), %v1313_v1  ;;  %1297 = vmatpush3.bf16.msra.mxu1 (!%p175_p2), %v1313_v1 }
   0xc   : > { %1244 = vmatprep.subr.bf16.mxu0 (!%p175_p2), %v1314_v2  ;;  %1290 = vmatprep.subr.bf16.mxu1 (!%p175_p2), %v1314_v2 }
   0xd   : > { %s1603_s19 = smov (!%p206_p3, %s945_s19), 63 }
   0xe   : > { %s1386_s24 = sshll.u32 %s1603_s19, 2 }
   0xf   : > { %s1392_s27 = scalar_lea.vmem %s1597_s0, %s1386_s24  ;;  %1245 = vmatpush3.bf16.msra.mxu0 %v1314_v2  ;;  %1298 = vmatpush3.bf16.msra.mxu1 %v1314_v2  ;;  %s1429_s14 = scalar_lea.vmem %s1600_s3, %s1386_s24 }
  0x10   : > { %v1320_v4 = vld [vmem:[%s1392_s27] sm:$0xff]   ;;  %1246 = vmatprep.subr.bf16.mxu0 %v1315_v3  ;;  %1291 = vmatprep.subr.bf16.mxu1 %v1315_v3  ;;  %v1322_v10 = vld [vmem:[%s1392_s27 + $0x8] sm:$0xff]   ;;  %v1324_v12 = vld [vmem:[%s1392_s27 + $0x10] sm:$0xff]   ;;  %s1492_s20 = scalar_lea.vmem %s1601_s4, %s1386_s24 }
  0x11   : > { %v1321_v5 = vld [vmem:[%s1392_s27 + $0x40] sm:$0xff]   ;;  %1256 = vmatprep.mubr.bf16.mxu0 %v1320_v4  ;;  %v1323_v11 = vld [vmem:[%s1392_s27 + $0x48] sm:$0xff]   ;;  %v1325_v13 = vld [vmem:[%s1392_s27 + $0x50] sm:$0xff]  }
  0x12   : > { %1272 = vmatprep.mubr.bf16.mxu1 %v1321_v5  ;;  %v1326_v14 = vld [vmem:[%s1392_s27 + $0x18] sm:$0xff]   ;;  %v1328_v16 = vld [vmem:[%s1392_s27 + $0x20] sm:$0xff]   ;;  %v1330_v18 = vld [vmem:[%s1392_s27 + $0x28] sm:$0xff]  }
  0x13   : > { %1247 = vmatpush3.bf16.msra.mxu0 %v1315_v3  ;;  %1299 = vmatpush3.bf16.msra.mxu1 %v1315_v3  ;;  %v1327_v15 = vld [vmem:[%s1392_s27 + $0x58] sm:$0xff]   ;;  %v1329_v17 = vld [vmem:[%s1392_s27 + $0x60] sm:$0xff]   ;;  %v1331_v19 = vld [vmem:[%s1392_s27 + $0x68] sm:$0xff]  }
  0x14   : > { %1248 = vmatprep.subr.bf16.mxu0 %v1316_v6  ;;  %1292 = vmatprep.subr.bf16.mxu1 %v1316_v6  ;;  %v1332_v20 = vld [vmem:[%s1392_s27 + $0x30] sm:$0xff]   ;;  %v1334_v22 = vld [vmem:[%s1392_s27 + $0x38] sm:$0xff]   ;;  %v1186_v24 = vld [vmem:[%s1429_s14 + $0x8] sm:$0xff]  }
  0x15   : > { %v1333_v21 = vld [vmem:[%s1392_s27 + $0x70] sm:$0xff]   ;;  %v1335_v23 = vld [vmem:[%s1392_s27 + $0x78] sm:$0xff]   ;;  %v1194_v25 = vld [vmem:[%s1429_s14 + $0x48] sm:$0xff]   ;;  %v1048_v32 = vunpack.c.l.bf16 %v1186_v24  ;;  %v1049_v37 = vunpack.c.h.bf16 %v1186_v24 }
  0x16   : > { %v1043_v26 = vld [vmem:[%s1429_s14] sm:$0xff]   ;;  %v1436_v28 = vld [vmem:[%s1429_s14 + $0x18] sm:$0xff]   ;;  %v1442_v30 = vld [vmem:[%s1429_s14 + $0x10] sm:$0xff]   ;;  %v1080_v33 = vunpack.c.l.bf16 %v1194_v25  ;;  %v1081_v38 = vunpack.c.h.bf16 %v1194_v25 }
  0x17   : > { %1249 = vmatpush3.bf16.msra.mxu0 %v1316_v6  ;;  %1300 = vmatpush3.bf16.msra.mxu1 %v1316_v6  ;;  %v1193_v27 = vld [vmem:[%s1429_s14 + $0x40] sm:$0xff]   ;;  %v1439_v29 = vld [vmem:[%s1429_s14 + $0x58] sm:$0xff]   ;;  %v1445_v31 = vld [vmem:[%s1429_s14 + $0x50] sm:$0xff]   ;;  %v1044_v34 = vunpack.c.l.bf16 %v1043_v26  ;;  %v1045_v39 = vunpack.c.h.bf16 %v1043_v26  ;;  %v1056_v43 = vunpack.c.l.bf16 %v1436_v28  ;;  %v1052_v45 = vunpack.c.l.bf16 %v1442_v30 }
  0x18   : > { %1250 = vmatprep.subr.bf16.mxu0 %v1317_v7  ;;  %1293 = vmatprep.subr.bf16.mxu1 %v1317_v7  ;;  %v1076_v35 = vunpack.c.l.bf16 %v1193_v27  ;;  %v1077_v40 = vunpack.c.h.bf16 %v1193_v27  ;;  %v1453_v41 = vld [vmem:[%s1429_s14 + $0x28] sm:$0xff]   ;;  %v1088_v44 = vunpack.c.l.bf16 %v1439_v29  ;;  %v1084_v46 = vunpack.c.l.bf16 %v1445_v31  ;;  %v1463_v47 = vld [vmem:[%s1429_s14 + $0x20] sm:$0xff]  }
  0x19   : > { %v1456_v42 = vld [vmem:[%s1429_s14 + $0x68] sm:$0xff]   ;;  %v1466_v48 = vld [vmem:[%s1429_s14 + $0x60] sm:$0xff]   ;;  %v1057_v51 = vunpack.c.h.bf16 %v1436_v28  ;;  %v1089_v52 = vunpack.c.h.bf16 %v1439_v29  ;;  %v1053_v53 = vunpack.c.h.bf16 %v1442_v30  ;;  %v1085_v54 = vunpack.c.h.bf16 %v1445_v31 }
  0x1a   : > { %v1064_v59 = vunpack.c.l.bf16 %v1453_v41  ;;  %v1096_v60 = vunpack.c.l.bf16 %v1456_v42  ;;  %v1060_v1 = vunpack.c.l.bf16 %v1463_v47  ;;  %v1092_v2 = vunpack.c.l.bf16 %v1466_v48 }
  0x1b   : > { %1251 = vmatpush3.bf16.msra.mxu0 %v1317_v7  ;;  %1301 = vmatpush3.bf16.msra.mxu1 %v1317_v7 }
  0x1c   : > { %1252 = vmatprep.subr.bf16.mxu0 %v1318_v8  ;;  %1294 = vmatprep.subr.bf16.mxu1 %v1318_v8 }
  0x1f   : > { %1253 = vmatpush3.bf16.msra.mxu0 %v1318_v8  ;;  %1302 = vmatpush3.bf16.msra.mxu1 %v1318_v8 }
  0x20   : > { %1254 = vmatprep.subr.bf16.mxu0 %v1319_v9  ;;  %1295 = vmatprep.subr.bf16.mxu1 %v1319_v9 }
  0x23   : > { %1255 = vmatpush3.bf16.msra.mxu0 %v1319_v9  ;;  %1303 = vmatpush3.bf16.msra.mxu1 %v1319_v9 }
  0x26   : > { %1257 = vmatmul.mubr.bf16.vlgmr.msra.gmra.mrb[0].mxu0 %v1322_v10  ;;  %1273 = vmatmul.mubr.bf16.vlgmr.msra.gmra.mrb[0].mxu1 %v1323_v11 }
  0x27   : > { %1260 = vmatprep.mubr.bf16.mxu0 %v1324_v12  ;;  %1276 = vmatprep.mubr.bf16.mxu1 %v1325_v13 }
  0x2e   : > { %1261 = vmatmul.mubr.bf16.gmra.mrb[4].mxu0 %v1326_v14  ;;  %1277 = vmatmul.mubr.bf16.gmra.mrb[4].mxu1 %v1327_v15  ;;  %v1065_v15 = vunpack.c.h.bf16 %v1453_v41 }
  0x2f   : > { %1264 = vmatprep.mubr.bf16.mxu0 %v1328_v16  ;;  %1280 = vmatprep.mubr.bf16.mxu1 %v1329_v17  ;;  %v1097_v16 = vunpack.c.h.bf16 %v1456_v42 }
  0x36   : > { %1265 = vmatmul.mubr.bf16.gmra.mrb[8].mxu0 %v1330_v18  ;;  %1281 = vmatmul.mubr.bf16.gmra.mrb[8].mxu1 %v1331_v19  ;;  %v1061_v19 = vunpack.c.h.bf16 %v1463_v47 }
  0x37   : > { %1268 = vmatprep.mubr.bf16.mxu0 %v1332_v20  ;;  %1284 = vmatprep.mubr.bf16.mxu1 %v1333_v21  ;;  %v1093_v20 = vunpack.c.h.bf16 %v1466_v48 }
  0x3e   : > { %1269 = vmatmul.mubr.bf16.gmra.mrb[12].mxu0 %v1334_v22  ;;  %1285 = vmatmul.mubr.bf16.gmra.mrb[12].mxu1 %v1335_v23 }
  0xf9   : > { %v1258_v49 = vpop.f32.mrb[0].mxu0  ;;  %v1274_v50 = vpop.f32.mrb[0].mxu1 }
  0xfa   : > { %v466_v55 = vadd.f32 %v1258_v49, %v1450_v36  ;;  %v530_v56 = vadd.f32 %v1274_v50, %v1450_v36  ;;  %v457_v57 = vpop.f32.mrb[1].mxu0  ;;  %v521_v58 = vpop.f32.mrb[1].mxu1 }
  0xfb   : > { %v458_v61 = vadd.f32 %v1450_v36, %v457_v57  ;;  %v522_v62 = vadd.f32 %v1450_v36, %v521_v58  ;;  %v1259_v63 = vpop.f32.mrb[2].mxu0  ;;  %v1275_v0 = vpop.f32.mrb[2].mxu1 }
  0xfc   : > { %v650_v3 = vadd.f32 %v1048_v32, %v466_v55  ;;  %v666_v4 = vadd.f32 %v1080_v33, %v530_v56  ;;  %v469_v5 = vadd.f32 %v1259_v63, %v1450_v36  ;;  %v533_v6 = vadd.f32 %v1275_v0, %v1450_v36  ;;  %v460_v7 = vpop.f32.mrb[3].mxu0  ;;  %v524_v8 = vpop.f32.mrb[3].mxu1  ;;  %v1502_v63 = vld [vmem:[%s1429_s14 + $0x78] sm:$0xff]  }
  0xfd   : > { %v648_v9 = vadd.f32 %v1044_v34, %v458_v61  ;;  %v664_v10 = vadd.f32 %v1076_v35, %v522_v62  ;;  %v461_v11 = vadd.f32 %v1450_v36, %v460_v7  ;;  %v525_v12 = vadd.f32 %v1450_v36, %v524_v8  ;;  %v1499_v62 = vld [vmem:[%s1429_s14 + $0x38] sm:$0xff]   ;;  %v1513_v8 = vld [vmem:[%s1429_s14 + $0x30] sm:$0xff]  }
  0xfe   : > { %v651_v13 = vadd.f32 %v1049_v37, %v469_v5  ;;  %v667_v14 = vadd.f32 %v1081_v38, %v533_v6  ;;  %v682_v21 = vmax.f32 %v650_v3, 0.0  ;;  %v698_v22 = vmax.f32 %v666_v4, 0.0 }
  0xff   : > { %v649_v17 = vadd.f32 %v1045_v39, %v461_v11  ;;  %v665_v18 = vadd.f32 %v1077_v40, %v525_v12  ;;  %v680_v25 = vmax.f32 %v648_v9, 0.0  ;;  %v696_v26 = vmax.f32 %v664_v10, 0.0  ;;  %v1516_v9 = vld [vmem:[%s1429_s14 + $0x70] sm:$0xff]  }
 0x100   : > { %v683_v23 = vmax.f32 %v651_v13, 0.0  ;;  %v699_v24 = vmax.f32 %v667_v14, 0.0  ;;  %v1072_v14 = vunpack.c.l.bf16 %v1499_v62 }
 0x101   : > { %v681_v27 = vmax.f32 %v649_v17, 0.0  ;;  %v697_v32 = vmax.f32 %v665_v18, 0.0  ;;  %v1262_v33 = vpop.f32.mrb[4].mxu0  ;;  %v1278_v34 = vpop.f32.mrb[4].mxu1  ;;  %v1104_v17 = vunpack.c.l.bf16 %v1502_v63  ;;  %v1068_v18 = vunpack.c.l.bf16 %v1513_v8 }
 0x102   : > { %v1114_v35 = vpack.c.bf16 %v683_v23, %v682_v21  ;;  %v1154_v37 = vpack.c.bf16 %v699_v24, %v698_v22  ;;  %v482_v38 = vadd.f32 %v1262_v33, %v1450_v36  ;;  %v546_v39 = vadd.f32 %v1278_v34, %v1450_v36  ;;  %v473_v40 = vpop.f32.mrb[5].mxu0  ;;  %v537_v49 = vpop.f32.mrb[5].mxu1 }
 0x103   : > { %v1109_v50 = vpack.c.bf16 %v681_v27, %v680_v25  ;;  %v1149_v55 = vpack.c.bf16 %v697_v32, %v696_v26  ;;  %v474_v56 = vadd.f32 %v1450_v36, %v473_v40  ;;  %v538_v57 = vadd.f32 %v1450_v36, %v537_v49  ;;  %v1263_v58 = vpop.f32.mrb[6].mxu0  ;;  %v1279_v61 = vpop.f32.mrb[6].mxu1 }
 0x104   : > { %1201 = vst [vmem:[%s1492_s20 + $0x8] sm:$0xff] %v1114_v35   ;;  %1209 = vst [vmem:[%s1492_s20 + $0x48] sm:$0xff] %v1154_v37   ;;  %v654_v0 = vadd.f32 %v1056_v43, %v482_v38  ;;  %v670_v3 = vadd.f32 %v1088_v44, %v546_v39  ;;  %v485_v4 = vadd.f32 %v1263_v58, %v1450_v36  ;;  %v476_v6 = vpop.f32.mrb[7].mxu0  ;;  %v540_v7 = vpop.f32.mrb[7].mxu1  ;;  %v1100_v21 = vunpack.c.l.bf16 %v1516_v9 }
 0x105   : > { %v549_v5 = vadd.f32 %v1279_v61, %v1450_v36  ;;  %1110 = vst [vmem:[%s1492_s20] sm:$0xff] %v1109_v50   ;;  %1208 = vst [vmem:[%s1492_s20 + $0x40] sm:$0xff] %v1149_v55   ;;  %v652_v10 = vadd.f32 %v1052_v45, %v474_v56  ;;  %v668_v43 = vadd.f32 %v1084_v46, %v538_v57 }
 0x106   : > { %v477_v44 = vadd.f32 %v1450_v36, %v476_v6  ;;  %v541_v11 = vadd.f32 %v1450_v36, %v540_v7  ;;  %v655_v12 = vadd.f32 %v1057_v51, %v485_v4  ;;  %v686_v22 = vmax.f32 %v654_v0, 0.0 }
 0x107   : > { %v671_v13 = vadd.f32 %v1089_v52, %v549_v5  ;;  %v702_v28 = vmax.f32 %v670_v3, 0.0  ;;  %v684_v29 = vmax.f32 %v652_v10, 0.0  ;;  %v700_v52 = vmax.f32 %v668_v43, 0.0 }
 0x108   : > { %v653_v45 = vadd.f32 %v1053_v53, %v477_v44  ;;  %v669_v46 = vadd.f32 %v1085_v54, %v541_v11  ;;  %v687_v51 = vmax.f32 %v655_v12, 0.0  ;;  %v1073_v5 = vunpack.c.h.bf16 %v1499_v62 }
 0x109   : > { %v703_v23 = vmax.f32 %v671_v13, 0.0  ;;  %v1266_v26 = vpop.f32.mrb[8].mxu0  ;;  %v1282_v30 = vpop.f32.mrb[8].mxu1  ;;  %v1105_v6 = vunpack.c.h.bf16 %v1502_v63  ;;  %v1069_v7 = vunpack.c.h.bf16 %v1513_v8  ;;  %v1101_v10 = vunpack.c.h.bf16 %v1516_v9 }
 0x10a   : > { %v685_v24 = vmax.f32 %v653_v45, 0.0  ;;  %v701_v25 = vmax.f32 %v669_v46, 0.0  ;;  %v1124_v53 = vpack.c.bf16 %v687_v51, %v686_v22  ;;  %v498_v31 = vadd.f32 %v1266_v26, %v1450_v36  ;;  %v489_v32 = vpop.f32.mrb[9].mxu0  ;;  %v553_v33 = vpop.f32.mrb[9].mxu1 }
 0x10b   : > { %v1164_v27 = vpack.c.bf16 %v703_v23, %v702_v28  ;;  %v562_v54 = vadd.f32 %v1282_v30, %v1450_v36  ;;  %v490_v37 = vadd.f32 %v1450_v36, %v489_v32  ;;  %v554_v38 = vadd.f32 %v1450_v36, %v553_v33  ;;  %v1267_v39 = vpop.f32.mrb[10].mxu0  ;;  %v1283_v40 = vpop.f32.mrb[10].mxu1 }
 0x10c   : > { %v1119_v34 = vpack.c.bf16 %v685_v24, %v684_v29  ;;  %v1159_v35 = vpack.c.bf16 %v701_v25, %v700_v52  ;;  %1203 = vst [vmem:[%s1492_s20 + $0x18] sm:$0xff] %v1124_v53   ;;  %v658_v49 = vadd.f32 %v1064_v59, %v498_v31  ;;  %v501_v55 = vadd.f32 %v1267_v39, %v1450_v36  ;;  %v492_v57 = vpop.f32.mrb[11].mxu0  ;;  %v556_v58 = vpop.f32.mrb[11].mxu1 }
 0x10d   : > { %1211 = vst [vmem:[%s1492_s20 + $0x58] sm:$0xff] %v1164_v27   ;;  %v674_v50 = vadd.f32 %v1096_v60, %v562_v54  ;;  %v565_v56 = vadd.f32 %v1283_v40, %v1450_v36  ;;  %v656_v61 = vadd.f32 %v1060_v1, %v490_v37  ;;  %v672_v0 = vadd.f32 %v1092_v2, %v554_v38 }
 0x10e   : > { %1202 = vst [vmem:[%s1492_s20 + $0x10] sm:$0xff] %v1119_v34   ;;  %1210 = vst [vmem:[%s1492_s20 + $0x50] sm:$0xff] %v1159_v35   ;;  %v493_v3 = vadd.f32 %v1450_v36, %v492_v57  ;;  %v557_v59 = vadd.f32 %v1450_v36, %v556_v58  ;;  %v659_v60 = vadd.f32 %v1065_v15, %v501_v55  ;;  %v690_v43 = vmax.f32 %v658_v49, 0.0 }
 0x10f   : > { %v675_v4 = vadd.f32 %v1097_v16, %v565_v56  ;;  %v706_v41 = vmax.f32 %v674_v50, 0.0  ;;  %v688_v42 = vmax.f32 %v656_v61, 0.0  ;;  %v704_v16 = vmax.f32 %v672_v0, 0.0 }
 0x110   : > { %v657_v1 = vadd.f32 %v1061_v19, %v493_v3  ;;  %v673_v2 = vadd.f32 %v1093_v20, %v557_v59  ;;  %v691_v15 = vmax.f32 %v659_v60, 0.0 }
 0x111   : > { %v707_v44 = vmax.f32 %v675_v4, 0.0  ;;  %v1270_v13 = vpop.f32.mrb[12].mxu0  ;;  %v1286_v47 = vpop.f32.mrb[12].mxu1 }
 0x112   : > { %v689_v11 = vmax.f32 %v657_v1, 0.0  ;;  %v705_v12 = vmax.f32 %v673_v2, 0.0  ;;  %v1134_v19 = vpack.c.bf16 %v691_v15, %v690_v43  ;;  %v514_v48 = vadd.f32 %v1270_v13, %v1450_v36  ;;  %v505_v46 = vpop.f32.mrb[13].mxu0  ;;  %v569_v22 = vpop.f32.mrb[13].mxu1 }
 0x113   : > { %v1174_v45 = vpack.c.bf16 %v707_v44, %v706_v41  ;;  %v578_v20 = vadd.f32 %v1286_v47, %v1450_v36  ;;  %v506_v23 = vadd.f32 %v1450_v36, %v505_v46  ;;  %v570_v29 = vadd.f32 %v1450_v36, %v569_v22  ;;  %v1271_v52 = vpop.f32.mrb[14].mxu0  ;;  %v1287_v24 = vpop.f32.mrb[14].mxu1 }
 0x114   : > { %v1129_v28 = vpack.c.bf16 %v689_v11, %v688_v42  ;;  %v1169_v51 = vpack.c.bf16 %v705_v12, %v704_v16  ;;  %1205 = vst [vmem:[%s1492_s20 + $0x28] sm:$0xff] %v1134_v19   ;;  %v662_v25 = vadd.f32 %v1072_v14, %v514_v48  ;;  %v517_v30 = vadd.f32 %v1271_v52, %v1450_v36  ;;  %v508_v27 = vpop.f32.mrb[15].mxu0  ;;  %v572_v31 = vpop.f32.mrb[15].mxu1 }
 0x115   : > { %1213 = vst [vmem:[%s1492_s20 + $0x68] sm:$0xff] %v1174_v45   ;;  %v678_v26 = vadd.f32 %v1104_v17, %v578_v20  ;;  %v581_v53 = vadd.f32 %v1287_v24, %v1450_v36  ;;  %v660_v54 = vadd.f32 %v1068_v18, %v506_v23  ;;  %v676_v32 = vadd.f32 %v1100_v21, %v570_v29 }
 0x116   : > { %1204 = vst [vmem:[%s1492_s20 + $0x20] sm:$0xff] %v1129_v28   ;;  %1212 = vst [vmem:[%s1492_s20 + $0x60] sm:$0xff] %v1169_v51   ;;  %v509_v62 = vadd.f32 %v1450_v36, %v508_v27  ;;  %v573_v14 = vadd.f32 %v1450_v36, %v572_v31  ;;  %v663_v63 = vadd.f32 %v1073_v5, %v517_v30  ;;  %v694_v35 = vmax.f32 %v662_v25, 0.0 }
 0x117   : > { %v679_v17 = vadd.f32 %v1105_v6, %v581_v53  ;;  %v710_v37 = vmax.f32 %v678_v26, 0.0  ;;  %v692_v18 = vmax.f32 %v660_v54, 0.0  ;;  %v708_v39 = vmax.f32 %v676_v32, 0.0 }
 0x118   : > { %v661_v33 = vadd.f32 %v1069_v7, %v509_v62  ;;  %v677_v34 = vadd.f32 %v1101_v10, %v573_v14  ;;  %v695_v38 = vmax.f32 %v663_v63, 0.0 }
 0x119   : > { %v711_v8 = vmax.f32 %v679_v17, 0.0 }
 0x11a   : > { %v693_v9 = vmax.f32 %v661_v33, 0.0  ;;  %v709_v21 = vmax.f32 %v677_v34, 0.0  ;;  %v1144_v40 = vpack.c.bf16 %v695_v38, %v694_v35 }
 0x11b   : > { %v1184_v49 = vpack.c.bf16 %v711_v8, %v710_v37 }
 0x11c   : > { %v1139_v50 = vpack.c.bf16 %v693_v9, %v692_v18  ;;  %v1179_v36 = vpack.c.bf16 %v709_v21, %v708_v39  ;;  %1207 = vst [vmem:[%s1492_s20 + $0x38] sm:$0xff] %v1144_v40  }
 0x11d   : > { %1215 = vst [vmem:[%s1492_s20 + $0x78] sm:$0xff] %v1184_v49  }
 0x11e   : > { %1206 = vst [vmem:[%s1492_s20 + $0x30] sm:$0xff] %v1139_v50   ;;  %1214 = vst [vmem:[%s1492_s20 + $0x70] sm:$0xff] %v1179_v36  }
 0x11f PF: > { %s14_s15 = sadd.s32 1, %s1342_s15  }
 0x120   : > { %p11_p4 = scmp.ge.s32.totalorder %s14_s15, 4  }
 0x122   :  { %13 = sbr.rel (!%p11_p4) target bundleno = 1 (0x1), region = 69 }

// kernel: resnet_forward.23
= control target key start
LH: loop header
LB: loop body
LE: loop exit
PB: predicated region body
PF: predicated region fallthrough
CT: control target
= control target key end

     0   :  { %s672_s12 = smov 0   ;;  %s760_s0 = inlined_call_operand.vmem [shape: bf16[128,128], index: 0, kind: input, shape index: {}]   ;;  %s761_s1 = inlined_call_operand.vmem [shape: bf16[128,256], index: 1, kind: input, shape index: {}]   ;;  %s762_s2 = inlined_call_operand.vmem [shape: f32[1,256], index: 2, kind: input, shape index: {}]   ;;  %s763_s3 = inlined_call_operand.vmem [shape: bf16[128,256], index: 3, kind: output, shape index: {}]  }
   0x1 LB: > { %s541_s13 = sadd.s32 4294967295, %s649_s12   ;;  %p545_p0 = scmp.ge.s32.totalorder %s649_s12, 1  ;;  %s649_s12 = sphi %s672_s12, %s13_s12  }
   0x2   : > { %p138_p1 = scmp.lt.s32.totalorder %s649_s12, 3 }
   0x4   : > { %p139_p2 = pnand %p545_p0, %p138_p1 }
   0x5   : > { %v615_v0 = vld [vmem:[%s761_s1 + $0x4] ss:$8 sps:$4 sm:$0xff] (!%p139_p2)   ;;  %s546_s16 = sshll.u32 (!%p139_p2), %s541_s13, 3  ;;  %v617_v1 = vld [vmem:[%s761_s1] ss:$8 sps:$4 sm:$0xff] (!%p139_p2)   ;;  %v651_v2 = vmov (!%p139_p2), 0   ;;  %v203_v21 = vlaneseq (!%p139_p2) }
   0x6   : > { %142 = sbr.rel (%p139_p2) target bundleno = 268 (0x10c), region = 32  ;;  %349 = vmatprep.mubr.bf16.mxu0 (!%p139_p2), %v651_v2  ;;  %369 = vmatprep.mubr.bf16.mxu1 (!%p139_p2), %v651_v2  ;;  %p164_p3 = scmp.lt.s32.totalorder (!%p139_p2), %s546_s16, 15  ;;  %v618_v3 = vld [vmem:[%s761_s1 + $0x14] ss:$8 sps:$4 sm:$0xff] (!%p139_p2)   ;;  %v620_v4 = vld [vmem:[%s761_s1 + $0x10] ss:$8 sps:$4 sm:$0xff] (!%p139_p2)  }
   0x7   : > { %317 = vmatprep.subr.bf16.mxu0 (!%p139_p2), %v615_v0  ;;  %590 = vmatprep.subr.bf16.mxu1 (!%p139_p2), %v615_v0  ;;  %v621_v5 = vld [vmem:[%s761_s1 + $0x24] ss:$8 sps:$4 sm:$0xff] (!%p139_p2)   ;;  %v623_v6 = vld [vmem:[%s761_s1 + $0x20] ss:$8 sps:$4 sm:$0xff] (!%p139_p2)   ;;  %v624_v7 = vld [vmem:[%s761_s1 + $0x34] ss:$8 sps:$4 sm:$0xff] (!%p139_p2)  }
   0x8   : > { %318 = vmatpush1.bf16.msra.mxu0 (!%p139_p2), %v617_v1  ;;  %598 = vmatpush1.bf16.msra.mxu1 (!%p139_p2), %v617_v1  ;;  %v626_v8 = vld [vmem:[%s761_s1 + $0x30] ss:$8 sps:$4 sm:$0xff] (!%p139_p2)   ;;  %v627_v9 = vld [vmem:[%s761_s1 + $0x44] ss:$8 sps:$4 sm:$0xff] (!%p139_p2)   ;;  %v629_v10 = vld [vmem:[%s761_s1 + $0x40] ss:$8 sps:$4 sm:$0xff] (!%p139_p2)  }
   0x9   : > { %319 = vmatprep.subr.bf16.mxu0 (!%p139_p2), %v618_v3  ;;  %591 = vmatprep.subr.bf16.mxu1 (!%p139_p2), %v618_v3  ;;  %v630_v11 = vld [vmem:[%s761_s1 + $0x54] ss:$8 sps:$4 sm:$0xff] (!%p139_p2)   ;;  %v632_v12 = vld [vmem:[%s761_s1 + $0x50] ss:$8 sps:$4 sm:$0xff] (!%p139_p2)   ;;  %v633_v13 = vld [vmem:[%s761_s1 + $0x64] ss:$8 sps:$4 sm:$0xff] (!%p139_p2)  }
   0xa   : > { %v635_v14 = vld [vmem:[%s761_s1 + $0x60] ss:$8 sps:$4 sm:$0xff] (!%p139_p2)   ;;  %v636_v15 = vld [vmem:[%s761_s1 + $0x74] ss:$8 sps:$4 sm:$0xff] (!%p139_p2)   ;;  %v638_v16 = vld [vmem:[%s761_s1 + $0x70] ss:$8 sps:$4 sm:$0xff] (!%p139_p2)  }
   0xb   : > { %v204_v22 = vshrl.u32 (!%p139_p2), %v203_v21, 7  ;;  %v201_v24 = vld [vmem:[%s762_s2] sm:$0x3] (!%p139_p2) }
   0xc   : > { %320 = vmatpush1.bf16.msra.mxu0 (!%p139_p2), %v620_v4  ;;  %599 = vmatpush1.bf16.msra.mxu1 (!%p139_p2), %v620_v4 }
   0xd   : > { %s765_s16 = smov (!%p164_p3, %s546_s16), 15  ;;  %321 = vmatprep.subr.bf16.mxu0 %v621_v5  ;;  %592 = vmatprep.subr.bf16.mxu1 %v621_v5  ;;  %v205_v23 = vsub.s32 0, %v204_v22  ;;  %v209_v25 = vsub.s32 1, %v204_v22 }
   0xe   : > { %s547_s25 = sshll.u32 %s765_s16, 2  ;;  %s581_s28 = sshll.u32 %s765_s16, 3 }
   0xf   : > { %s707_s5 = scalar_lea.vmem %s760_s0, %s547_s25  ;;  %v206_v26 = vrot.slane %v201_v24, %v205_v23  ;;  %v210_v27 = vrot.slane %v201_v24, %v209_v25  ;;  %s747_s4 = scalar_lea.vmem %s763_s3, %s581_s28 }
  0x10   : > { %322 = vmatpush1.bf16.msra.mxu0 %v623_v6  ;;  %600 = vmatpush1.bf16.msra.mxu1 %v623_v6  ;;  %v639_v17 = vld [vmem:[%s707_s5] sm:$0xff]   ;;  %v640_v18 = vld [vmem:[%s707_s5 + $0x10] sm:$0xff]   ;;  %v641_v19 = vld [vmem:[%s707_s5 + $0x8] sm:$0xff]  }
  0x11   : > { %323 = vmatprep.subr.bf16.mxu0 %v624_v7  ;;  %593 = vmatprep.subr.bf16.mxu1 %v624_v7  ;;  %v642_v20 = vld [vmem:[%s707_s5 + $0x18] sm:$0xff]  }
  0x14   : > { %324 = vmatpush1.bf16.msra.mxu0 %v626_v8  ;;  %601 = vmatpush1.bf16.msra.mxu1 %v626_v8 }
  0x15   : > { %325 = vmatprep.subr.bf16.mxu0 %v627_v9  ;;  %594 = vmatprep.subr.bf16.mxu1 %v627_v9 }
  0x18   : > { %326 = vmatpush1.bf16.msra.mxu0 %v629_v10  ;;  %602 = vmatpush1.bf16.msra.mxu1 %v629_v10 }
  0x19   : > { %327 = vmatprep.subr.bf16.mxu0 %v630_v11  ;;  %595 = vmatprep.subr.bf16.mxu1 %v630_v11 }
  0x1c   : > { %328 = vmatpush1.bf16.msra.mxu0 %v632_v12  ;;  %603 = vmatpush1.bf16.msra.mxu1 %v632_v12 }
  0x1d   : > { %329 = vmatprep.subr.bf16.mxu0 %v633_v13  ;;  %596 = vmatprep.subr.bf16.mxu1 %v633_v13 }
  0x20   : > { %330 = vmatpush1.bf16.msra.mxu0 %v635_v14  ;;  %604 = vmatpush1.bf16.msra.mxu1 %v635_v14 }
  0x21   : > { %331 = vmatprep.subr.bf16.mxu0 %v636_v15  ;;  %597 = vmatprep.subr.bf16.mxu1 %v636_v15 }
  0x24   : > { %332 = vmatpush1.bf16.msra.mxu0 %v638_v16  ;;  %605 = vmatpush1.bf16.msra.mxu1 %v638_v16 }
  0x27   : > { %350 = vmatmul.mubr.bf16.vlgmr.msra.gmra.mrb[0].mxu0 %v639_v17  ;;  %370 = vmatmul.mubr.bf16.vlgmr.msra.gmra.mrb[0].mxu1 %v640_v18 }
  0x28   : > { %359 = vmatprep.mubr.bf16.mxu0 %v651_v2  ;;  %379 = vmatprep.mubr.bf16.mxu1 %v651_v2 }
  0x2f   : > { %360 = vmatmul.mubr.bf16.gmra.mrb[4].mxu0 %v641_v19  ;;  %380 = vmatmul.mubr.bf16.gmra.mrb[4].mxu1 %v642_v20 }
  0xfa   : > { %v351_v28 = vpop.f32.mrb[0].mxu0  ;;  %v371_v29 = vpop.f32.mrb[0].mxu1 }
  0xfb   : > { %v352_v30 = vadd.f32 %v351_v28, %v206_v26  ;;  %v372_v31 = vadd.f32 %v371_v29, %v206_v26  ;;  %v353_v32 = vpop.f32.mrb[1].mxu0  ;;  %v373_v33 = vpop.f32.mrb[1].mxu1 }
  0xfc   : > { %v354_v34 = vadd.f32 %v353_v32, %v210_v27  ;;  %v374_v35 = vadd.f32 %v373_v33, %v210_v27  ;;  %v355_v36 = vpop.f32.mrb[2].mxu0  ;;  %v375_v37 = vpop.f32.mrb[2].mxu1 }
  0xfd   : > { %v395_v38 = vmax.f32 %v352_v30, 0.0  ;;  %v403_v39 = vmax.f32 %v372_v31, 0.0  ;;  %v356_v40 = vadd.f32 %v355_v36, %v206_v26  ;;  %v376_v41 = vadd.f32 %v375_v37, %v206_v26  ;;  %v357_v42 = vpop.f32.mrb[3].mxu0  ;;  %v377_v43 = vpop.f32.mrb[3].mxu1 }
  0xfe   : > { %v358_v44 = vadd.f32 %v357_v42, %v210_v27  ;;  %v378_v45 = vadd.f32 %v377_v43, %v210_v27 }
  0xff   : > { %v582_v46 = vpack.c.bf16 %v354_v34, %v395_v38  ;;  %v586_v47 = vpack.c.bf16 %v374_v35, %v403_v39  ;;  %v397_v48 = vmax.f32 %v356_v40, 0.0  ;;  %v405_v49 = vmax.f32 %v376_v41, 0.0 }
 0x101   : > { %475 = vst [vmem:[%s747_s4] sm:$0xff] %v582_v46  ;;  %479 = vst [vmem:[%s747_s4 + $0x20] sm:$0xff] %v586_v47  ;;  %v583_v50 = vpack.c.bf16 %v358_v44, %v397_v48  ;;  %v587_v51 = vpack.c.bf16 %v378_v45, %v405_v49 }
 0x102   : > { %v361_v52 = vpop.f32.mrb[4].mxu0  ;;  %v381_v53 = vpop.f32.mrb[4].mxu1 }
 0x103   : > { %476 = vst [vmem:[%s747_s4 + $0x8] sm:$0xff] %v583_v50  ;;  %480 = vst [vmem:[%s747_s4 + $0x28] sm:$0xff] %v587_v51  ;;  %v362_v54 = vadd.f32 %v361_v52, %v206_v26  ;;  %v382_v55 = vadd.f32 %v381_v53, %v206_v26  ;;  %v363_v56 = vpop.f32.mrb[5].mxu0  ;;  %v383_v57 = vpop.f32.mrb[5].mxu1 }
 0x104   : > { %v364_v58 = vadd.f32 %v363_v56, %v210_v27  ;;  %v384_v59 = vadd.f32 %v383_v57, %v210_v27  ;;  %v365_v60 = vpop.f32.mrb[6].mxu0  ;;  %v385_v61 = vpop.f32.mrb[6].mxu1 }
 0x105   : > { %v399_v62 = vmax.f32 %v362_v54, 0.0  ;;  %v407_v63 = vmax.f32 %v382_v55, 0.0  ;;  %v366_v0 = vadd.f32 %v365_v60, %v206_v26  ;;  %v386_v1 = vadd.f32 %v385_v61, %v206_v26  ;;  %v367_v2 = vpop.f32.mrb[7].mxu0  ;;  %v387_v3 = vpop.f32.mrb[7].mxu1 }
 0x106   : > { %v368_v4 = vadd.f32 %v367_v2, %v210_v27  ;;  %v388_v5 = vadd.f32 %v387_v3, %v210_v27 }
 0x107   : > { %v584_v6 = vpack.c.bf16 %v364_v58, %v399_v62  ;;  %v588_v7 = vpack.c.bf16 %v384_v59, %v407_v63  ;;  %v401_v8 = vmax.f32 %v366_v0, 0.0  ;;  %v409_v9 = vmax.f32 %v386_v1, 0.0 }
 0x109   : > { %477 = vst [vmem:[%s747_s4 + $0x10] sm:$0xff] %v584_v6  ;;  %481 = vst [vmem:[%s747_s4 + $0x30] sm:$0xff] %v588_v7  ;;  %v585_v10 = vpack.c.bf16 %v368_v4, %v401_v8  ;;  %v589_v11 = vpack.c.bf16 %v388_v5, %v409_v9 }
 0x10b   : > { %478 = vst [vmem:[%s747_s4 + $0x18] sm:$0xff] %v585_v10  ;;  %482 = vst [vmem:[%s747_s4 + $0x38] sm:$0xff] %v589_v11 }
 0x10c PF: > { %s13_s12 = sadd.s32 1, %s649_s12  }
 0x10d   : > { %p10_p4 = scmp.ge.s32.totalorder %s13_s12, 4  }
 0x10f   :  { %12 = sbr.rel (!%p10_p4) target bundleno = 1 (0x1), region = 62 }

// kernel: resnet_forward.25
= control target key start
LH: loop header
LB: loop body
LE: loop exit
PB: predicated region body
PF: predicated region fallthrough
CT: control target
= control target key end

     0   :  { %s727_s12 = smov 0   ;;  %s809_s0 = inlined_call_operand.vmem [shape: bf16[128,256], index: 0, kind: input, shape index: {}]   ;;  %s810_s1 = inlined_call_operand.vmem [shape: bf16[256,128], index: 1, kind: input, shape index: {}]   ;;  %s811_s2 = inlined_call_operand.vmem [shape: f32[1,128], index: 2, kind: input, shape index: {}]   ;;  %s812_s3 = inlined_call_operand.vmem [shape: bf16[128,128], index: 3, kind: output, shape index: {}]  }
   0x1 LB: > { %s530_s13 = sadd.s32 4294967295, %s705_s12   ;;  %p534_p0 = scmp.ge.s32.totalorder %s705_s12, 1  ;;  %s705_s12 = sphi %s727_s12, %s13_s12  }
   0x2   : > { %p139_p1 = scmp.lt.s32.totalorder %s705_s12, 3 }
   0x4   : > { %p140_p2 = pnand %p534_p0, %p139_p1 }
   0x5   : > { %v671_v0 = vld [vmem:[%s810_s1 + $0x40] sm:$0xff] (!%p140_p2)   ;;  %s535_s16 = sshll.u32 (!%p140_p2), %s530_s13, 3  ;;  %v673_v2 = vld [vmem:[%s810_s1 + $0x48] sm:$0xff] (!%p140_p2)   ;;  %v675_v4 = vld [vmem:[%s810_s1 + $0x50] sm:$0xff] (!%p140_p2)  }
   0x6   : > { %143 = sbr.rel (%p140_p2) target bundleno = 271 (0x10f), region = 32  ;;  %v672_v1 = vld [vmem:[%s810_s1] sm:$0xff] (!%p140_p2)   ;;  %607 = vmatprep.subr.bf16.mxu0 (!%p140_p2), %v671_v0  ;;  %647 = vmatprep.subr.bf16.mxu1 (!%p140_p2), %v671_v0  ;;  %v674_v3 = vld [vmem:[%s810_s1 + $0x8] sm:$0xff] (!%p140_p2)   ;;  %p165_p3 = scmp.lt.s32.totalorder (!%p140_p2), %s535_s16, 15  ;;  %v676_v5 = vld [vmem:[%s810_s1 + $0x10] sm:$0xff] (!%p140_p2)  }
   0x7   : > { %608 = vmatpush3.bf16.msra.mxu0 (!%p140_p2), %v672_v1  ;;  %655 = vmatpush3.bf16.msra.mxu1 (!%p140_p2), %v672_v1  ;;  %v677_v6 = vld [vmem:[%s810_s1 + $0x58] sm:$0xff] (!%p140_p2)   ;;  %v679_v8 = vld [vmem:[%s810_s1 + $0x60] sm:$0xff] (!%p140_p2)   ;;  %v681_v10 = vld [vmem:[%s810_s1 + $0x68] sm:$0xff] (!%p140_p2)  }
   0x8   : > { %609 = vmatprep.subr.bf16.mxu0 (!%p140_p2), %v673_v2  ;;  %648 = vmatprep.subr.bf16.mxu1 (!%p140_p2), %v673_v2  ;;  %v678_v7 = vld [vmem:[%s810_s1 + $0x18] sm:$0xff] (!%p140_p2)   ;;  %v680_v9 = vld [vmem:[%s810_s1 + $0x20] sm:$0xff] (!%p140_p2)   ;;  %v682_v13 = vld [vmem:[%s810_s1 + $0x28] sm:$0xff] (!%p140_p2)  }
   0x9   : > { %v683_v14 = vld [vmem:[%s810_s1 + $0x70] sm:$0xff] (!%p140_p2)   ;;  %v685_v16 = vld [vmem:[%s810_s1 + $0x78] sm:$0xff] (!%p140_p2)   ;;  %v540_v26 = vld [vmem:[%s811_s2] ss:$0 sm:$0xff] (!%p140_p2) }
   0xa   : > { %v684_v15 = vld [vmem:[%s810_s1 + $0x30] sm:$0xff] (!%p140_p2)   ;;  %v686_v17 = vld [vmem:[%s810_s1 + $0x38] sm:$0xff] (!%p140_p2)  }
   0xb   : > { %610 = vmatpush3.bf16.msra.mxu0 (!%p140_p2), %v674_v3  ;;  %656 = vmatpush3.bf16.msra.mxu1 (!%p140_p2), %v674_v3 }
   0xc   : > { %611 = vmatprep.subr.bf16.mxu0 (!%p140_p2), %v675_v4  ;;  %649 = vmatprep.subr.bf16.mxu1 (!%p140_p2), %v675_v4 }
   0xd   : > { %s814_s16 = smov (!%p165_p3, %s535_s16), 15 }
   0xe   : > { %s575_s4 = sshll.u32 %s814_s16, 3  ;;  %s539_s28 = sshll.u32 %s814_s16, 2 }
   0xf   : > { %612 = vmatpush3.bf16.msra.mxu0 %v676_v5  ;;  %657 = vmatpush3.bf16.msra.mxu1 %v676_v5  ;;  %s768_s9 = scalar_lea.vmem %s809_s0, %s575_s4  ;;  %s175_s4 = scalar_lea.vmem %s812_s3, %s539_s28 }
  0x10   : > { %613 = vmatprep.subr.bf16.mxu0 %v677_v6  ;;  %650 = vmatprep.subr.bf16.mxu1 %v677_v6  ;;  %v689_v11 = vld [vmem:[%s768_s9 + $0x4] ss:$8 sps:$4 sm:$0xff]   ;;  %v687_v18 = vld [vmem:[%s768_s9] ss:$8 sps:$4 sm:$0xff]   ;;  %v693_v20 = vld [vmem:[%s768_s9 + $0x14] ss:$8 sps:$4 sm:$0xff]  }
  0x11   : > { %v692_v12 = vld [vmem:[%s768_s9 + $0x24] ss:$8 sps:$4 sm:$0xff]   ;;  %393 = vmatprep.mubr.bf16.mxu0 %v689_v11  ;;  %v690_v19 = vld [vmem:[%s768_s9 + $0x20] ss:$8 sps:$4 sm:$0xff]   ;;  %v695_v21 = vld [vmem:[%s768_s9 + $0x34] ss:$8 sps:$4 sm:$0xff]  }
  0x12   : > { %409 = vmatprep.mubr.bf16.mxu1 %v692_v12  ;;  %v697_v22 = vld [vmem:[%s768_s9 + $0x10] ss:$8 sps:$4 sm:$0xff]  }
  0x13   : > { %614 = vmatpush3.bf16.msra.mxu0 %v678_v7  ;;  %658 = vmatpush3.bf16.msra.mxu1 %v678_v7  ;;  %v698_v23 = vld [vmem:[%s768_s9 + $0x30] ss:$8 sps:$4 sm:$0xff]  }
  0x14   : > { %615 = vmatprep.subr.bf16.mxu0 %v679_v8  ;;  %651 = vmatprep.subr.bf16.mxu1 %v679_v8 }
  0x17   : > { %616 = vmatpush3.bf16.msra.mxu0 %v680_v9  ;;  %659 = vmatpush3.bf16.msra.mxu1 %v680_v9 }
  0x18   : > { %617 = vmatprep.subr.bf16.mxu0 %v681_v10  ;;  %652 = vmatprep.subr.bf16.mxu1 %v681_v10 }
  0x1b   : > { %618 = vmatpush3.bf16.msra.mxu0 %v682_v13  ;;  %660 = vmatpush3.bf16.msra.mxu1 %v682_v13 }
  0x1c   : > { %619 = vmatprep.subr.bf16.mxu0 %v683_v14  ;;  %653 = vmatprep.subr.bf16.mxu1 %v683_v14 }
  0x1f   : > { %620 = vmatpush3.bf16.msra.mxu0 %v684_v15  ;;  %661 = vmatpush3.bf16.msra.mxu1 %v684_v15 }
  0x20   : > { %621 = vmatprep.subr.bf16.mxu0 %v685_v16  ;;  %654 = vmatprep.subr.bf16.mxu1 %v685_v16 }
  0x23   : > { %622 = vmatpush3.bf16.msra.mxu0 %v686_v17  ;;  %662 = vmatpush3.bf16.msra.mxu1 %v686_v17 }
  0x26   : > { %394 = vmatmul.mubr.bf16.vlgmr.msra.gmra.mrb[0].mxu0 %v687_v18  ;;  %410 = vmatmul.mubr.bf16.vlgmr.msra.gmra.mrb[0].mxu1 %v690_v19 }
  0x27   : > { %401 = vmatprep.mubr.bf16.mxu0 %v693_v20  ;;  %417 = vmatprep.mubr.bf16.mxu1 %v695_v21 }
  0x2e   : > { %402 = vmatmul.mubr.bf16.gmra.mrb[4].mxu0 %v697_v22  ;;  %418 = vmatmul.mubr.bf16.gmra.mrb[4].mxu1 %v698_v23 }
  0xf9   : > { %v623_v24 = vpop.f32.mrb[0].mxu0  ;;  %v635_v25 = vpop.f32.mrb[0].mxu1 }
  0xfa   : > { %v624_v27 = vpop.f32.mrb[1].mxu0  ;;  %v636_v28 = vpop.f32.mrb[1].mxu1 }
  0xfb   : > { %v625_v29 = vadd.f32 %v624_v27, %v623_v24  ;;  %v637_v30 = vadd.f32 %v636_v28, %v635_v25  ;;  %v626_v31 = vpop.f32.mrb[2].mxu0  ;;  %v638_v32 = vpop.f32.mrb[2].mxu1 }
  0xfc   : > { %v627_v33 = vpop.f32.mrb[3].mxu0  ;;  %v639_v34 = vpop.f32.mrb[3].mxu1 }
  0xfd   : > { %v396_v35 = vadd.f32 %v625_v29, %v540_v26  ;;  %v412_v36 = vadd.f32 %v637_v30, %v540_v26  ;;  %v628_v37 = vadd.f32 %v627_v33, %v626_v31  ;;  %v640_v38 = vadd.f32 %v639_v34, %v638_v32 }
  0xff   : > { %v399_v39 = vadd.f32 %v628_v37, %v540_v26  ;;  %v415_v40 = vadd.f32 %v640_v38, %v540_v26  ;;  %v426_v41 = vmax.f32 %v396_v35, 0.0  ;;  %v430_v42 = vmax.f32 %v412_v36, 0.0 }
 0x101   : > { %v427_v43 = vmax.f32 %v399_v39, 0.0  ;;  %v431_v44 = vmax.f32 %v415_v40, 0.0  ;;  %v629_v45 = vpop.f32.mrb[4].mxu0  ;;  %v641_v46 = vpop.f32.mrb[4].mxu1 }
 0x102   : > { %v630_v47 = vpop.f32.mrb[5].mxu0  ;;  %v642_v48 = vpop.f32.mrb[5].mxu1 }
 0x103   : > { %v587_v49 = vpack.c.bf16 %v427_v43, %v426_v41  ;;  %v597_v50 = vpack.c.bf16 %v431_v44, %v430_v42  ;;  %v631_v51 = vadd.f32 %v630_v47, %v629_v45  ;;  %v643_v52 = vadd.f32 %v642_v48, %v641_v46  ;;  %v632_v53 = vpop.f32.mrb[6].mxu0  ;;  %v644_v54 = vpop.f32.mrb[6].mxu1 }
 0x104   : > { %v633_v55 = vpop.f32.mrb[7].mxu0  ;;  %v645_v56 = vpop.f32.mrb[7].mxu1 }
 0x105   : > { %588 = vst [vmem:[%s175_s4] sm:$0xff] %v587_v49   ;;  %605 = vst [vmem:[%s175_s4 + $0x10] sm:$0xff] %v597_v50   ;;  %v404_v57 = vadd.f32 %v631_v51, %v540_v26  ;;  %v420_v58 = vadd.f32 %v643_v52, %v540_v26  ;;  %v634_v59 = vadd.f32 %v633_v55, %v632_v53 }
 0x106   : > { %v646_v60 = vadd.f32 %v645_v56, %v644_v54 }
 0x107   : > { %v407_v61 = vadd.f32 %v634_v59, %v540_v26  ;;  %v428_v63 = vmax.f32 %v404_v57, 0.0  ;;  %v432_v0 = vmax.f32 %v420_v58, 0.0 }
 0x108   : > { %v423_v62 = vadd.f32 %v646_v60, %v540_v26 }
 0x109   : > { %v429_v1 = vmax.f32 %v407_v61, 0.0 }
 0x10a   : > { %v433_v2 = vmax.f32 %v423_v62, 0.0 }
 0x10b   : > { %v592_v3 = vpack.c.bf16 %v429_v1, %v428_v63 }
 0x10c   : > { %v602_v4 = vpack.c.bf16 %v433_v2, %v432_v0 }
 0x10d   : > { %604 = vst [vmem:[%s175_s4 + $0x8] sm:$0xff] %v592_v3  }
 0x10e   : > { %606 = vst [vmem:[%s175_s4 + $0x18] sm:$0xff] %v602_v4  }
 0x10f PF: > { %s13_s12 = sadd.s32 1, %s705_s12  }
 0x110   : > { %p10_p4 = scmp.ge.s32.totalorder %s13_s12, 4  }
 0x112   :  { %12 = sbr.rel (!%p10_p4) target bundleno = 1 (0x1), region = 62 }

// kernel: resnet_forward.24
= control target key start
LH: loop header
LB: loop body
LE: loop exit
PB: predicated region body
PF: predicated region fallthrough
CT: control target
= control target key end

     0   :  { %s960_s15 = smov 0   ;;  %s962_s16 = smov 0   ;;  %s1086_s0 = inlined_call_operand.vmem [shape: bf16[128,256], index: 0, kind: input, shape index: {}]   ;;  %s1087_s1 = inlined_call_operand.vmem [shape: bf16[256,128], index: 1, kind: input, shape index: {}]   ;;  %s1088_s2 = inlined_call_operand.vmem [shape: f32[1,128], index: 2, kind: input, shape index: {}]   ;;  %s1089_s3 = inlined_call_operand.vmem [shape: bf16[128,256], index: 3, kind: input, shape index: {}]   ;;  %s1090_s4 = inlined_call_operand.vmem [shape: bf16[128,128], index: 4, kind: output, shape index: {}]  }
   0x1   :  { %s964_s17 = smov 0  }
   0x2 LB: > { %s694_s18 = sadd.s32 4294967295, %s933_s17   ;;  %s977_s19 = sadd.s32 1, %s933_s17   ;;  %s933_s17 = sphi %s964_s17, %s1093_s17   ;;  %s929_s16 = sphi %s962_s16, %s1092_s16   ;;  %s925_s15 = sphi %s960_s15, %s1091_s15  }
   0x3   : > { %s86_s20 = ssub.s32 %s933_s17, %s977_s19  ;;  %s89_s21 = sadd.s32 1, %s929_s16 }
   0x4   : > { %p87_p0 = scmp.eq.s32.totalorder %s86_s20, 0  ;;  %p96_p1 = scmp.ne.s32.totalorder %s929_s16, %s925_s15 }
   0x5   : > { %p97_p2 = scmp.eq.s32.totalorder %s933_s17, 0  ;;  %p697_p4 = scmp.ge.s32.totalorder %s933_s17, 2 }
   0x6   : > { %s986_s22 = scalar_select %p87_p0, %s929_s16, %s89_s21  }
   0x7   : > { %p98_p3 = por %p97_p2, %p96_p1  ;;  %154 = sbr.rel (%p697_p4) target bundleno = 23 (0x17), region = 24 }
   0xe   : > { %167 = sbr.rel (!%p98_p3) target bundleno = 23 (0x17), region = 32  ;;  %s169_s23 = sand.u32 (%p98_p3), 1, %s929_s16  }
   0xf   : > { %s751_s24 = sshll.u32 (%p98_p3), %s933_s17, 6  ;;  %s698_s25 = sshll.u32 (%p98_p3), %s169_s23, 5 }
  0x10   : > { %s646_s28 = scalar_lea.vmem (%p98_p3), %s1089_s3, %s751_s24  ;;  %s171_s29 = scalar_lea.vmem (%p98_p3), [#allocation2], %s698_s25 }
  0x11   : > { %v701_v0 = vld [vmem:[%s646_s28 + $0x4] sm:$0xf] (%p98_p3)  ;;  %v702_v1 = vld [vmem:[%s646_s28 + $0xc] sm:$0xf] (%p98_p3)  ;;  %v703_v2 = vld [vmem:[%s646_s28 + $0x14] sm:$0xf] (%p98_p3) }
  0x12   : > { %193 = vst [vmem:[%s171_s29] sm:$0xf] (%p98_p3), %v701_v0  ;;  %195 = vst [vmem:[%s171_s29 + $0x4] sm:$0xf] (%p98_p3), %v702_v1  ;;  %v704_v3 = vld [vmem:[%s646_s28 + $0x1c] sm:$0xf] (%p98_p3) }
  0x13   : > { %v705_v4 = vld [vmem:[%s646_s28 + $0x24] sm:$0xf] (%p98_p3)  ;;  %197 = vst [vmem:[%s171_s29 + $0x8] sm:$0xf] (%p98_p3), %v703_v2  ;;  %199 = vst [vmem:[%s171_s29 + $0xc] sm:$0xf] (%p98_p3), %v704_v3 }
  0x14   : > { %201 = vst [vmem:[%s171_s29 + $0x10] sm:$0xf] (%p98_p3), %v705_v4  ;;  %v706_v5 = vld [vmem:[%s646_s28 + $0x2c] sm:$0xf] (%p98_p3)  ;;  %v707_v6 = vld [vmem:[%s646_s28 + $0x34] sm:$0xf] (%p98_p3) }
  0x15   : > { %v708_v7 = vld [vmem:[%s646_s28 + $0x3c] sm:$0xf]  ;;  %203 = vst [vmem:[%s171_s29 + $0x14] sm:$0xf] %v706_v5  ;;  %205 = vst [vmem:[%s171_s29 + $0x18] sm:$0xf] %v707_v6 }
  0x16   : > { %207 = vst [vmem:[%s171_s29 + $0x1c] sm:$0xf] %v708_v7 }
  0x17 PF: > { %p709_p5 = scmp.ge.s32.totalorder %s933_s17, 1  ;;  %p245_p6 = scmp.lt.s32.totalorder %s933_s17, 3 }
  0x19   : > { %p246_p7 = pnand %p709_p5, %p245_p6 }
  0x1a   : > { %v883_v8 = vld [vmem:[%s1087_s1 + $0x40] sm:$0xff] (!%p246_p7)   ;;  %s711_s6 = sshll.u32 (!%p246_p7), %s694_s18, 3  ;;  %v885_v10 = vld [vmem:[%s1087_s1 + $0x48] sm:$0xff] (!%p246_p7)   ;;  %v887_v12 = vld [vmem:[%s1087_s1 + $0x50] sm:$0xff] (!%p246_p7)   ;;  %s252_s24 = sand.u32 (!%p246_p7), 1, %s925_s15  }
  0x1b   : > { %249 = sbr.rel (%p246_p7) target bundleno = 294 (0x126), region = 73  ;;  %v884_v9 = vld [vmem:[%s1087_s1] sm:$0xff] (!%p246_p7)   ;;  %803 = vmatprep.subr.bf16.mxu0 (!%p246_p7), %v883_v8  ;;  %843 = vmatprep.subr.bf16.mxu1 (!%p246_p7), %v883_v8  ;;  %v886_v11 = vld [vmem:[%s1087_s1 + $0x8] sm:$0xff] (!%p246_p7)   ;;  %p284_p8 = scmp.lt.s32.totalorder (!%p246_p7), %s711_s6, 15  ;;  %v888_v13 = vld [vmem:[%s1087_s1 + $0x10] sm:$0xff] (!%p246_p7)  }
  0x1c   : > { %804 = vmatpush3.bf16.msra.mxu0 (!%p246_p7), %v884_v9  ;;  %851 = vmatpush3.bf16.msra.mxu1 (!%p246_p7), %v884_v9  ;;  %v889_v14 = vld [vmem:[%s1087_s1 + $0x58] sm:$0xff] (!%p246_p7)   ;;  %v891_v16 = vld [vmem:[%s1087_s1 + $0x60] sm:$0xff] (!%p246_p7)   ;;  %v893_v18 = vld [vmem:[%s1087_s1 + $0x68] sm:$0xff] (!%p246_p7)  }
  0x1d   : > { %805 = vmatprep.subr.bf16.mxu0 (!%p246_p7), %v885_v10  ;;  %844 = vmatprep.subr.bf16.mxu1 (!%p246_p7), %v885_v10  ;;  %v890_v15 = vld [vmem:[%s1087_s1 + $0x18] sm:$0xff] (!%p246_p7)   ;;  %v892_v17 = vld [vmem:[%s1087_s1 + $0x20] sm:$0xff] (!%p246_p7)   ;;  %v894_v21 = vld [vmem:[%s1087_s1 + $0x28] sm:$0xff] (!%p246_p7)  }
  0x1e   : > { %v895_v22 = vld [vmem:[%s1087_s1 + $0x70] sm:$0xff] (!%p246_p7)   ;;  %v897_v24 = vld [vmem:[%s1087_s1 + $0x78] sm:$0xff] (!%p246_p7)   ;;  %v716_v36 = vld [vmem:[%s1088_s2] ss:$0 sm:$0xff] (!%p246_p7) }
  0x1f   : > { %v896_v23 = vld [vmem:[%s1087_s1 + $0x30] sm:$0xff] (!%p246_p7)   ;;  %v898_v25 = vld [vmem:[%s1087_s1 + $0x38] sm:$0xff] (!%p246_p7)  }
  0x20   : > { %806 = vmatpush3.bf16.msra.mxu0 (!%p246_p7), %v886_v11  ;;  %852 = vmatpush3.bf16.msra.mxu1 (!%p246_p7), %v886_v11 }
  0x21   : > { %807 = vmatprep.subr.bf16.mxu0 (!%p246_p7), %v887_v12  ;;  %845 = vmatprep.subr.bf16.mxu1 (!%p246_p7), %v887_v12 }
  0x22   : > { %s1095_s6 = smov (!%p284_p8, %s711_s6), 15 }
  0x23   : > { %s752_s25 = sshll.u32 %s1095_s6, 3  ;;  %s715_s15 = sshll.u32 %s1095_s6, 2 }
  0x24   : > { %808 = vmatpush3.bf16.msra.mxu0 %v888_v13  ;;  %853 = vmatpush3.bf16.msra.mxu1 %v888_v13  ;;  %s1031_s30 = scalar_lea.vmem %s1086_s0, %s752_s25  ;;  %s710_s25 = sshll.u32 %s252_s24, 5 }
  0x25   : > { %809 = vmatprep.subr.bf16.mxu0 %v889_v14  ;;  %846 = vmatprep.subr.bf16.mxu1 %v889_v14  ;;  %v901_v19 = vld [vmem:[%s1031_s30 + $0x4] ss:$8 sps:$4 sm:$0xff]   ;;  %v899_v26 = vld [vmem:[%s1031_s30] ss:$8 sps:$4 sm:$0xff]   ;;  %v905_v28 = vld [vmem:[%s1031_s30 + $0x14] ss:$8 sps:$4 sm:$0xff]   ;;  %s295_s6 = scalar_lea.vmem %s1090_s4, %s715_s15 }
  0x26   : > { %v904_v20 = vld [vmem:[%s1031_s30 + $0x24] ss:$8 sps:$4 sm:$0xff]   ;;  %513 = vmatprep.mubr.bf16.mxu0 %v901_v19  ;;  %v902_v27 = vld [vmem:[%s1031_s30 + $0x20] ss:$8 sps:$4 sm:$0xff]   ;;  %v907_v29 = vld [vmem:[%s1031_s30 + $0x34] ss:$8 sps:$4 sm:$0xff]  }
  0x27   : > { %529 = vmatprep.mubr.bf16.mxu1 %v904_v20  ;;  %v909_v30 = vld [vmem:[%s1031_s30 + $0x10] ss:$8 sps:$4 sm:$0xff]   ;;  %s1063_s26 = scalar_lea.vmem [#allocation2], %s710_s25 }
  0x28   : > { %810 = vmatpush3.bf16.msra.mxu0 %v890_v15  ;;  %854 = vmatpush3.bf16.msra.mxu1 %v890_v15  ;;  %v910_v31 = vld [vmem:[%s1031_s30 + $0x30] ss:$8 sps:$4 sm:$0xff]   ;;  %v762_v32 = vld [vmem:[%s1063_s26] sm:$0xff]   ;;  %v797_v61 = vld [vmem:[%s1063_s26 + $0x8] sm:$0xff]  }
  0x29   : > { %811 = vmatprep.subr.bf16.mxu0 %v891_v16  ;;  %847 = vmatprep.subr.bf16.mxu1 %v891_v16  ;;  %v798_v33 = vld [vmem:[%s1063_s26 + $0x10] sm:$0xff]   ;;  %v763_v40 = vunpack.c.l.bf16 %v762_v32  ;;  %v764_v46 = vunpack.c.h.bf16 %v762_v32  ;;  %v799_v62 = vld [vmem:[%s1063_s26 + $0x18] sm:$0xff]   ;;  %v767_v9 = vunpack.c.l.bf16 %v797_v61 }
  0x2a   : > { %v771_v42 = vunpack.c.l.bf16 %v798_v33  ;;  %v772_v48 = vunpack.c.h.bf16 %v798_v33  ;;  %v775_v10 = vunpack.c.l.bf16 %v799_v62  ;;  %v776_v20 = vunpack.c.h.bf16 %v799_v62 }
  0x2c   : > { %812 = vmatpush3.bf16.msra.mxu0 %v892_v17  ;;  %855 = vmatpush3.bf16.msra.mxu1 %v892_v17 }
  0x2d   : > { %813 = vmatprep.subr.bf16.mxu0 %v893_v18  ;;  %848 = vmatprep.subr.bf16.mxu1 %v893_v18  ;;  %v768_v18 = vunpack.c.h.bf16 %v797_v61 }
  0x30   : > { %814 = vmatpush3.bf16.msra.mxu0 %v894_v21  ;;  %856 = vmatpush3.bf16.msra.mxu1 %v894_v21 }
  0x31   : > { %815 = vmatprep.subr.bf16.mxu0 %v895_v22  ;;  %849 = vmatprep.subr.bf16.mxu1 %v895_v22 }
  0x34   : > { %816 = vmatpush3.bf16.msra.mxu0 %v896_v23  ;;  %857 = vmatpush3.bf16.msra.mxu1 %v896_v23 }
  0x35   : > { %817 = vmatprep.subr.bf16.mxu0 %v897_v24  ;;  %850 = vmatprep.subr.bf16.mxu1 %v897_v24 }
  0x38   : > { %818 = vmatpush3.bf16.msra.mxu0 %v898_v25  ;;  %858 = vmatpush3.bf16.msra.mxu1 %v898_v25 }
  0x3b   : > { %514 = vmatmul.mubr.bf16.vlgmr.msra.gmra.mrb[0].mxu0 %v899_v26  ;;  %530 = vmatmul.mubr.bf16.vlgmr.msra.gmra.mrb[0].mxu1 %v902_v27 }
  0x3c   : > { %521 = vmatprep.mubr.bf16.mxu0 %v905_v28  ;;  %537 = vmatprep.mubr.bf16.mxu1 %v907_v29 }
  0x43   : > { %522 = vmatmul.mubr.bf16.gmra.mrb[4].mxu0 %v909_v30  ;;  %538 = vmatmul.mubr.bf16.gmra.mrb[4].mxu1 %v910_v31 }
 0x10e   : > { %v819_v34 = vpop.f32.mrb[0].mxu0  ;;  %v831_v35 = vpop.f32.mrb[0].mxu1 }
 0x10f   : > { %v820_v37 = vpop.f32.mrb[1].mxu0  ;;  %v832_v38 = vpop.f32.mrb[1].mxu1 }
 0x110   : > { %v821_v39 = vadd.f32 %v820_v37, %v819_v34  ;;  %v833_v41 = vadd.f32 %v832_v38, %v831_v35  ;;  %v822_v43 = vpop.f32.mrb[2].mxu0  ;;  %v834_v44 = vpop.f32.mrb[2].mxu1 }
 0x111   : > { %v823_v45 = vpop.f32.mrb[3].mxu0  ;;  %v835_v47 = vpop.f32.mrb[3].mxu1 }
 0x112   : > { %v516_v49 = vadd.f32 %v821_v39, %v716_v36  ;;  %v532_v50 = vadd.f32 %v833_v41, %v716_v36  ;;  %v824_v51 = vadd.f32 %v823_v45, %v822_v43  ;;  %v836_v52 = vadd.f32 %v835_v47, %v834_v44 }
 0x114   : > { %v562_v53 = vadd.f32 %v763_v40, %v516_v49  ;;  %v566_v54 = vadd.f32 %v771_v42, %v532_v50  ;;  %v519_v55 = vadd.f32 %v824_v51, %v716_v36  ;;  %v535_v56 = vadd.f32 %v836_v52, %v716_v36 }
 0x116   : > { %v563_v57 = vadd.f32 %v764_v46, %v519_v55  ;;  %v567_v58 = vadd.f32 %v772_v48, %v535_v56  ;;  %v825_v59 = vpop.f32.mrb[4].mxu0  ;;  %v837_v60 = vpop.f32.mrb[4].mxu1  ;;  %v570_v63 = vmax.f32 %v562_v53, 0.0  ;;  %v574_v0 = vmax.f32 %v566_v54, 0.0 }
 0x117   : > { %v826_v1 = vpop.f32.mrb[5].mxu0  ;;  %v838_v2 = vpop.f32.mrb[5].mxu1 }
 0x118   : > { %v571_v3 = vmax.f32 %v563_v57, 0.0  ;;  %v575_v4 = vmax.f32 %v567_v58, 0.0  ;;  %v827_v5 = vadd.f32 %v826_v1, %v825_v59  ;;  %v839_v6 = vadd.f32 %v838_v2, %v837_v60  ;;  %v828_v7 = vpop.f32.mrb[6].mxu0  ;;  %v840_v8 = vpop.f32.mrb[6].mxu1 }
 0x119   : > { %v829_v11 = vpop.f32.mrb[7].mxu0  ;;  %v841_v12 = vpop.f32.mrb[7].mxu1 }
 0x11a   : > { %v780_v13 = vpack.c.bf16 %v571_v3, %v570_v63  ;;  %v790_v14 = vpack.c.bf16 %v575_v4, %v574_v0  ;;  %v524_v15 = vadd.f32 %v827_v5, %v716_v36  ;;  %v540_v16 = vadd.f32 %v839_v6, %v716_v36 }
 0x11b   : > { %v830_v17 = vadd.f32 %v829_v11, %v828_v7  ;;  %v842_v19 = vadd.f32 %v841_v12, %v840_v8 }
 0x11c   : > { %781 = vst [vmem:[%s295_s6] sm:$0xff] %v780_v13   ;;  %801 = vst [vmem:[%s295_s6 + $0x10] sm:$0xff] %v790_v14   ;;  %v564_v21 = vadd.f32 %v767_v9, %v524_v15  ;;  %v568_v22 = vadd.f32 %v775_v10, %v540_v16 }
 0x11d   : > { %v527_v23 = vadd.f32 %v830_v17, %v716_v36  ;;  %v543_v24 = vadd.f32 %v842_v19, %v716_v36 }
 0x11e   : > { %v572_v27 = vmax.f32 %v564_v21, 0.0  ;;  %v576_v28 = vmax.f32 %v568_v22, 0.0 }
 0x11f   : > { %v565_v25 = vadd.f32 %v768_v18, %v527_v23  ;;  %v569_v26 = vadd.f32 %v776_v20, %v543_v24 }
 0x121   : > { %v573_v29 = vmax.f32 %v565_v25, 0.0  ;;  %v577_v30 = vmax.f32 %v569_v26, 0.0 }
 0x123   : > { %v785_v31 = vpack.c.bf16 %v573_v29, %v572_v27  ;;  %v795_v32 = vpack.c.bf16 %v577_v30, %v576_v28 }
 0x125   : > { %800 = vst [vmem:[%s295_s6 + $0x8] sm:$0xff] %v785_v31   ;;  %802 = vst [vmem:[%s295_s6 + $0x18] sm:$0xff] %v795_v32  }
 0x126 PF: > { %p11_p9 = scmp.ge.s32.totalorder %s977_s19, 4   ;;  %s1091_s15 = smov %s929_s16 }
 0x127   : > { %s1092_s16 = smov %s986_s22  ;;  %s1093_s17 = smov %s977_s19 }
 0x128   :  { %13 = sbr.rel (!%p11_p9) target bundleno = 2 (0x2), region = 115 }

// kernel: resnet_forward.26
= control target key start
LH: loop header
LB: loop body
LE: loop exit
PB: predicated region body
PF: predicated region fallthrough
CT: control target
= control target key end

     0   :  { %s838_s15 = smov 0   ;;  %s933_s0 = inlined_call_operand.vmem [shape: bf16[128,256], index: 0, kind: input, shape index: {}]   ;;  %s934_s1 = inlined_call_operand.vmem [shape: bf16[256,128], index: 1, kind: input, shape index: {}]   ;;  %s935_s2 = inlined_call_operand.vmem [shape: f32[1,128], index: 2, kind: input, shape index: {}]   ;;  %s936_s3 = inlined_call_operand.vmem [shape: bf16[128,128], index: 3, kind: input, shape index: {}]   ;;  %s937_s4 = inlined_call_operand.vmem [shape: bf16[128,128], index: 4, kind: output, shape index: {}]  }
   0x1 LB: > { %s615_s16 = sadd.s32 4294967295, %s811_s15   ;;  %p619_p0 = scmp.ge.s32.totalorder %s811_s15, 1  ;;  %s811_s15 = sphi %s838_s15, %s14_s15  }
   0x2   : > { %p175_p1 = scmp.lt.s32.totalorder %s811_s15, 3 }
   0x4   : > { %p176_p2 = pnand %p619_p0, %p175_p1 }
   0x5   : > { %v777_v0 = vld [vmem:[%s934_s1 + $0x40] sm:$0xff] (!%p176_p2)   ;;  %s620_s19 = sshll.u32 (!%p176_p2), %s615_s16, 3  ;;  %v779_v2 = vld [vmem:[%s934_s1 + $0x48] sm:$0xff] (!%p176_p2)   ;;  %v781_v4 = vld [vmem:[%s934_s1 + $0x50] sm:$0xff] (!%p176_p2)  }
   0x6   : > { %179 = sbr.rel (%p176_p2) target bundleno = 273 (0x111), region = 36  ;;  %v778_v1 = vld [vmem:[%s934_s1] sm:$0xff] (!%p176_p2)   ;;  %713 = vmatprep.subr.bf16.mxu0 (!%p176_p2), %v777_v0  ;;  %753 = vmatprep.subr.bf16.mxu1 (!%p176_p2), %v777_v0  ;;  %v780_v3 = vld [vmem:[%s934_s1 + $0x8] sm:$0xff] (!%p176_p2)   ;;  %p208_p3 = scmp.lt.s32.totalorder (!%p176_p2), %s620_s19, 15  ;;  %v782_v5 = vld [vmem:[%s934_s1 + $0x10] sm:$0xff] (!%p176_p2)  }
   0x7   : > { %714 = vmatpush3.bf16.msra.mxu0 (!%p176_p2), %v778_v1  ;;  %761 = vmatpush3.bf16.msra.mxu1 (!%p176_p2), %v778_v1  ;;  %v783_v6 = vld [vmem:[%s934_s1 + $0x58] sm:$0xff] (!%p176_p2)   ;;  %v785_v8 = vld [vmem:[%s934_s1 + $0x60] sm:$0xff] (!%p176_p2)   ;;  %v787_v10 = vld [vmem:[%s934_s1 + $0x68] sm:$0xff] (!%p176_p2)  }
   0x8   : > { %715 = vmatprep.subr.bf16.mxu0 (!%p176_p2), %v779_v2  ;;  %754 = vmatprep.subr.bf16.mxu1 (!%p176_p2), %v779_v2  ;;  %v784_v7 = vld [vmem:[%s934_s1 + $0x18] sm:$0xff] (!%p176_p2)   ;;  %v786_v9 = vld [vmem:[%s934_s1 + $0x20] sm:$0xff] (!%p176_p2)   ;;  %v788_v13 = vld [vmem:[%s934_s1 + $0x28] sm:$0xff] (!%p176_p2)  }
   0x9   : > { %v789_v14 = vld [vmem:[%s934_s1 + $0x70] sm:$0xff] (!%p176_p2)   ;;  %v791_v16 = vld [vmem:[%s934_s1 + $0x78] sm:$0xff] (!%p176_p2)   ;;  %v627_v28 = vld [vmem:[%s935_s2] ss:$0 sm:$0xff] (!%p176_p2) }
   0xa   : > { %v790_v15 = vld [vmem:[%s934_s1 + $0x30] sm:$0xff] (!%p176_p2)   ;;  %v792_v17 = vld [vmem:[%s934_s1 + $0x38] sm:$0xff] (!%p176_p2)  }
   0xb   : > { %716 = vmatpush3.bf16.msra.mxu0 (!%p176_p2), %v780_v3  ;;  %762 = vmatpush3.bf16.msra.mxu1 (!%p176_p2), %v780_v3 }
   0xc   : > { %717 = vmatprep.subr.bf16.mxu0 (!%p176_p2), %v781_v4  ;;  %755 = vmatprep.subr.bf16.mxu1 (!%p176_p2), %v781_v4 }
   0xd   : > { %s939_s19 = smov (!%p208_p3, %s620_s19), 15 }
   0xe   : > { %s662_s8 = sshll.u32 %s939_s19, 3  ;;  %s624_s30 = sshll.u32 %s939_s19, 2 }
   0xf   : > { %718 = vmatpush3.bf16.msra.mxu0 %v782_v5  ;;  %763 = vmatpush3.bf16.msra.mxu1 %v782_v5  ;;  %s879_s13 = scalar_lea.vmem %s933_s0, %s662_s8  ;;  %s916_s7 = scalar_lea.vmem %s936_s3, %s624_s30 }
  0x10   : > { %719 = vmatprep.subr.bf16.mxu0 %v783_v6  ;;  %756 = vmatprep.subr.bf16.mxu1 %v783_v6  ;;  %v795_v11 = vld [vmem:[%s879_s13 + $0x4] ss:$8 sps:$4 sm:$0xff]   ;;  %v793_v18 = vld [vmem:[%s879_s13] ss:$8 sps:$4 sm:$0xff]   ;;  %v799_v20 = vld [vmem:[%s879_s13 + $0x14] ss:$8 sps:$4 sm:$0xff]   ;;  %s224_s12 = scalar_lea.vmem %s937_s4, %s624_s30 }
  0x11   : > { %v798_v12 = vld [vmem:[%s879_s13 + $0x24] ss:$8 sps:$4 sm:$0xff]   ;;  %442 = vmatprep.mubr.bf16.mxu0 %v795_v11  ;;  %v796_v19 = vld [vmem:[%s879_s13 + $0x20] ss:$8 sps:$4 sm:$0xff]   ;;  %v801_v21 = vld [vmem:[%s879_s13 + $0x34] ss:$8 sps:$4 sm:$0xff]  }
  0x12   : > { %458 = vmatprep.mubr.bf16.mxu1 %v798_v12  ;;  %v803_v22 = vld [vmem:[%s879_s13 + $0x10] ss:$8 sps:$4 sm:$0xff]   ;;  %v672_v24 = vld [vmem:[%s916_s7] sm:$0xff]   ;;  %v707_v53 = vld [vmem:[%s916_s7 + $0x8] sm:$0xff]  }
  0x13   : > { %720 = vmatpush3.bf16.msra.mxu0 %v784_v7  ;;  %764 = vmatpush3.bf16.msra.mxu1 %v784_v7  ;;  %v804_v23 = vld [vmem:[%s879_s13 + $0x30] ss:$8 sps:$4 sm:$0xff]   ;;  %v673_v32 = vunpack.c.l.bf16 %v672_v24  ;;  %v674_v38 = vunpack.c.h.bf16 %v672_v24  ;;  %v677_v1 = vunpack.c.l.bf16 %v707_v53 }
  0x14   : > { %721 = vmatprep.subr.bf16.mxu0 %v785_v8  ;;  %757 = vmatprep.subr.bf16.mxu1 %v785_v8  ;;  %v708_v25 = vld [vmem:[%s916_s7 + $0x10] sm:$0xff]   ;;  %v709_v54 = vld [vmem:[%s916_s7 + $0x18] sm:$0xff]  }
  0x15   : > { %v681_v34 = vunpack.c.l.bf16 %v708_v25  ;;  %v682_v40 = vunpack.c.h.bf16 %v708_v25  ;;  %v685_v2 = vunpack.c.l.bf16 %v709_v54  ;;  %v686_v12 = vunpack.c.h.bf16 %v709_v54 }
  0x17   : > { %722 = vmatpush3.bf16.msra.mxu0 %v786_v9  ;;  %765 = vmatpush3.bf16.msra.mxu1 %v786_v9 }
  0x18   : > { %723 = vmatprep.subr.bf16.mxu0 %v787_v10  ;;  %758 = vmatprep.subr.bf16.mxu1 %v787_v10  ;;  %v678_v10 = vunpack.c.h.bf16 %v707_v53 }
  0x1b   : > { %724 = vmatpush3.bf16.msra.mxu0 %v788_v13  ;;  %766 = vmatpush3.bf16.msra.mxu1 %v788_v13 }
  0x1c   : > { %725 = vmatprep.subr.bf16.mxu0 %v789_v14  ;;  %759 = vmatprep.subr.bf16.mxu1 %v789_v14 }
  0x1f   : > { %726 = vmatpush3.bf16.msra.mxu0 %v790_v15  ;;  %767 = vmatpush3.bf16.msra.mxu1 %v790_v15 }
  0x20   : > { %727 = vmatprep.subr.bf16.mxu0 %v791_v16  ;;  %760 = vmatprep.subr.bf16.mxu1 %v791_v16 }
  0x23   : > { %728 = vmatpush3.bf16.msra.mxu0 %v792_v17  ;;  %768 = vmatpush3.bf16.msra.mxu1 %v792_v17 }
  0x26   : > { %443 = vmatmul.mubr.bf16.vlgmr.msra.gmra.mrb[0].mxu0 %v793_v18  ;;  %459 = vmatmul.mubr.bf16.vlgmr.msra.gmra.mrb[0].mxu1 %v796_v19 }
  0x27   : > { %450 = vmatprep.mubr.bf16.mxu0 %v799_v20  ;;  %466 = vmatprep.mubr.bf16.mxu1 %v801_v21 }
  0x2e   : > { %451 = vmatmul.mubr.bf16.gmra.mrb[4].mxu0 %v803_v22  ;;  %467 = vmatmul.mubr.bf16.gmra.mrb[4].mxu1 %v804_v23 }
  0xf9   : > { %v729_v26 = vpop.f32.mrb[0].mxu0  ;;  %v741_v27 = vpop.f32.mrb[0].mxu1 }
  0xfa   : > { %v730_v29 = vpop.f32.mrb[1].mxu0  ;;  %v742_v30 = vpop.f32.mrb[1].mxu1 }
  0xfb   : > { %v731_v31 = vadd.f32 %v730_v29, %v729_v26  ;;  %v743_v33 = vadd.f32 %v742_v30, %v741_v27  ;;  %v732_v35 = vpop.f32.mrb[2].mxu0  ;;  %v744_v36 = vpop.f32.mrb[2].mxu1 }
  0xfc   : > { %v733_v37 = vpop.f32.mrb[3].mxu0  ;;  %v745_v39 = vpop.f32.mrb[3].mxu1 }
  0xfd   : > { %v445_v41 = vadd.f32 %v731_v31, %v627_v28  ;;  %v461_v42 = vadd.f32 %v743_v33, %v627_v28  ;;  %v734_v43 = vadd.f32 %v733_v37, %v732_v35  ;;  %v746_v44 = vadd.f32 %v745_v39, %v744_v36 }
  0xff   : > { %v491_v45 = vadd.f32 %v673_v32, %v445_v41  ;;  %v495_v46 = vadd.f32 %v681_v34, %v461_v42  ;;  %v448_v47 = vadd.f32 %v734_v43, %v627_v28  ;;  %v464_v48 = vadd.f32 %v746_v44, %v627_v28 }
 0x101   : > { %v492_v49 = vadd.f32 %v674_v38, %v448_v47  ;;  %v496_v50 = vadd.f32 %v682_v40, %v464_v48  ;;  %v735_v51 = vpop.f32.mrb[4].mxu0  ;;  %v747_v52 = vpop.f32.mrb[4].mxu1  ;;  %v499_v55 = vmax.f32 %v491_v45, 0.0  ;;  %v503_v56 = vmax.f32 %v495_v46, 0.0 }
 0x102   : > { %v736_v57 = vpop.f32.mrb[5].mxu0  ;;  %v748_v58 = vpop.f32.mrb[5].mxu1 }
 0x103   : > { %v500_v59 = vmax.f32 %v492_v49, 0.0  ;;  %v504_v60 = vmax.f32 %v496_v50, 0.0  ;;  %v737_v61 = vadd.f32 %v736_v57, %v735_v51  ;;  %v749_v62 = vadd.f32 %v748_v58, %v747_v52  ;;  %v738_v63 = vpop.f32.mrb[6].mxu0  ;;  %v750_v0 = vpop.f32.mrb[6].mxu1 }
 0x104   : > { %v739_v3 = vpop.f32.mrb[7].mxu0  ;;  %v751_v4 = vpop.f32.mrb[7].mxu1 }
 0x105   : > { %v690_v5 = vpack.c.bf16 %v500_v59, %v499_v55  ;;  %v700_v6 = vpack.c.bf16 %v504_v60, %v503_v56  ;;  %v453_v7 = vadd.f32 %v737_v61, %v627_v28  ;;  %v469_v8 = vadd.f32 %v749_v62, %v627_v28 }
 0x106   : > { %v740_v9 = vadd.f32 %v739_v3, %v738_v63  ;;  %v752_v11 = vadd.f32 %v751_v4, %v750_v0 }
 0x107   : > { %691 = vst [vmem:[%s224_s12] sm:$0xff] %v690_v5   ;;  %711 = vst [vmem:[%s224_s12 + $0x10] sm:$0xff] %v700_v6   ;;  %v493_v13 = vadd.f32 %v677_v1, %v453_v7  ;;  %v497_v14 = vadd.f32 %v685_v2, %v469_v8 }
 0x108   : > { %v456_v15 = vadd.f32 %v740_v9, %v627_v28  ;;  %v472_v16 = vadd.f32 %v752_v11, %v627_v28 }
 0x109   : > { %v501_v19 = vmax.f32 %v493_v13, 0.0  ;;  %v505_v20 = vmax.f32 %v497_v14, 0.0 }
 0x10a   : > { %v494_v17 = vadd.f32 %v678_v10, %v456_v15  ;;  %v498_v18 = vadd.f32 %v686_v12, %v472_v16 }
 0x10c   : > { %v502_v21 = vmax.f32 %v494_v17, 0.0  ;;  %v506_v22 = vmax.f32 %v498_v18, 0.0 }
 0x10e   : > { %v695_v23 = vpack.c.bf16 %v502_v21, %v501_v19  ;;  %v705_v24 = vpack.c.bf16 %v506_v22, %v505_v20 }
 0x110   : > { %710 = vst [vmem:[%s224_s12 + $0x8] sm:$0xff] %v695_v23   ;;  %712 = vst [vmem:[%s224_s12 + $0x18] sm:$0xff] %v705_v24  }
 0x111 PF: > { %s14_s15 = sadd.s32 1, %s811_s15  }
 0x112   : > { %p11_p4 = scmp.ge.s32.totalorder %s14_s15, 4  }
 0x114   :  { %13 = sbr.rel (!%p11_p4) target bundleno = 1 (0x1), region = 69 }

// kernel: resnet_forward.28
= control target key start
LH: loop header
LB: loop body
LE: loop exit
PB: predicated region body
PF: predicated region fallthrough
CT: control target
= control target key end

     0   :  { %s885_s15 = smov 0   ;;  %s887_s16 = smov 0   ;;  %s1019_s0 = inlined_call_operand.vmem [shape: bf16[32,384], index: 0, kind: input, shape index: {}]   ;;  %s1020_s1 = inlined_call_operand.vmem [shape: bf16[384,128], index: 1, kind: input, shape index: {}]   ;;  %s1021_s2 = inlined_call_operand.vmem [shape: f32[1,128], index: 2, kind: input, shape index: {}]   ;;  %s1022_s3 = inlined_call_operand.vmem [shape: bf16[32,256], index: 3, kind: input, shape index: {}]   ;;  %s1023_s4 = inlined_call_operand.vmem [shape: bf16[32,128], index: 4, kind: output, shape index: {}]  }
   0x1   :  { %s889_s17 = smov 0  }
   0x2 LB: > { %s669_s18 = sadd.s32 4294967295, %s856_s17   ;;  %s902_s19 = sadd.s32 1, %s856_s17   ;;  %s856_s17 = sphi %s889_s17, %s1026_s17   ;;  %s852_s16 = sphi %s887_s16, %s1025_s16   ;;  %s848_s15 = sphi %s885_s15, %s1024_s15  }
   0x3   : > { %s86_s20 = ssub.s32 %s856_s17, %s902_s19  ;;  %s89_s21 = sadd.s32 1, %s852_s16 }
   0x4   : > { %p87_p0 = scmp.eq.s32.totalorder %s86_s20, 0  ;;  %p96_p1 = scmp.ne.s32.totalorder %s852_s16, %s848_s15 }
   0x5   : > { %p97_p2 = scmp.eq.s32.totalorder %s856_s17, 0  ;;  %p672_p4 = scmp.ge.s32.totalorder %s856_s17, 2 }
   0x6   : > { %s911_s22 = scalar_select %p87_p0, %s852_s16, %s89_s21  }
   0x7   : > { %p98_p3 = por %p97_p2, %p96_p1  ;;  %154 = sbr.rel (%p672_p4) target bundleno = 21 (0x15), region = 24 }
   0xe   : > { %167 = sbr.rel (!%p98_p3) target bundleno = 21 (0x15), region = 32  ;;  %s169_s23 = sand.u32 (%p98_p3), 1, %s852_s16  }
   0xf   : > { %s716_s24 = sshll.u32 (%p98_p3), %s856_s17, 4  ;;  %s673_s25 = sshll.u32 (%p98_p3), %s169_s23, 3 }
  0x10   : > { %s621_s28 = scalar_lea.vmem (%p98_p3), %s1022_s3, %s716_s24  ;;  %s171_s29 = scalar_lea.vmem (%p98_p3), [#allocation2], %s673_s25 }
  0x11   : > { %v676_v0 = vld [vmem:[%s621_s28 + $0x4] sm:$0xf] (%p98_p3)  ;;  %v677_v1 = vld [vmem:[%s621_s28 + $0xc] sm:$0xf] (%p98_p3) }
  0x12   : > { %193 = vst [vmem:[%s171_s29] sm:$0xf] (%p98_p3), %v676_v0  ;;  %195 = vst [vmem:[%s171_s29 + $0x4] sm:$0xf] (%p98_p3), %v677_v1 }
  0x15 PF: > { %p678_p5 = scmp.ge.s32.totalorder %s856_s17, 1  ;;  %p221_p6 = scmp.lt.s32.totalorder %s856_s17, 3 }
  0x17   : > { %p222_p7 = pnand %p678_p5, %p221_p6 }
  0x18   : > { %v806_v2 = vld [vmem:[%s1020_s1 + $0x40] sm:$0xff] (!%p222_p7)   ;;  %v858_v4 = vmov (!%p222_p7), 0.0   ;;  %v809_v6 = vld [vmem:[%s1020_s1 + $0x48] sm:$0xff] (!%p222_p7)   ;;  %vm859_vm0 = vmmov (!%p222_p7), 0   ;;  %v812_v9 = vld [vmem:[%s1020_s1 + $0x50] sm:$0xff] (!%p222_p7)   ;;  %s680_s24 = sshll.u32 (!%p222_p7), %s669_s18, 1 }
  0x19   : > { %225 = sbr.rel (%p222_p7) target bundleno = 285 (0x11d), region = 73  ;;  %v807_v3 = vld [vmem:[%s1020_s1] sm:$0xff] (!%p222_p7)   ;;  %759 = vmatprep.subr.bf16.mxu1 (!%p222_p7), %v858_v4  ;;  %728 = vmatprep.subr.bf16.mxu0 (!%p222_p7), %v806_v2  ;;  %v810_v7 = vld [vmem:[%s1020_s1 + $0x8] sm:$0xff] (!%p222_p7)   ;;  %v813_v10 = vld [vmem:[%s1020_s1 + $0x10] sm:$0xff] (!%p222_p7)   ;;  %p260_p8 = scmp.lt.s32.totalorder (!%p222_p7), %s680_s24, 3 }
  0x1a   : > { %v808_v5 = vld [vmem:[%s1020_s1 + $0x80] sm:$0xff] (!%p222_p7)   ;;  %729 = vmatpush3.bf16.msra.mxu0 (!%p222_p7), %v807_v3  ;;  %775 = vmatprep.mubr.msk.bf16.mxu1 (!%p222_p7), %vm859_vm0, %v858_v4  ;;  %v811_v8 = vld [vmem:[%s1020_s1 + $0x88] sm:$0xff] (!%p222_p7)   ;;  %v814_v11 = vld [vmem:[%s1020_s1 + $0x90] sm:$0xff] (!%p222_p7)   ;;  %s228_s14 = sand.u32 (!%p222_p7), 1, %s848_s15  }
  0x1b   : > { %760 = vmatpush3.bf16.msra.mxu1 (!%p222_p7), %v808_v5  ;;  %730 = vmatprep.subr.bf16.mxu0 (!%p222_p7), %v809_v6  ;;  %v815_v12 = vld [vmem:[%s1020_s1 + $0x58] sm:$0xff] (!%p222_p7)   ;;  %v818_v15 = vld [vmem:[%s1020_s1 + $0x60] sm:$0xff] (!%p222_p7)   ;;  %v821_v18 = vld [vmem:[%s1020_s1 + $0x68] sm:$0xff] (!%p222_p7)  }
  0x1c   : > { %761 = vmatprep.subr.bf16.mxu1 (!%p222_p7), %v858_v4  ;;  %v816_v13 = vld [vmem:[%s1020_s1 + $0x18] sm:$0xff] (!%p222_p7)   ;;  %v819_v16 = vld [vmem:[%s1020_s1 + $0x20] sm:$0xff] (!%p222_p7)   ;;  %v822_v19 = vld [vmem:[%s1020_s1 + $0x28] sm:$0xff] (!%p222_p7)  }
  0x1d   : > { %v817_v14 = vld [vmem:[%s1020_s1 + $0x98] sm:$0xff] (!%p222_p7)   ;;  %v820_v17 = vld [vmem:[%s1020_s1 + $0xa0] sm:$0xff] (!%p222_p7)   ;;  %v823_v20 = vld [vmem:[%s1020_s1 + $0xa8] sm:$0xff] (!%p222_p7)  }
  0x1e   : > { %731 = vmatpush3.bf16.msra.mxu0 (!%p222_p7), %v810_v7  ;;  %v824_v21 = vld [vmem:[%s1020_s1 + $0x70] sm:$0xff] (!%p222_p7)   ;;  %v827_v24 = vld [vmem:[%s1020_s1 + $0x78] sm:$0xff] (!%p222_p7)   ;;  %v684_v32 = vld [vmem:[%s1021_s2] ss:$0 sm:$0xff] (!%p222_p7) }
  0x1f   : > { %762 = vmatpush3.bf16.msra.mxu1 (!%p222_p7), %v811_v8  ;;  %732 = vmatprep.subr.bf16.mxu0 (!%p222_p7), %v812_v9  ;;  %v825_v22 = vld [vmem:[%s1020_s1 + $0x30] sm:$0xff] (!%p222_p7)   ;;  %v828_v26 = vld [vmem:[%s1020_s1 + $0x38] sm:$0xff] (!%p222_p7)  }
  0x20   : > { %763 = vmatprep.subr.bf16.mxu1 %v858_v4  ;;  %s1028_s24 = smov (!%p260_p8, %s680_s24), 3  ;;  %v826_v23 = vld [vmem:[%s1020_s1 + $0xb0] sm:$0xff]   ;;  %v832_v27 = vld [vmem:[%s1020_s1 + $0xb8] sm:$0xff]  }
  0x21   : > { %s779_s20 = smul.u32 12, %s1028_s24  ;;  %s683_s15 = sshll.u32 %s1028_s24, 2 }
  0x22   : > { %733 = vmatpush3.bf16.msra.mxu0 %v813_v10  ;;  %s271_s28 = scalar_lea.vmem %s1023_s4, %s683_s15 }
  0x23   : > { %764 = vmatpush3.bf16.msra.mxu1 %v814_v11  ;;  %734 = vmatprep.subr.bf16.mxu0 %v815_v12  ;;  %s264_s18 = scalar_lea.vmem %s1019_s0, %s779_s20  ;;  %s679_s20 = sshll.u32 %s228_s14, 3 }
  0x24   : > { %765 = vmatprep.subr.bf16.mxu1 %v858_v4  ;;  %v831_v25 = vld [vmem:[%s264_s18 + $0x4] ss:$12 sps:$4 sm:$0xff]   ;;  %v829_v28 = vld [vmem:[%s264_s18] ss:$12 sps:$4 sm:$0xff]   ;;  %v833_v29 = vld [vmem:[%s264_s18 + $0x8] ss:$12 sps:$4 sm:$0xff]  }
  0x25   : > { %525 = vmatprep.mubr.bf16.mxu0 %v831_v25  ;;  %s230_s25 = scalar_lea.vmem [#allocation2], %s679_s20 }
  0x26   : > { %735 = vmatpush3.bf16.msra.mxu0 %v816_v13  ;;  %v720_v34 = vld [vmem:[%s230_s25] sm:$0xff]  }
  0x27   : > { %766 = vmatpush3.bf16.msra.mxu1 %v817_v14  ;;  %736 = vmatprep.subr.bf16.mxu0 %v818_v15  ;;  %v721_v41 = vunpack.c.l.bf16 %v720_v34  ;;  %v722_v46 = vunpack.c.h.bf16 %v720_v34 }
  0x28   : > { %767 = vmatprep.subr.bf16.mxu1 %v858_v4 }
  0x2a   : > { %737 = vmatpush3.bf16.msra.mxu0 %v819_v16 }
  0x2b   : > { %768 = vmatpush3.bf16.msra.mxu1 %v820_v17  ;;  %738 = vmatprep.subr.bf16.mxu0 %v821_v18 }
  0x2c   : > { %769 = vmatprep.subr.bf16.mxu1 %v858_v4 }
  0x2e   : > { %739 = vmatpush3.bf16.msra.mxu0 %v822_v19 }
  0x2f   : > { %770 = vmatpush3.bf16.msra.mxu1 %v823_v20  ;;  %740 = vmatprep.subr.bf16.mxu0 %v824_v21 }
  0x30   : > { %771 = vmatprep.subr.bf16.mxu1 %v858_v4 }
  0x32   : > { %741 = vmatpush3.bf16.msra.mxu0 %v825_v22 }
  0x33   : > { %772 = vmatpush3.bf16.msra.mxu1 %v826_v23  ;;  %742 = vmatprep.subr.bf16.mxu0 %v827_v24 }
  0x34   : > { %773 = vmatprep.subr.bf16.mxu1 %v858_v4 }
  0x36   : > { %743 = vmatpush3.bf16.msra.mxu0 %v828_v26 }
  0x37   : > { %774 = vmatpush3.bf16.msra.mxu1 %v832_v27 }
  0x39   : > { %526 = vmatmul.mubr.bf16.vlgmr.msra.gmra.mrb[0].mxu0 %v829_v28 }
  0x3a   : > { %776 = vmatmul.mubr.bf16.vlgmr.msra.gmra.mrb[0].mxu1 %v833_v29 }
 0x10c   : > { %v744_v30 = vpop.f32.mrb[0].mxu0 }
 0x10d   : > { %v745_v31 = vpop.f32.mrb[1].mxu0  ;;  %v568_v33 = vpop.f32.mrb[0].mxu1 }
 0x10e   : > { %v746_v35 = vadd.f32 %v745_v31, %v744_v30  ;;  %v747_v36 = vpop.f32.mrb[2].mxu0  ;;  %v777_v37 = vpop.f32.mrb[1].mxu1 }
 0x10f   : > { %v748_v38 = vpop.f32.mrb[3].mxu0  ;;  %v571_v39 = vpop.f32.mrb[2].mxu1 }
 0x110   : > { %v528_v40 = vadd.f32 %v746_v35, %v684_v32  ;;  %v749_v42 = vadd.f32 %v748_v38, %v747_v36  ;;  %v778_v43 = vpop.f32.mrb[3].mxu1 }
 0x112   : > { %v569_v44 = vadd.f32 %v568_v33, %v528_v40  ;;  %v531_v45 = vadd.f32 %v749_v42, %v684_v32 }
 0x114   : > { %v579_v47 = vadd.f32 %v721_v41, %v569_v44  ;;  %v572_v48 = vadd.f32 %v571_v39, %v531_v45 }
 0x116   : > { %v580_v49 = vadd.f32 %v722_v46, %v572_v48  ;;  %v581_v50 = vmax.f32 %v579_v47, 0.0 }
 0x118   : > { %v582_v51 = vmax.f32 %v580_v49, 0.0 }
 0x11a   : > { %v726_v52 = vpack.c.bf16 %v582_v51, %v581_v50 }
 0x11c   : > { %727 = vst [vmem:[%s271_s28] sm:$0xff] %v726_v52  }
 0x11d PF: > { %p11_p9 = scmp.ge.s32.totalorder %s902_s19, 4   ;;  %s1024_s15 = smov %s852_s16 }
 0x11e   : > { %s1025_s16 = smov %s911_s22  ;;  %s1026_s17 = smov %s902_s19 }
 0x11f   :  { %13 = sbr.rel (!%p11_p9) target bundleno = 2 (0x2), region = 115 }

// kernel: resnet_forward.29
= control target key start
LH: loop header
LB: loop body
LE: loop exit
PB: predicated region body
PF: predicated region fallthrough
CT: control target
= control target key end

     0   :  { %s715_s12 = smov 0   ;;  %s811_s0 = inlined_call_operand.vmem [shape: bf16[32,384], index: 0, kind: input, shape index: {}]   ;;  %s812_s1 = inlined_call_operand.vmem [shape: bf16[384,128], index: 1, kind: input, shape index: {}]   ;;  %s813_s2 = inlined_call_operand.vmem [shape: f32[1,128], index: 2, kind: input, shape index: {}]   ;;  %s814_s3 = inlined_call_operand.vmem [shape: bf16[32,128], index: 3, kind: output, shape index: {}]  }
   0x1 LB: > { %s547_s13 = sadd.s32 4294967295, %s691_s12   ;;  %p551_p0 = scmp.ge.s32.totalorder %s691_s12, 1  ;;  %s691_s12 = sphi %s715_s12, %s13_s12  }
   0x2   : > { %p139_p1 = scmp.lt.s32.totalorder %s691_s12, 3 }
   0x4   : > { %p140_p2 = pnand %p551_p0, %p139_p1 }
   0x5   : > { %v657_v0 = vld [vmem:[%s812_s1 + $0x40] sm:$0xff] (!%p140_p2)   ;;  %v693_v2 = vmov (!%p140_p2), 0.0   ;;  %v660_v4 = vld [vmem:[%s812_s1 + $0x48] sm:$0xff] (!%p140_p2)   ;;  %vm694_vm0 = vmmov (!%p140_p2), 0   ;;  %v663_v7 = vld [vmem:[%s812_s1 + $0x50] sm:$0xff] (!%p140_p2)   ;;  %s552_s28 = sshll.u32 (!%p140_p2), %s547_s13, 1 }
   0x6   : > { %143 = sbr.rel (%p140_p2) target bundleno = 264 (0x108), region = 32  ;;  %v658_v1 = vld [vmem:[%s812_s1] sm:$0xff] (!%p140_p2)   ;;  %626 = vmatprep.subr.bf16.mxu1 (!%p140_p2), %v693_v2  ;;  %595 = vmatprep.subr.bf16.mxu0 (!%p140_p2), %v657_v0  ;;  %v661_v5 = vld [vmem:[%s812_s1 + $0x8] sm:$0xff] (!%p140_p2)   ;;  %v664_v8 = vld [vmem:[%s812_s1 + $0x10] sm:$0xff] (!%p140_p2)   ;;  %p165_p3 = scmp.lt.s32.totalorder (!%p140_p2), %s552_s28, 3 }
   0x7   : > { %v659_v3 = vld [vmem:[%s812_s1 + $0x80] sm:$0xff] (!%p140_p2)   ;;  %596 = vmatpush3.bf16.msra.mxu0 (!%p140_p2), %v658_v1  ;;  %642 = vmatprep.mubr.msk.bf16.mxu1 (!%p140_p2), %vm694_vm0, %v693_v2  ;;  %v662_v6 = vld [vmem:[%s812_s1 + $0x88] sm:$0xff] (!%p140_p2)   ;;  %v665_v9 = vld [vmem:[%s812_s1 + $0x90] sm:$0xff] (!%p140_p2)  }
   0x8   : > { %627 = vmatpush3.bf16.msra.mxu1 (!%p140_p2), %v659_v3  ;;  %597 = vmatprep.subr.bf16.mxu0 (!%p140_p2), %v660_v4  ;;  %v666_v10 = vld [vmem:[%s812_s1 + $0x58] sm:$0xff] (!%p140_p2)   ;;  %v669_v13 = vld [vmem:[%s812_s1 + $0x60] sm:$0xff] (!%p140_p2)   ;;  %v672_v16 = vld [vmem:[%s812_s1 + $0x68] sm:$0xff] (!%p140_p2)  }
   0x9   : > { %628 = vmatprep.subr.bf16.mxu1 (!%p140_p2), %v693_v2  ;;  %v667_v11 = vld [vmem:[%s812_s1 + $0x18] sm:$0xff] (!%p140_p2)   ;;  %v670_v14 = vld [vmem:[%s812_s1 + $0x20] sm:$0xff] (!%p140_p2)   ;;  %v673_v17 = vld [vmem:[%s812_s1 + $0x28] sm:$0xff] (!%p140_p2)  }
   0xa   : > { %v668_v12 = vld [vmem:[%s812_s1 + $0x98] sm:$0xff] (!%p140_p2)   ;;  %v671_v15 = vld [vmem:[%s812_s1 + $0xa0] sm:$0xff] (!%p140_p2)   ;;  %v674_v18 = vld [vmem:[%s812_s1 + $0xa8] sm:$0xff] (!%p140_p2)  }
   0xb   : > { %598 = vmatpush3.bf16.msra.mxu0 (!%p140_p2), %v661_v5  ;;  %v675_v19 = vld [vmem:[%s812_s1 + $0x70] sm:$0xff] (!%p140_p2)   ;;  %v678_v22 = vld [vmem:[%s812_s1 + $0x78] sm:$0xff] (!%p140_p2)   ;;  %v556_v30 = vld [vmem:[%s813_s2] ss:$0 sm:$0xff] (!%p140_p2) }
   0xc   : > { %629 = vmatpush3.bf16.msra.mxu1 (!%p140_p2), %v662_v6  ;;  %599 = vmatprep.subr.bf16.mxu0 (!%p140_p2), %v663_v7  ;;  %v676_v20 = vld [vmem:[%s812_s1 + $0x30] sm:$0xff] (!%p140_p2)   ;;  %v679_v24 = vld [vmem:[%s812_s1 + $0x38] sm:$0xff] (!%p140_p2)  }
   0xd   : > { %630 = vmatprep.subr.bf16.mxu1 %v693_v2  ;;  %s816_s28 = smov (!%p165_p3, %s552_s28), 3  ;;  %v677_v21 = vld [vmem:[%s812_s1 + $0xb0] sm:$0xff]   ;;  %v683_v25 = vld [vmem:[%s812_s1 + $0xb8] sm:$0xff]  }
   0xe   : > { %s646_s21 = smul.u32 12, %s816_s28  ;;  %s555_s18 = sshll.u32 %s816_s28, 2 }
   0xf   : > { %600 = vmatpush3.bf16.msra.mxu0 %v664_v8 }
  0x10   : > { %631 = vmatpush3.bf16.msra.mxu1 %v665_v9  ;;  %601 = vmatprep.subr.bf16.mxu0 %v666_v10  ;;  %s169_s6 = scalar_lea.vmem %s811_s0, %s646_s21  ;;  %s175_s21 = scalar_lea.vmem %s814_s3, %s555_s18 }
  0x11   : > { %632 = vmatprep.subr.bf16.mxu1 %v693_v2  ;;  %v682_v23 = vld [vmem:[%s169_s6 + $0x4] ss:$12 sps:$4 sm:$0xff]   ;;  %v680_v26 = vld [vmem:[%s169_s6] ss:$12 sps:$4 sm:$0xff]   ;;  %v684_v27 = vld [vmem:[%s169_s6 + $0x8] ss:$12 sps:$4 sm:$0xff]  }
  0x12   : > { %429 = vmatprep.mubr.bf16.mxu0 %v682_v23 }
  0x13   : > { %602 = vmatpush3.bf16.msra.mxu0 %v667_v11 }
  0x14   : > { %633 = vmatpush3.bf16.msra.mxu1 %v668_v12  ;;  %603 = vmatprep.subr.bf16.mxu0 %v669_v13 }
  0x15   : > { %634 = vmatprep.subr.bf16.mxu1 %v693_v2 }
  0x17   : > { %604 = vmatpush3.bf16.msra.mxu0 %v670_v14 }
  0x18   : > { %635 = vmatpush3.bf16.msra.mxu1 %v671_v15  ;;  %605 = vmatprep.subr.bf16.mxu0 %v672_v16 }
  0x19   : > { %636 = vmatprep.subr.bf16.mxu1 %v693_v2 }
  0x1b   : > { %606 = vmatpush3.bf16.msra.mxu0 %v673_v17 }
  0x1c   : > { %637 = vmatpush3.bf16.msra.mxu1 %v674_v18  ;;  %607 = vmatprep.subr.bf16.mxu0 %v675_v19 }
  0x1d   : > { %638 = vmatprep.subr.bf16.mxu1 %v693_v2 }
  0x1f   : > { %608 = vmatpush3.bf16.msra.mxu0 %v676_v20 }
  0x20   : > { %639 = vmatpush3.bf16.msra.mxu1 %v677_v21  ;;  %609 = vmatprep.subr.bf16.mxu0 %v678_v22 }
  0x21   : > { %640 = vmatprep.subr.bf16.mxu1 %v693_v2 }
  0x23   : > { %610 = vmatpush3.bf16.msra.mxu0 %v679_v24 }
  0x24   : > { %641 = vmatpush3.bf16.msra.mxu1 %v683_v25 }
  0x26   : > { %430 = vmatmul.mubr.bf16.vlgmr.msra.gmra.mrb[0].mxu0 %v680_v26 }
  0x27   : > { %643 = vmatmul.mubr.bf16.vlgmr.msra.gmra.mrb[0].mxu1 %v684_v27 }
  0xf9   : > { %v611_v28 = vpop.f32.mrb[0].mxu0 }
  0xfa   : > { %v612_v29 = vpop.f32.mrb[1].mxu0  ;;  %v472_v31 = vpop.f32.mrb[0].mxu1 }
  0xfb   : > { %v613_v32 = vadd.f32 %v612_v29, %v611_v28  ;;  %v614_v33 = vpop.f32.mrb[2].mxu0  ;;  %v644_v34 = vpop.f32.mrb[1].mxu1 }
  0xfc   : > { %v615_v35 = vpop.f32.mrb[3].mxu0  ;;  %v475_v36 = vpop.f32.mrb[2].mxu1 }
  0xfd   : > { %v432_v37 = vadd.f32 %v613_v32, %v556_v30  ;;  %v616_v38 = vadd.f32 %v615_v35, %v614_v33  ;;  %v645_v39 = vpop.f32.mrb[3].mxu1 }
  0xff   : > { %v473_v40 = vadd.f32 %v472_v31, %v432_v37  ;;  %v435_v41 = vadd.f32 %v616_v38, %v556_v30 }
 0x101   : > { %v476_v42 = vadd.f32 %v475_v36, %v435_v41  ;;  %v479_v43 = vmax.f32 %v473_v40, 0.0 }
 0x103   : > { %v480_v44 = vmax.f32 %v476_v42, 0.0 }
 0x105   : > { %v593_v45 = vpack.c.bf16 %v480_v44, %v479_v43 }
 0x107   : > { %594 = vst [vmem:[%s175_s21] sm:$0xff] %v593_v45  }
 0x108 PF: > { %s13_s12 = sadd.s32 1, %s691_s12  }
 0x109   : > { %p10_p4 = scmp.ge.s32.totalorder %s13_s12, 4  }
 0x10b   :  { %12 = sbr.rel (!%p10_p4) target bundleno = 1 (0x1), region = 62 }

// kernel: resnet_forward.27
= control target key start
LH: loop header
LB: loop body
LE: loop exit
PB: predicated region body
PF: predicated region fallthrough
CT: control target
= control target key end

     0   :  { %s663_s12 = smov 0   ;;  %s790_s0 = inlined_call_operand.vmem [shape: bf16[32,256], index: 0, kind: input, shape index: {}]   ;;  %s791_s1 = inlined_call_operand.vmem [shape: bf16[256,256], index: 1, kind: input, shape index: {}]   ;;  %s792_s2 = inlined_call_operand.vmem [shape: f32[1,256], index: 2, kind: input, shape index: {}]   ;;  %s793_s3 = inlined_call_operand.vmem [shape: bf16[32,256], index: 3, kind: output, shape index: {}]  }
   0x1 LB: > { %s523_s13 = sadd.s32 4294967295, %s641_s12   ;;  %p527_p0 = scmp.ge.s32.totalorder %s641_s12, 1  ;;  %s641_s12 = sphi %s663_s12, %s13_s12  }
   0x2   : > { %p139_p1 = scmp.lt.s32.totalorder %s641_s12, 3 }
   0x4   : > { %p140_p2 = pnand %p527_p0, %p139_p1 }
   0x5   : > { %v584_v0 = vld [vmem:[%s791_s1 + $0x4] ss:$8 sps:$4 sm:$0xff] (!%p140_p2)   ;;  %v586_v1 = vld [vmem:[%s791_s1] ss:$8 sps:$4 sm:$0xff] (!%p140_p2)   ;;  %v587_v2 = vld [vmem:[%s791_s1 + $0x14] ss:$8 sps:$4 sm:$0xff] (!%p140_p2)   ;;  %v215_v34 = vlaneseq (!%p140_p2) }
   0x6   : > { %143 = sbr.rel (%p140_p2) target bundleno = 291 (0x123), region = 32  ;;  %395 = vmatprep.subr.bf16.mxu0 (!%p140_p2), %v584_v0  ;;  %v589_v3 = vld [vmem:[%s791_s1 + $0x10] ss:$8 sps:$4 sm:$0xff] (!%p140_p2)   ;;  %v590_v4 = vld [vmem:[%s791_s1 + $0x24] ss:$8 sps:$4 sm:$0xff] (!%p140_p2)   ;;  %s528_s24 = sshll.u32 (!%p140_p2), %s523_s13, 1 }
   0x7   : > { %396 = vmatpush1.bf16.msra.mxu0 (!%p140_p2), %v586_v1  ;;  %v592_v5 = vld [vmem:[%s791_s1 + $0x20] ss:$8 sps:$4 sm:$0xff] (!%p140_p2)   ;;  %v593_v6 = vld [vmem:[%s791_s1 + $0x34] ss:$8 sps:$4 sm:$0xff] (!%p140_p2)   ;;  %p166_p3 = scmp.lt.s32.totalorder (!%p140_p2), %s528_s24, 3  ;;  %v216_v35 = vshrl.u32 (!%p140_p2), %v215_v34, 7 }
   0x8   : > { %397 = vmatprep.subr.bf16.mxu0 (!%p140_p2), %v587_v2  ;;  %v595_v7 = vld [vmem:[%s791_s1 + $0x30] ss:$8 sps:$4 sm:$0xff] (!%p140_p2)   ;;  %v596_v8 = vld [vmem:[%s791_s1 + $0x44] ss:$8 sps:$4 sm:$0xff] (!%p140_p2)   ;;  %v598_v9 = vld [vmem:[%s791_s1 + $0x40] ss:$8 sps:$4 sm:$0xff] (!%p140_p2)  }
   0x9   : > { %v599_v10 = vld [vmem:[%s791_s1 + $0x54] ss:$8 sps:$4 sm:$0xff] (!%p140_p2)   ;;  %v601_v11 = vld [vmem:[%s791_s1 + $0x50] ss:$8 sps:$4 sm:$0xff] (!%p140_p2)   ;;  %v602_v12 = vld [vmem:[%s791_s1 + $0x64] ss:$8 sps:$4 sm:$0xff] (!%p140_p2)  }
   0xa   : > { %v604_v14 = vld [vmem:[%s791_s1 + $0x60] ss:$8 sps:$4 sm:$0xff] (!%p140_p2)   ;;  %v605_v15 = vld [vmem:[%s791_s1 + $0x74] ss:$8 sps:$4 sm:$0xff] (!%p140_p2)   ;;  %v607_v16 = vld [vmem:[%s791_s1 + $0x70] ss:$8 sps:$4 sm:$0xff] (!%p140_p2)  }
   0xb   : > { %398 = vmatpush1.bf16.msra.mxu0 (!%p140_p2), %v589_v3  ;;  %v608_v17 = vld [vmem:[%s791_s1 + $0x84] ss:$8 sps:$4 sm:$0xff] (!%p140_p2)   ;;  %v610_v18 = vld [vmem:[%s791_s1 + $0x80] ss:$8 sps:$4 sm:$0xff] (!%p140_p2)   ;;  %v611_v19 = vld [vmem:[%s791_s1 + $0x94] ss:$8 sps:$4 sm:$0xff] (!%p140_p2)  }
   0xc   : > { %399 = vmatprep.subr.bf16.mxu0 (!%p140_p2), %v590_v4  ;;  %v613_v20 = vld [vmem:[%s791_s1 + $0x90] ss:$8 sps:$4 sm:$0xff] (!%p140_p2)   ;;  %v614_v21 = vld [vmem:[%s791_s1 + $0xa4] ss:$8 sps:$4 sm:$0xff] (!%p140_p2)   ;;  %v616_v22 = vld [vmem:[%s791_s1 + $0xa0] ss:$8 sps:$4 sm:$0xff] (!%p140_p2)  }
   0xd   : > { %s795_s24 = smov (!%p166_p3, %s528_s24), 3  ;;  %v617_v23 = vld [vmem:[%s791_s1 + $0xb4] ss:$8 sps:$4 sm:$0xff]   ;;  %v619_v24 = vld [vmem:[%s791_s1 + $0xb0] ss:$8 sps:$4 sm:$0xff]   ;;  %v217_v36 = vsub.s32 0, %v216_v35 }
   0xe   : > { %s572_s10 = sshll.u32 %s795_s24, 3  ;;  %v620_v25 = vld [vmem:[%s791_s1 + $0xc4] ss:$8 sps:$4 sm:$0xff]   ;;  %v622_v26 = vld [vmem:[%s791_s1 + $0xc0] ss:$8 sps:$4 sm:$0xff]   ;;  %v221_v38 = vsub.s32 1, %v216_v35 }
   0xf   : > { %400 = vmatpush1.bf16.msra.mxu0 %v592_v5  ;;  %s715_s16 = scalar_lea.vmem %s790_s0, %s572_s10  ;;  %v623_v27 = vld [vmem:[%s791_s1 + $0xd4] ss:$8 sps:$4 sm:$0xff]   ;;  %v625_v28 = vld [vmem:[%s791_s1 + $0xd0] ss:$8 sps:$4 sm:$0xff]   ;;  %v626_v29 = vld [vmem:[%s791_s1 + $0xe4] ss:$8 sps:$4 sm:$0xff]   ;;  %s177_s13 = scalar_lea.vmem %s793_s3, %s572_s10 }
  0x10   : > { %401 = vmatprep.subr.bf16.mxu0 %v593_v6  ;;  %v634_v13 = vld [vmem:[%s715_s16 + $0x4] ss:$8 sps:$4 sm:$0xff]   ;;  %v628_v30 = vld [vmem:[%s791_s1 + $0xe0] ss:$8 sps:$4 sm:$0xff]   ;;  %v629_v31 = vld [vmem:[%s791_s1 + $0xf4] ss:$8 sps:$4 sm:$0xff]  }
  0x11   : > { %427 = vmatprep.mubr.bf16.mxu0 %v634_v13  ;;  %v631_v32 = vld [vmem:[%s791_s1 + $0xf0] ss:$8 sps:$4 sm:$0xff]   ;;  %v632_v33 = vld [vmem:[%s715_s16] ss:$8 sps:$4 sm:$0xff]  }
  0x12   : > { %v213_v37 = vld [vmem:[%s792_s2] sm:$0x3] }
  0x13   : > { %402 = vmatpush1.bf16.msra.mxu0 %v595_v7  ;;  %v218_v39 = vrot.slane %v213_v37, %v217_v36  ;;  %v222_v40 = vrot.slane %v213_v37, %v221_v38 }
  0x14   : > { %403 = vmatprep.subr.bf16.mxu0 %v596_v8 }
  0x17   : > { %404 = vmatpush1.bf16.msra.mxu0 %v598_v9 }
  0x18   : > { %405 = vmatprep.subr.bf16.mxu0 %v599_v10 }
  0x1b   : > { %406 = vmatpush1.bf16.msra.mxu0 %v601_v11 }
  0x1c   : > { %407 = vmatprep.subr.bf16.mxu0 %v602_v12 }
  0x1f   : > { %408 = vmatpush1.bf16.msra.mxu0 %v604_v14 }
  0x20   : > { %409 = vmatprep.subr.bf16.mxu0 %v605_v15 }
  0x23   : > { %410 = vmatpush1.bf16.msra.mxu0 %v607_v16 }
  0x24   : > { %411 = vmatprep.subr.bf16.mxu0 %v608_v17 }
  0x27   : > { %412 = vmatpush1.bf16.msra.mxu0 %v610_v18 }
  0x28   : > { %413 = vmatprep.subr.bf16.mxu0 %v611_v19 }
  0x2b   : > { %414 = vmatpush1.bf16.msra.mxu0 %v613_v20 }
  0x2c   : > { %415 = vmatprep.subr.bf16.mxu0 %v614_v21 }
  0x2f   : > { %416 = vmatpush1.bf16.msra.mxu0 %v616_v22 }
  0x30   : > { %417 = vmatprep.subr.bf16.mxu0 %v617_v23 }
  0x33   : > { %418 = vmatpush1.bf16.msra.mxu0 %v619_v24 }
  0x34   : > { %419 = vmatprep.subr.bf16.mxu0 %v620_v25 }
  0x37   : > { %420 = vmatpush1.bf16.msra.mxu0 %v622_v26 }
  0x38   : > { %421 = vmatprep.subr.bf16.mxu0 %v623_v27 }
  0x3b   : > { %422 = vmatpush1.bf16.msra.mxu0 %v625_v28 }
  0x3c   : > { %423 = vmatprep.subr.bf16.mxu0 %v626_v29 }
  0x3f   : > { %424 = vmatpush1.bf16.msra.mxu0 %v628_v30 }
  0x40   : > { %425 = vmatprep.subr.bf16.mxu0 %v629_v31 }
  0x43   : > { %426 = vmatpush1.bf16.msra.mxu0 %v631_v32 }
  0x46   : > { %428 = vmatmul.mubr.bf16.vlgmr.msra.gmra.mrb[0].mxu0 %v632_v33 }
 0x119   : > { %v429_v41 = vpop.f32.mrb[0].mxu0 }
 0x11a   : > { %v430_v42 = vadd.f32 %v429_v41, %v218_v39  ;;  %v431_v43 = vpop.f32.mrb[1].mxu0 }
 0x11b   : > { %v432_v44 = vadd.f32 %v431_v43, %v222_v40  ;;  %v433_v45 = vpop.f32.mrb[2].mxu0 }
 0x11c   : > { %v443_v46 = vmax.f32 %v430_v42, 0.0  ;;  %v434_v47 = vadd.f32 %v433_v45, %v218_v39  ;;  %v435_v48 = vpop.f32.mrb[3].mxu0 }
 0x11d   : > { %v436_v49 = vadd.f32 %v435_v48, %v222_v40 }
 0x11e   : > { %v574_v50 = vpack.c.bf16 %v432_v44, %v443_v46  ;;  %v445_v51 = vmax.f32 %v434_v47, 0.0 }
 0x120   : > { %463 = vst [vmem:[%s177_s13] sm:$0xff] %v574_v50  ;;  %v575_v52 = vpack.c.bf16 %v436_v49, %v445_v51 }
 0x122   : > { %464 = vst [vmem:[%s177_s13 + $0x8] sm:$0xff] %v575_v52 }
 0x123 PF: > { %s13_s12 = sadd.s32 1, %s641_s12  }
 0x124   : > { %p10_p4 = scmp.ge.s32.totalorder %s13_s12, 4  }
 0x126   :  { %12 = sbr.rel (!%p10_p4) target bundleno = 1 (0x1), region = 62 }

// kernel: resnet_forward.30
= control target key start
LH: loop header
LB: loop body
LE: loop exit
PB: predicated region body
PF: predicated region fallthrough
CT: control target
= control target key end

     0   :  { %s793_s15 = smov 0   ;;  %s892_s0 = inlined_call_operand.vmem [shape: bf16[32,384], index: 0, kind: input, shape index: {}]   ;;  %s893_s1 = inlined_call_operand.vmem [shape: bf16[384,128], index: 1, kind: input, shape index: {}]   ;;  %s894_s2 = inlined_call_operand.vmem [shape: f32[1,128], index: 2, kind: input, shape index: {}]   ;;  %s895_s3 = inlined_call_operand.vmem [shape: bf16[32,128], index: 3, kind: input, shape index: {}]   ;;  %s896_s4 = inlined_call_operand.vmem [shape: bf16[32,128], index: 4, kind: output, shape index: {}]  }
   0x1 LB: > { %s614_s16 = sadd.s32 4294967295, %s764_s15   ;;  %p618_p0 = scmp.ge.s32.totalorder %s764_s15, 1  ;;  %s764_s15 = sphi %s793_s15, %s14_s15  }
   0x2   : > { %p175_p1 = scmp.lt.s32.totalorder %s764_s15, 3 }
   0x4   : > { %p176_p2 = pnand %p618_p0, %p175_p1 }
   0x5   : > { %v730_v0 = vld [vmem:[%s893_s1 + $0x40] sm:$0xff] (!%p176_p2)   ;;  %v766_v2 = vmov (!%p176_p2), 0.0   ;;  %v733_v4 = vld [vmem:[%s893_s1 + $0x48] sm:$0xff] (!%p176_p2)   ;;  %vm767_vm0 = vmmov (!%p176_p2), 0   ;;  %v736_v7 = vld [vmem:[%s893_s1 + $0x50] sm:$0xff] (!%p176_p2)   ;;  %s619_s5 = sshll.u32 (!%p176_p2), %s614_s16, 1 }
   0x6   : > { %179 = sbr.rel (%p176_p2) target bundleno = 266 (0x10a), region = 36  ;;  %v731_v1 = vld [vmem:[%s893_s1] sm:$0xff] (!%p176_p2)   ;;  %699 = vmatprep.subr.bf16.mxu1 (!%p176_p2), %v766_v2  ;;  %668 = vmatprep.subr.bf16.mxu0 (!%p176_p2), %v730_v0  ;;  %v734_v5 = vld [vmem:[%s893_s1 + $0x8] sm:$0xff] (!%p176_p2)   ;;  %v737_v8 = vld [vmem:[%s893_s1 + $0x10] sm:$0xff] (!%p176_p2)   ;;  %p208_p3 = scmp.lt.s32.totalorder (!%p176_p2), %s619_s5, 3 }
   0x7   : > { %v732_v3 = vld [vmem:[%s893_s1 + $0x80] sm:$0xff] (!%p176_p2)   ;;  %669 = vmatpush3.bf16.msra.mxu0 (!%p176_p2), %v731_v1  ;;  %715 = vmatprep.mubr.msk.bf16.mxu1 (!%p176_p2), %vm767_vm0, %v766_v2  ;;  %v735_v6 = vld [vmem:[%s893_s1 + $0x88] sm:$0xff] (!%p176_p2)   ;;  %v738_v9 = vld [vmem:[%s893_s1 + $0x90] sm:$0xff] (!%p176_p2)  }
   0x8   : > { %700 = vmatpush3.bf16.msra.mxu1 (!%p176_p2), %v732_v3  ;;  %670 = vmatprep.subr.bf16.mxu0 (!%p176_p2), %v733_v4  ;;  %v739_v10 = vld [vmem:[%s893_s1 + $0x58] sm:$0xff] (!%p176_p2)   ;;  %v742_v13 = vld [vmem:[%s893_s1 + $0x60] sm:$0xff] (!%p176_p2)   ;;  %v745_v16 = vld [vmem:[%s893_s1 + $0x68] sm:$0xff] (!%p176_p2)  }
   0x9   : > { %701 = vmatprep.subr.bf16.mxu1 (!%p176_p2), %v766_v2  ;;  %v740_v11 = vld [vmem:[%s893_s1 + $0x18] sm:$0xff] (!%p176_p2)   ;;  %v743_v14 = vld [vmem:[%s893_s1 + $0x20] sm:$0xff] (!%p176_p2)   ;;  %v746_v17 = vld [vmem:[%s893_s1 + $0x28] sm:$0xff] (!%p176_p2)  }
   0xa   : > { %v741_v12 = vld [vmem:[%s893_s1 + $0x98] sm:$0xff] (!%p176_p2)   ;;  %v744_v15 = vld [vmem:[%s893_s1 + $0xa0] sm:$0xff] (!%p176_p2)   ;;  %v747_v18 = vld [vmem:[%s893_s1 + $0xa8] sm:$0xff] (!%p176_p2)  }
   0xb   : > { %671 = vmatpush3.bf16.msra.mxu0 (!%p176_p2), %v734_v5  ;;  %v748_v19 = vld [vmem:[%s893_s1 + $0x70] sm:$0xff] (!%p176_p2)   ;;  %v751_v22 = vld [vmem:[%s893_s1 + $0x78] sm:$0xff] (!%p176_p2)   ;;  %v625_v30 = vld [vmem:[%s894_s2] ss:$0 sm:$0xff] (!%p176_p2) }
   0xc   : > { %702 = vmatpush3.bf16.msra.mxu1 (!%p176_p2), %v735_v6  ;;  %672 = vmatprep.subr.bf16.mxu0 (!%p176_p2), %v736_v7  ;;  %v749_v20 = vld [vmem:[%s893_s1 + $0x30] sm:$0xff] (!%p176_p2)   ;;  %v752_v24 = vld [vmem:[%s893_s1 + $0x38] sm:$0xff] (!%p176_p2)  }
   0xd   : > { %703 = vmatprep.subr.bf16.mxu1 %v766_v2  ;;  %s898_s5 = smov (!%p208_p3, %s619_s5), 3  ;;  %v750_v21 = vld [vmem:[%s893_s1 + $0xb0] sm:$0xff]   ;;  %v756_v25 = vld [vmem:[%s893_s1 + $0xb8] sm:$0xff]  }
   0xe   : > { %s719_s25 = smul.u32 12, %s898_s5  ;;  %s622_s21 = sshll.u32 %s898_s5, 2 }
   0xf   : > { %673 = vmatpush3.bf16.msra.mxu0 %v737_v8  ;;  %s218_s24 = scalar_lea.vmem %s895_s3, %s622_s21  ;;  %s224_s28 = scalar_lea.vmem %s896_s4, %s622_s21 }
  0x10   : > { %704 = vmatpush3.bf16.msra.mxu1 %v738_v9  ;;  %674 = vmatprep.subr.bf16.mxu0 %v739_v10  ;;  %s212_s11 = scalar_lea.vmem %s892_s0, %s719_s25  ;;  %v660_v32 = vld [vmem:[%s218_s24] sm:$0xff]  }
  0x11   : > { %705 = vmatprep.subr.bf16.mxu1 %v766_v2  ;;  %v755_v23 = vld [vmem:[%s212_s11 + $0x4] ss:$12 sps:$4 sm:$0xff]   ;;  %v753_v26 = vld [vmem:[%s212_s11] ss:$12 sps:$4 sm:$0xff]   ;;  %v757_v27 = vld [vmem:[%s212_s11 + $0x8] ss:$12 sps:$4 sm:$0xff]   ;;  %v661_v39 = vunpack.c.l.bf16 %v660_v32  ;;  %v662_v44 = vunpack.c.h.bf16 %v660_v32 }
  0x12   : > { %478 = vmatprep.mubr.bf16.mxu0 %v755_v23 }
  0x13   : > { %675 = vmatpush3.bf16.msra.mxu0 %v740_v11 }
  0x14   : > { %706 = vmatpush3.bf16.msra.mxu1 %v741_v12  ;;  %676 = vmatprep.subr.bf16.mxu0 %v742_v13 }
  0x15   : > { %707 = vmatprep.subr.bf16.mxu1 %v766_v2 }
  0x17   : > { %677 = vmatpush3.bf16.msra.mxu0 %v743_v14 }
  0x18   : > { %708 = vmatpush3.bf16.msra.mxu1 %v744_v15  ;;  %678 = vmatprep.subr.bf16.mxu0 %v745_v16 }
  0x19   : > { %709 = vmatprep.subr.bf16.mxu1 %v766_v2 }
  0x1b   : > { %679 = vmatpush3.bf16.msra.mxu0 %v746_v17 }
  0x1c   : > { %710 = vmatpush3.bf16.msra.mxu1 %v747_v18  ;;  %680 = vmatprep.subr.bf16.mxu0 %v748_v19 }
  0x1d   : > { %711 = vmatprep.subr.bf16.mxu1 %v766_v2 }
  0x1f   : > { %681 = vmatpush3.bf16.msra.mxu0 %v749_v20 }
  0x20   : > { %712 = vmatpush3.bf16.msra.mxu1 %v750_v21  ;;  %682 = vmatprep.subr.bf16.mxu0 %v751_v22 }
  0x21   : > { %713 = vmatprep.subr.bf16.mxu1 %v766_v2 }
  0x23   : > { %683 = vmatpush3.bf16.msra.mxu0 %v752_v24 }
  0x24   : > { %714 = vmatpush3.bf16.msra.mxu1 %v756_v25 }
  0x26   : > { %479 = vmatmul.mubr.bf16.vlgmr.msra.gmra.mrb[0].mxu0 %v753_v26 }
  0x27   : > { %716 = vmatmul.mubr.bf16.vlgmr.msra.gmra.mrb[0].mxu1 %v757_v27 }
  0xf9   : > { %v684_v28 = vpop.f32.mrb[0].mxu0 }
  0xfa   : > { %v685_v29 = vpop.f32.mrb[1].mxu0  ;;  %v521_v31 = vpop.f32.mrb[0].mxu1 }
  0xfb   : > { %v686_v33 = vadd.f32 %v685_v29, %v684_v28  ;;  %v687_v34 = vpop.f32.mrb[2].mxu0  ;;  %v717_v35 = vpop.f32.mrb[1].mxu1 }
  0xfc   : > { %v688_v36 = vpop.f32.mrb[3].mxu0  ;;  %v524_v37 = vpop.f32.mrb[2].mxu1 }
  0xfd   : > { %v481_v38 = vadd.f32 %v686_v33, %v625_v30  ;;  %v689_v40 = vadd.f32 %v688_v36, %v687_v34  ;;  %v718_v41 = vpop.f32.mrb[3].mxu1 }
  0xff   : > { %v522_v42 = vadd.f32 %v521_v31, %v481_v38  ;;  %v484_v43 = vadd.f32 %v689_v40, %v625_v30 }
 0x101   : > { %v532_v45 = vadd.f32 %v661_v39, %v522_v42  ;;  %v525_v46 = vadd.f32 %v524_v37, %v484_v43 }
 0x103   : > { %v533_v47 = vadd.f32 %v662_v44, %v525_v46  ;;  %v534_v48 = vmax.f32 %v532_v45, 0.0 }
 0x105   : > { %v535_v49 = vmax.f32 %v533_v47, 0.0 }
 0x107   : > { %v666_v50 = vpack.c.bf16 %v535_v49, %v534_v48 }
 0x109   : > { %667 = vst [vmem:[%s224_s28] sm:$0xff] %v666_v50  }
 0x10a PF: > { %s14_s15 = sadd.s32 1, %s764_s15  }
 0x10b   : > { %p11_p4 = scmp.ge.s32.totalorder %s14_s15, 4  }
 0x10d   :  { %13 = sbr.rel (!%p11_p4) target bundleno = 1 (0x1), region = 69 }

// kernel: resnet_forward.31
= control target key start
LH: loop header
LB: loop body
LE: loop exit
PB: predicated region body
PF: predicated region fallthrough
CT: control target
= control target key end

     0   :  { %v592_v1 = vmov 0   ;;  %v69_v56 = vlaneseq  ;;  %s775_s1 = inlined_call_operand.vmem [shape: bf16[384,256], index: 1, kind: input, shape index: {}]   ;;  %s776_s0 = inlined_call_operand.vmem [shape: bf16[16,384], index: 0, kind: input, shape index: {}]   ;;  %s777_s2 = inlined_call_operand.vmem [shape: f32[1,256], index: 2, kind: input, shape index: {}]   ;;  %s778_s3 = inlined_call_operand.vmem [shape: bf16[16,256], index: 3, kind: output, shape index: {}]  }
   0x1   :  { %v516_v0 = vld [vmem:[%s775_s1 + $0x4] ss:$8 sps:$4 sm:$0xff]   ;;  %410 = vmatprep.mubr.bf16.mxu0 %v592_v1  ;;  %v518_v2 = vld [vmem:[%s775_s1] ss:$8 sps:$4 sm:$0xff]   ;;  %v519_v3 = vld [vmem:[%s775_s1 + $0x14] ss:$8 sps:$4 sm:$0xff]  }
   0x2   :  { %335 = vmatprep.subr.bf16.mxu1 %v516_v0  ;;  %v521_v4 = vld [vmem:[%s775_s1 + $0x10] ss:$8 sps:$4 sm:$0xff]   ;;  %v522_v5 = vld [vmem:[%s775_s1 + $0x24] ss:$8 sps:$4 sm:$0xff]   ;;  %v524_v6 = vld [vmem:[%s775_s1 + $0x20] ss:$8 sps:$4 sm:$0xff]  }
   0x3   :  { %336 = vmatpush1.bf16.msra.mxu1 %v518_v2  ;;  %v525_v7 = vld [vmem:[%s775_s1 + $0x34] ss:$8 sps:$4 sm:$0xff]   ;;  %v527_v8 = vld [vmem:[%s775_s1 + $0x30] ss:$8 sps:$4 sm:$0xff]   ;;  %v540_v9 = vld [vmem:[%s775_s1 + $0x104] ss:$8 sps:$4 sm:$0xff]  }
   0x4   :  { %337 = vmatprep.subr.bf16.mxu1 %v519_v3  ;;  %v528_v10 = vld [vmem:[%s775_s1 + $0x44] ss:$8 sps:$4 sm:$0xff]   ;;  %v544_v11 = vld [vmem:[%s775_s1 + $0x100] ss:$8 sps:$4 sm:$0xff]   ;;  %378 = vmatprep.subr.bf16.mxu0 %v540_v9  ;;  %v546_v12 = vld [vmem:[%s775_s1 + $0x114] ss:$8 sps:$4 sm:$0xff]  }
   0x5   :  { %379 = vmatpush1.bf16.msra.mxu0 %v544_v11  ;;  %v530_v13 = vld [vmem:[%s775_s1 + $0x40] ss:$8 sps:$4 sm:$0xff]   ;;  %v531_v14 = vld [vmem:[%s775_s1 + $0x54] ss:$8 sps:$4 sm:$0xff]   ;;  %v550_v15 = vld [vmem:[%s775_s1 + $0x110] ss:$8 sps:$4 sm:$0xff]  }
   0x6   :  { %380 = vmatprep.subr.bf16.mxu0 %v546_v12  ;;  %v552_v16 = vld [vmem:[%s775_s1 + $0x124] ss:$8 sps:$4 sm:$0xff]   ;;  %v533_v17 = vld [vmem:[%s775_s1 + $0x50] ss:$8 sps:$4 sm:$0xff]   ;;  %v556_v18 = vld [vmem:[%s775_s1 + $0x120] ss:$8 sps:$4 sm:$0xff]  }
   0x7   :  { %338 = vmatpush1.bf16.msra.mxu1 %v521_v4  ;;  %v558_v19 = vld [vmem:[%s775_s1 + $0x134] ss:$8 sps:$4 sm:$0xff]   ;;  %v534_v20 = vld [vmem:[%s775_s1 + $0x64] ss:$8 sps:$4 sm:$0xff]   ;;  %v562_v21 = vld [vmem:[%s775_s1 + $0x130] ss:$8 sps:$4 sm:$0xff]  }
   0x8   :  { %339 = vmatprep.subr.bf16.mxu1 %v522_v5  ;;  %v536_v22 = vld [vmem:[%s775_s1 + $0x60] ss:$8 sps:$4 sm:$0xff]   ;;  %v564_v23 = vld [vmem:[%s775_s1 + $0x144] ss:$8 sps:$4 sm:$0xff]   ;;  %v537_v24 = vld [vmem:[%s775_s1 + $0x74] ss:$8 sps:$4 sm:$0xff]  }
   0x9   :  { %381 = vmatpush1.bf16.msra.mxu0 %v550_v15  ;;  %v539_v25 = vld [vmem:[%s775_s1 + $0x70] ss:$8 sps:$4 sm:$0xff]   ;;  %v568_v26 = vld [vmem:[%s775_s1 + $0x140] ss:$8 sps:$4 sm:$0xff]   ;;  %v570_v27 = vld [vmem:[%s775_s1 + $0x154] ss:$8 sps:$4 sm:$0xff]  }
   0xa   :  { %382 = vmatprep.subr.bf16.mxu0 %v552_v16  ;;  %v542_v28 = vld [vmem:[%s775_s1 + $0x84] ss:$8 sps:$4 sm:$0xff]   ;;  %v574_v29 = vld [vmem:[%s775_s1 + $0x150] ss:$8 sps:$4 sm:$0xff]   ;;  %v545_v30 = vld [vmem:[%s775_s1 + $0x80] ss:$8 sps:$4 sm:$0xff]  }
   0xb   :  { %340 = vmatpush1.bf16.msra.mxu1 %v524_v6  ;;  %v576_v31 = vld [vmem:[%s775_s1 + $0x164] ss:$8 sps:$4 sm:$0xff]   ;;  %v548_v32 = vld [vmem:[%s775_s1 + $0x94] ss:$8 sps:$4 sm:$0xff]   ;;  %v580_v34 = vld [vmem:[%s775_s1 + $0x160] ss:$8 sps:$4 sm:$0xff]  }
   0xc   :  { %341 = vmatprep.subr.bf16.mxu1 %v525_v7  ;;  %v590_v33 = vld [vmem:[%s776_s0 + $0x4] ss:$12 sps:$4 sm:$0xff]   ;;  %v582_v36 = vld [vmem:[%s775_s1 + $0x174] ss:$8 sps:$4 sm:$0xff]   ;;  %v557_v39 = vld [vmem:[%s775_s1 + $0xa0] ss:$8 sps:$4 sm:$0xff]  }
   0xd   :  { %383 = vmatpush1.bf16.msra.mxu0 %v556_v18  ;;  %v551_v35 = vld [vmem:[%s775_s1 + $0x90] ss:$8 sps:$4 sm:$0xff]   ;;  %v554_v37 = vld [vmem:[%s775_s1 + $0xa4] ss:$8 sps:$4 sm:$0xff]   ;;  %367 = vmatprep.mubr.bf16.mxu1 %v590_v33  ;;  %v560_v40 = vld [vmem:[%s775_s1 + $0xb4] ss:$8 sps:$4 sm:$0xff]  }
   0xe   :  { %384 = vmatprep.subr.bf16.mxu0 %v558_v19  ;;  %v586_v38 = vld [vmem:[%s775_s1 + $0x170] ss:$8 sps:$4 sm:$0xff]   ;;  %v591_v41 = vld [vmem:[%s776_s0 + $0x8] ss:$12 sps:$4 sm:$0xff]   ;;  %v566_v43 = vld [vmem:[%s775_s1 + $0xc4] ss:$8 sps:$4 sm:$0xff]  }
   0xf   :  { %342 = vmatpush1.bf16.msra.mxu1 %v527_v8  ;;  %v563_v42 = vld [vmem:[%s775_s1 + $0xb0] ss:$8 sps:$4 sm:$0xff]   ;;  %v569_v44 = vld [vmem:[%s775_s1 + $0xc0] ss:$8 sps:$4 sm:$0xff]   ;;  %v572_v45 = vld [vmem:[%s775_s1 + $0xd4] ss:$8 sps:$4 sm:$0xff]  }
  0x10   :  { %343 = vmatprep.subr.bf16.mxu1 %v528_v10  ;;  %v575_v46 = vld [vmem:[%s775_s1 + $0xd0] ss:$8 sps:$4 sm:$0xff]   ;;  %v578_v47 = vld [vmem:[%s775_s1 + $0xe4] ss:$8 sps:$4 sm:$0xff]   ;;  %v581_v48 = vld [vmem:[%s775_s1 + $0xe0] ss:$8 sps:$4 sm:$0xff]  }
  0x11   :  { %385 = vmatpush1.bf16.msra.mxu0 %v562_v21  ;;  %v584_v49 = vld [vmem:[%s775_s1 + $0xf4] ss:$8 sps:$4 sm:$0xff]   ;;  %v587_v50 = vld [vmem:[%s775_s1 + $0xf0] ss:$8 sps:$4 sm:$0xff]   ;;  %v588_v51 = vld [vmem:[%s776_s0] ss:$12 sps:$4 sm:$0xff]  }
  0x12   :  { %386 = vmatprep.subr.bf16.mxu0 %v564_v23  ;;  %v70_v57 = vshrl.u32 %v69_v56, 7  ;;  %v67_v59 = vld [vmem:[%s777_s2] sm:$0x3] }
  0x13   :  { %344 = vmatpush1.bf16.msra.mxu1 %v530_v13 }
  0x14   :  { %345 = vmatprep.subr.bf16.mxu1 %v531_v14  ;;  %v71_v58 = vsub.s32 0, %v70_v57  ;;  %v75_v60 = vsub.s32 1, %v70_v57 }
  0x15   :  { %387 = vmatpush1.bf16.msra.mxu0 %v568_v26 }
  0x16   :  { %388 = vmatprep.subr.bf16.mxu0 %v570_v27  ;;  %v72_v61 = vrot.slane %v67_v59, %v71_v58  ;;  %v76_v62 = vrot.slane %v67_v59, %v75_v60 }
  0x17   :  { %346 = vmatpush1.bf16.msra.mxu1 %v533_v17 }
  0x18   :  { %347 = vmatprep.subr.bf16.mxu1 %v534_v20 }
  0x19   :  { %389 = vmatpush1.bf16.msra.mxu0 %v574_v29 }
  0x1a   :  { %390 = vmatprep.subr.bf16.mxu0 %v576_v31 }
  0x1b   :  { %348 = vmatpush1.bf16.msra.mxu1 %v536_v22 }
  0x1c   :  { %349 = vmatprep.subr.bf16.mxu1 %v537_v24 }
  0x1d   :  { %391 = vmatpush1.bf16.msra.mxu0 %v580_v34 }
  0x1e   :  { %392 = vmatprep.subr.bf16.mxu0 %v582_v36 }
  0x1f   :  { %350 = vmatpush1.bf16.msra.mxu1 %v539_v25 }
  0x20   :  { %351 = vmatprep.subr.bf16.mxu1 %v542_v28 }
  0x21   :  { %393 = vmatpush1.bf16.msra.mxu0 %v586_v38 }
  0x23   :  { %352 = vmatpush1.bf16.msra.mxu1 %v545_v30 }
  0x24   :  { %353 = vmatprep.subr.bf16.mxu1 %v548_v32  ;;  %411 = vmatmul.mubr.bf16.vlgmr.msra.gmra.mrb[0].mxu0 %v591_v41 }
  0x27   :  { %354 = vmatpush1.bf16.msra.mxu1 %v551_v35 }
  0x28   :  { %355 = vmatprep.subr.bf16.mxu1 %v554_v37 }
  0x2b   :  { %356 = vmatpush1.bf16.msra.mxu1 %v557_v39 }
  0x2c   :  { %357 = vmatprep.subr.bf16.mxu1 %v560_v40 }
  0x2f   :  { %358 = vmatpush1.bf16.msra.mxu1 %v563_v42 }
  0x30   :  { %359 = vmatprep.subr.bf16.mxu1 %v566_v43 }
  0x33   :  { %360 = vmatpush1.bf16.msra.mxu1 %v569_v44 }
  0x34   :  { %361 = vmatprep.subr.bf16.mxu1 %v572_v45 }
  0x37   :  { %362 = vmatpush1.bf16.msra.mxu1 %v575_v46 }
  0x38   :  { %363 = vmatprep.subr.bf16.mxu1 %v578_v47 }
  0x3b   :  { %364 = vmatpush1.bf16.msra.mxu1 %v581_v48 }
  0x3c   :  { %365 = vmatprep.subr.bf16.mxu1 %v584_v49 }
  0x3f   :  { %366 = vmatpush1.bf16.msra.mxu1 %v587_v50 }
  0x42   :  { %368 = vmatmul.mubr.bf16.vlgmr.msra.gmra.mrb[0].mxu1 %v588_v51 }
  0xf7   :  { %v412_v52 = vpop.f32.mrb[0].mxu0 }
  0xf8   :  { %v414_v53 = vpop.f32.mrb[1].mxu0 }
  0xf9   :  { %v416_v54 = vpop.f32.mrb[2].mxu0 }
  0xfa   :  { %v418_v55 = vpop.f32.mrb[3].mxu0 }
 0x115   :  { %v369_v63 = vpop.f32.mrb[0].mxu1 }
 0x116   :  { %v370_v0 = vadd.f32 %v369_v63, %v72_v61  ;;  %v371_v1 = vpop.f32.mrb[1].mxu1 }
 0x117   :  { %v372_v2 = vadd.f32 %v371_v1, %v76_v62  ;;  %v373_v3 = vpop.f32.mrb[2].mxu1 }
 0x118   :  { %v413_v4 = vadd.f32 %v412_v52, %v370_v0  ;;  %v374_v5 = vadd.f32 %v373_v3, %v72_v61  ;;  %v375_v6 = vpop.f32.mrb[3].mxu1 }
 0x119   :  { %v415_v7 = vadd.f32 %v414_v53, %v372_v2  ;;  %v376_v8 = vadd.f32 %v375_v6, %v76_v62 }
 0x11a   :  { %v426_v9 = vmax.f32 %v413_v4, 0.0  ;;  %v417_v10 = vadd.f32 %v416_v54, %v374_v5 }
 0x11b   :  { %v419_v11 = vadd.f32 %v418_v55, %v376_v8 }
 0x11c   :  { %v505_v12 = vpack.c.bf16 %v415_v7, %v426_v9  ;;  %v428_v13 = vmax.f32 %v417_v10, 0.0 }
 0x11e   :  { %446 = vst [vmem:[%s778_s3] sm:$0xff] %v505_v12  ;;  %v506_v14 = vpack.c.bf16 %v419_v11, %v428_v13 }
 0x120   :  { %447 = vst [vmem:[%s778_s3 + $0x8] sm:$0xff] %v506_v14 }

// kernel: resnet_forward.35
= control target key start
LH: loop header
LB: loop body
LE: loop exit
PB: predicated region body
PF: predicated region fallthrough
CT: control target
= control target key end

     0   :  { %s646_s1 = inlined_call_operand.vmem [shape: bf16[512,128], index: 1, kind: input, shape index: {}]   ;;  %s647_s0 = inlined_call_operand.vmem [shape: bf16[16,512], index: 0, kind: input, shape index: {}]   ;;  %s648_s2 = inlined_call_operand.vmem [shape: f32[1,128], index: 2, kind: input, shape index: {}]   ;;  %s649_s3 = inlined_call_operand.vmem [shape: f32[16,128], index: 3, kind: output, shape index: {}]  }
   0x1   :  { %v471_v0 = vld [vmem:[%s646_s1 + $0x40] sm:$0xff]   ;;  %v475_v4 = vld [vmem:[%s646_s1 + $0x48] sm:$0xff]   ;;  %v479_v8 = vld [vmem:[%s646_s1 + $0x50] sm:$0xff]  }
   0x2   :  { %v472_v1 = vld [vmem:[%s646_s1 + $0xc0] sm:$0xff]   ;;  %427 = vmatprep.subr.bf16.mxu0 %v471_v0  ;;  %v476_v5 = vld [vmem:[%s646_s1 + $0xc8] sm:$0xff]   ;;  %v480_v9 = vld [vmem:[%s646_s1 + $0xd0] sm:$0xff]  }
   0x3   :  { %v473_v2 = vld [vmem:[%s646_s1] sm:$0xff]   ;;  %449 = vmatprep.subr.bf16.mxu1 %v472_v1  ;;  %v477_v6 = vld [vmem:[%s646_s1 + $0x8] sm:$0xff]   ;;  %v481_v10 = vld [vmem:[%s646_s1 + $0x10] sm:$0xff]  }
   0x4   :  { %v474_v3 = vld [vmem:[%s646_s1 + $0x80] sm:$0xff]   ;;  %428 = vmatpush3.bf16.msra.mxu0 %v473_v2  ;;  %v478_v7 = vld [vmem:[%s646_s1 + $0x88] sm:$0xff]   ;;  %v482_v11 = vld [vmem:[%s646_s1 + $0x90] sm:$0xff]  }
   0x5   :  { %450 = vmatpush3.bf16.msra.mxu1 %v474_v3  ;;  %429 = vmatprep.subr.bf16.mxu0 %v475_v4  ;;  %v483_v12 = vld [vmem:[%s646_s1 + $0x58] sm:$0xff]   ;;  %v487_v16 = vld [vmem:[%s646_s1 + $0x60] sm:$0xff]   ;;  %v491_v20 = vld [vmem:[%s646_s1 + $0x68] sm:$0xff]  }
   0x6   :  { %451 = vmatprep.subr.bf16.mxu1 %v476_v5  ;;  %v484_v13 = vld [vmem:[%s646_s1 + $0xd8] sm:$0xff]   ;;  %v488_v17 = vld [vmem:[%s646_s1 + $0xe0] sm:$0xff]   ;;  %v492_v21 = vld [vmem:[%s646_s1 + $0xe8] sm:$0xff]  }
   0x7   :  { %v485_v14 = vld [vmem:[%s646_s1 + $0x18] sm:$0xff]   ;;  %v489_v18 = vld [vmem:[%s646_s1 + $0x20] sm:$0xff]   ;;  %v493_v22 = vld [vmem:[%s646_s1 + $0x28] sm:$0xff]  }
   0x8   :  { %430 = vmatpush3.bf16.msra.mxu0 %v477_v6  ;;  %v486_v15 = vld [vmem:[%s646_s1 + $0x98] sm:$0xff]   ;;  %v490_v19 = vld [vmem:[%s646_s1 + $0xa0] sm:$0xff]   ;;  %v494_v23 = vld [vmem:[%s646_s1 + $0xa8] sm:$0xff]  }
   0x9   :  { %452 = vmatpush3.bf16.msra.mxu1 %v478_v7  ;;  %431 = vmatprep.subr.bf16.mxu0 %v479_v8  ;;  %v495_v24 = vld [vmem:[%s646_s1 + $0x70] sm:$0xff]   ;;  %v499_v28 = vld [vmem:[%s646_s1 + $0x78] sm:$0xff]   ;;  %v390_v38 = vld [vmem:[%s648_s2] ss:$0 sm:$0xff] }
   0xa   :  { %453 = vmatprep.subr.bf16.mxu1 %v480_v9  ;;  %v496_v25 = vld [vmem:[%s646_s1 + $0xf0] sm:$0xff]   ;;  %v500_v29 = vld [vmem:[%s646_s1 + $0xf8] sm:$0xff]  }
   0xb   :  { %v497_v26 = vld [vmem:[%s646_s1 + $0x30] sm:$0xff]   ;;  %v501_v30 = vld [vmem:[%s646_s1 + $0x38] sm:$0xff]  }
   0xc   :  { %432 = vmatpush3.bf16.msra.mxu0 %v481_v10  ;;  %v498_v27 = vld [vmem:[%s646_s1 + $0xb0] sm:$0xff]   ;;  %v502_v31 = vld [vmem:[%s646_s1 + $0xb8] sm:$0xff]  }
   0xd   :  { %454 = vmatpush3.bf16.msra.mxu1 %v482_v11  ;;  %433 = vmatprep.subr.bf16.mxu0 %v483_v12  ;;  %v503_v32 = vld [vmem:[%s647_s0] ss:$16 sps:$4 sm:$0xff]   ;;  %v505_v33 = vld [vmem:[%s647_s0 + $0x4] ss:$16 sps:$4 sm:$0xff]   ;;  %v506_v34 = vld [vmem:[%s647_s0 + $0x8] ss:$16 sps:$4 sm:$0xff]  }
   0xe   :  { %455 = vmatprep.subr.bf16.mxu1 %v484_v13  ;;  %v508_v35 = vld [vmem:[%s647_s0 + $0xc] ss:$16 sps:$4 sm:$0xff]   ;;  %334 = vmatprep.mubr.bf16.mxu0 %v505_v33 }
   0xf   :  { %375 = vmatprep.mubr.bf16.mxu1 %v508_v35 }
  0x10   :  { %434 = vmatpush3.bf16.msra.mxu0 %v485_v14 }
  0x11   :  { %456 = vmatpush3.bf16.msra.mxu1 %v486_v15  ;;  %435 = vmatprep.subr.bf16.mxu0 %v487_v16 }
  0x12   :  { %457 = vmatprep.subr.bf16.mxu1 %v488_v17 }
  0x14   :  { %436 = vmatpush3.bf16.msra.mxu0 %v489_v18 }
  0x15   :  { %458 = vmatpush3.bf16.msra.mxu1 %v490_v19  ;;  %437 = vmatprep.subr.bf16.mxu0 %v491_v20 }
  0x16   :  { %459 = vmatprep.subr.bf16.mxu1 %v492_v21 }
  0x18   :  { %438 = vmatpush3.bf16.msra.mxu0 %v493_v22 }
  0x19   :  { %460 = vmatpush3.bf16.msra.mxu1 %v494_v23  ;;  %439 = vmatprep.subr.bf16.mxu0 %v495_v24 }
  0x1a   :  { %461 = vmatprep.subr.bf16.mxu1 %v496_v25 }
  0x1c   :  { %440 = vmatpush3.bf16.msra.mxu0 %v497_v26 }
  0x1d   :  { %462 = vmatpush3.bf16.msra.mxu1 %v498_v27  ;;  %441 = vmatprep.subr.bf16.mxu0 %v499_v28 }
  0x1e   :  { %463 = vmatprep.subr.bf16.mxu1 %v500_v29 }
  0x20   :  { %442 = vmatpush3.bf16.msra.mxu0 %v501_v30 }
  0x21   :  { %464 = vmatpush3.bf16.msra.mxu1 %v502_v31 }
  0x23   :  { %335 = vmatmul.mubr.bf16.vlgmr.msra.gmra.mrb[0].mxu0 %v503_v32 }
  0x24   :  { %376 = vmatmul.mubr.bf16.vlgmr.msra.gmra.mrb[0].mxu1 %v506_v34 }
  0xf6   :  { %v443_v36 = vpop.f32.mrb[0].mxu0 }
  0xf7   :  { %v465_v37 = vpop.f32.mrb[0].mxu1  ;;  %v444_v39 = vpop.f32.mrb[1].mxu0 }
  0xf8   :  { %v445_v40 = vadd.f32 %v444_v39, %v443_v36  ;;  %v466_v41 = vpop.f32.mrb[1].mxu1  ;;  %v446_v42 = vpop.f32.mrb[2].mxu0 }
  0xf9   :  { %v467_v43 = vadd.f32 %v466_v41, %v465_v37  ;;  %v468_v44 = vpop.f32.mrb[2].mxu1  ;;  %v447_v45 = vpop.f32.mrb[3].mxu0 }
  0xfa   :  { %v337_v46 = vadd.f32 %v445_v40, %v390_v38  ;;  %v448_v47 = vadd.f32 %v447_v45, %v446_v42  ;;  %v469_v48 = vpop.f32.mrb[3].mxu1 }
  0xfb   :  { %v470_v49 = vadd.f32 %v469_v48, %v468_v44 }
  0xfc   :  { %v378_v50 = vadd.f32 %v467_v43, %v337_v46  ;;  %v340_v51 = vadd.f32 %v448_v47, %v390_v38 }
  0xfe   :  { %384 = vst [vmem:[%s649_s3] sm:$0xff] %v378_v50  ;;  %v381_v52 = vadd.f32 %v470_v49, %v340_v51 }
 0x100   :  { %385 = vst [vmem:[%s649_s3 + $0x8] sm:$0xff] %v381_v52 }

// kernel: resnet_forward.33
= control target key start
LH: loop header
LB: loop body
LE: loop exit
PB: predicated region body
PF: predicated region fallthrough
CT: control target
= control target key end

     0   :  { %v690_v33 = vmov 0.0   ;;  %vm691_vm0 = vmmov 0   ;;  %s853_s1 = inlined_call_operand.vmem [shape: bf16[640,128], index: 1, kind: input, shape index: {}]   ;;  %s854_s0 = inlined_call_operand.vmem [shape: bf16[16,640], index: 0, kind: input, shape index: {}]   ;;  %s855_s2 = inlined_call_operand.vmem [shape: f32[1,128], index: 2, kind: input, shape index: {}]   ;;  %s856_s3 = inlined_call_operand.vmem [shape: bf16[16,128], index: 3, kind: output, shape index: {}]  }
   0x1   :  { %v643_v0 = vld [vmem:[%s853_s1 + $0x40] sm:$0xff]   ;;  %v647_v4 = vld [vmem:[%s853_s1 + $0x48] sm:$0xff]   ;;  %v651_v8 = vld [vmem:[%s853_s1 + $0x50] sm:$0xff]  }
   0x2   :  { %v644_v1 = vld [vmem:[%s853_s1] sm:$0xff]   ;;  %568 = vmatprep.subr.bf16.mxu0 %v643_v0  ;;  %v648_v5 = vld [vmem:[%s853_s1 + $0x8] sm:$0xff]   ;;  %v652_v9 = vld [vmem:[%s853_s1 + $0x10] sm:$0xff]  }
   0x3   :  { %v645_v2 = vld [vmem:[%s853_s1 + $0xc0] sm:$0xff]   ;;  %569 = vmatpush3.bf16.msra.mxu0 %v644_v1  ;;  %v649_v6 = vld [vmem:[%s853_s1 + $0xc8] sm:$0xff]   ;;  %v653_v10 = vld [vmem:[%s853_s1 + $0xd0] sm:$0xff]  }
   0x4   :  { %v646_v3 = vld [vmem:[%s853_s1 + $0x80] sm:$0xff]   ;;  %590 = vmatprep.subr.bf16.mxu1 %v645_v2  ;;  %570 = vmatprep.subr.bf16.mxu0 %v647_v4  ;;  %v650_v7 = vld [vmem:[%s853_s1 + $0x88] sm:$0xff]   ;;  %v654_v11 = vld [vmem:[%s853_s1 + $0x90] sm:$0xff]  }
   0x5   :  { %591 = vmatpush3.bf16.msra.mxu1 %v646_v3  ;;  %v655_v12 = vld [vmem:[%s853_s1 + $0x58] sm:$0xff]   ;;  %v659_v16 = vld [vmem:[%s853_s1 + $0x60] sm:$0xff]   ;;  %v663_v20 = vld [vmem:[%s853_s1 + $0x68] sm:$0xff]  }
   0x6   :  { %592 = vmatprep.subr.bf16.mxu1 %v649_v6  ;;  %v656_v13 = vld [vmem:[%s853_s1 + $0x18] sm:$0xff]   ;;  %v660_v17 = vld [vmem:[%s853_s1 + $0x20] sm:$0xff]   ;;  %v664_v21 = vld [vmem:[%s853_s1 + $0x28] sm:$0xff]  }
   0x7   :  { %571 = vmatpush3.bf16.msra.mxu0 %v648_v5  ;;  %v657_v14 = vld [vmem:[%s853_s1 + $0xd8] sm:$0xff]   ;;  %v661_v18 = vld [vmem:[%s853_s1 + $0xe0] sm:$0xff]   ;;  %v665_v22 = vld [vmem:[%s853_s1 + $0xe8] sm:$0xff]  }
   0x8   :  { %572 = vmatprep.subr.bf16.mxu0 %v651_v8  ;;  %v658_v15 = vld [vmem:[%s853_s1 + $0x98] sm:$0xff]   ;;  %v662_v19 = vld [vmem:[%s853_s1 + $0xa0] sm:$0xff]   ;;  %v666_v23 = vld [vmem:[%s853_s1 + $0xa8] sm:$0xff]  }
   0x9   :  { %593 = vmatpush3.bf16.msra.mxu1 %v650_v7  ;;  %v667_v24 = vld [vmem:[%s853_s1 + $0x70] sm:$0xff]   ;;  %v671_v28 = vld [vmem:[%s853_s1 + $0x78] sm:$0xff]   ;;  %v680_v36 = vld [vmem:[%s854_s0 + $0xc] ss:$20 sps:$4 sm:$0xff]  }
   0xa   :  { %594 = vmatprep.subr.bf16.mxu1 %v653_v10  ;;  %v668_v25 = vld [vmem:[%s853_s1 + $0x30] sm:$0xff]   ;;  %v672_v29 = vld [vmem:[%s853_s1 + $0x38] sm:$0xff]   ;;  %v681_v37 = vld [vmem:[%s853_s1 + $0x100] sm:$0xff]   ;;  %447 = vmatprep.mubr.bf16.mxu1 %v680_v36 }
   0xb   :  { %573 = vmatpush3.bf16.msra.mxu0 %v652_v9  ;;  %v669_v26 = vld [vmem:[%s853_s1 + $0xf0] sm:$0xff]   ;;  %v673_v30 = vld [vmem:[%s853_s1 + $0xf8] sm:$0xff]   ;;  %v682_v38 = vld [vmem:[%s853_s1 + $0x108] sm:$0xff]  }
   0xc   :  { %574 = vmatprep.subr.bf16.mxu0 %v655_v12  ;;  %v670_v27 = vld [vmem:[%s853_s1 + $0xb0] sm:$0xff]   ;;  %v676_v32 = vld [vmem:[%s854_s0 + $0x4] ss:$20 sps:$4 sm:$0xff]   ;;  %v678_v35 = vld [vmem:[%s854_s0 + $0x8] ss:$20 sps:$4 sm:$0xff]  }
   0xd   :  { %595 = vmatpush3.bf16.msra.mxu1 %v654_v11  ;;  %v674_v31 = vld [vmem:[%s854_s0] ss:$20 sps:$4 sm:$0xff]   ;;  %v677_v34 = vld [vmem:[%s853_s1 + $0xb8] sm:$0xff]   ;;  %406 = vmatprep.mubr.bf16.mxu0 %v676_v32  ;;  %v686_v42 = vld [vmem:[%s853_s1 + $0x128] sm:$0xff]  }
   0xe   :  { %596 = vmatprep.subr.bf16.mxu1 %v657_v14  ;;  %v683_v39 = vld [vmem:[%s853_s1 + $0x110] sm:$0xff]   ;;  %v684_v40 = vld [vmem:[%s853_s1 + $0x118] sm:$0xff]   ;;  %v685_v41 = vld [vmem:[%s853_s1 + $0x120] sm:$0xff]  }
   0xf   :  { %575 = vmatpush3.bf16.msra.mxu0 %v656_v13  ;;  %v687_v43 = vld [vmem:[%s853_s1 + $0x130] sm:$0xff]   ;;  %v688_v44 = vld [vmem:[%s853_s1 + $0x138] sm:$0xff]   ;;  %v513_v47 = vld [vmem:[%s855_s2] ss:$0 sm:$0xff] }
  0x10   :  { %576 = vmatprep.subr.bf16.mxu0 %v659_v16  ;;  %v689_v45 = vld [vmem:[%s854_s0 + $0x10] ss:$20 sps:$4 sm:$0xff]  }
  0x11   :  { %597 = vmatpush3.bf16.msra.mxu1 %v658_v15 }
  0x12   :  { %598 = vmatprep.subr.bf16.mxu1 %v661_v18 }
  0x13   :  { %577 = vmatpush3.bf16.msra.mxu0 %v660_v17 }
  0x14   :  { %578 = vmatprep.subr.bf16.mxu0 %v663_v20 }
  0x15   :  { %599 = vmatpush3.bf16.msra.mxu1 %v662_v19 }
  0x16   :  { %600 = vmatprep.subr.bf16.mxu1 %v665_v22 }
  0x17   :  { %579 = vmatpush3.bf16.msra.mxu0 %v664_v21 }
  0x18   :  { %580 = vmatprep.subr.bf16.mxu0 %v667_v24 }
  0x19   :  { %601 = vmatpush3.bf16.msra.mxu1 %v666_v23 }
  0x1a   :  { %602 = vmatprep.subr.bf16.mxu1 %v669_v26 }
  0x1b   :  { %581 = vmatpush3.bf16.msra.mxu0 %v668_v25 }
  0x1c   :  { %582 = vmatprep.subr.bf16.mxu0 %v671_v28 }
  0x1d   :  { %603 = vmatpush3.bf16.msra.mxu1 %v670_v27 }
  0x1e   :  { %604 = vmatprep.subr.bf16.mxu1 %v673_v30 }
  0x1f   :  { %583 = vmatpush3.bf16.msra.mxu0 %v672_v29 }
  0x20   :  { %621 = vmatprep.subr.bf16.mxu0 %v690_v33 }
  0x21   :  { %605 = vmatpush3.bf16.msra.mxu1 %v677_v34 }
  0x22   :  { %407 = vmatmul.mubr.bf16.vlgmr.msra.gmra.mrb[0].mxu0 %v674_v31 }
  0x23   :  { %637 = vmatprep.mubr.msk.bf16.mxu0 %vm691_vm0, %v690_v33  ;;  %622 = vmatpush3.bf16.msra.mxu0 %v681_v37 }
  0x24   :  { %448 = vmatmul.mubr.bf16.vlgmr.msra.gmra.mrb[0].mxu1 %v678_v35  ;;  %623 = vmatprep.subr.bf16.mxu0 %v690_v33 }
  0x27   :  { %624 = vmatpush3.bf16.msra.mxu0 %v682_v38 }
  0x28   :  { %625 = vmatprep.subr.bf16.mxu0 %v690_v33 }
  0x2b   :  { %626 = vmatpush3.bf16.msra.mxu0 %v683_v39 }
  0x2c   :  { %627 = vmatprep.subr.bf16.mxu0 %v690_v33 }
  0x2f   :  { %628 = vmatpush3.bf16.msra.mxu0 %v684_v40 }
  0x30   :  { %629 = vmatprep.subr.bf16.mxu0 %v690_v33 }
  0x33   :  { %630 = vmatpush3.bf16.msra.mxu0 %v685_v41 }
  0x34   :  { %631 = vmatprep.subr.bf16.mxu0 %v690_v33 }
  0x37   :  { %632 = vmatpush3.bf16.msra.mxu0 %v686_v42 }
  0x38   :  { %633 = vmatprep.subr.bf16.mxu0 %v690_v33 }
  0x3b   :  { %634 = vmatpush3.bf16.msra.mxu0 %v687_v43 }
  0x3c   :  { %635 = vmatprep.subr.bf16.mxu0 %v690_v33 }
  0x3f   :  { %636 = vmatpush3.bf16.msra.mxu0 %v688_v44 }
  0x42   :  { %638 = vmatmul.mubr.bf16.vlgmr.msra.gmra.mrb[4].mxu0 %v689_v45 }
  0xf5   :  { %v584_v46 = vpop.f32.mrb[0].mxu0 }
  0xf6   :  { %v585_v48 = vpop.f32.mrb[1].mxu0 }
  0xf7   :  { %v586_v49 = vadd.f32 %v585_v48, %v584_v46  ;;  %v587_v50 = vpop.f32.mrb[2].mxu0  ;;  %v606_v51 = vpop.f32.mrb[0].mxu1 }
  0xf8   :  { %v588_v52 = vpop.f32.mrb[3].mxu0  ;;  %v607_v55 = vpop.f32.mrb[1].mxu1 }
  0xf9   :  { %v409_v53 = vadd.f32 %v586_v49, %v513_v47  ;;  %v589_v54 = vadd.f32 %v588_v52, %v587_v50  ;;  %v608_v56 = vadd.f32 %v607_v55, %v606_v51  ;;  %v609_v57 = vpop.f32.mrb[2].mxu1 }
  0xfa   :  { %v610_v59 = vpop.f32.mrb[3].mxu1 }
  0xfb   :  { %v412_v58 = vadd.f32 %v589_v54, %v513_v47  ;;  %v611_v60 = vadd.f32 %v610_v59, %v609_v57  ;;  %v450_v61 = vadd.f32 %v608_v56, %v409_v53 }
  0xfd   :  { %v453_v62 = vadd.f32 %v611_v60, %v412_v58 }
 0x115   :  { %v490_v63 = vpop.f32.mrb[4].mxu0 }
 0x116   :  { %v491_v0 = vadd.f32 %v490_v63, %v450_v61  ;;  %v639_v1 = vpop.f32.mrb[5].mxu0 }
 0x117   :  { %v493_v2 = vpop.f32.mrb[6].mxu0 }
 0x118   :  { %v494_v3 = vadd.f32 %v493_v2, %v453_v62  ;;  %v640_v4 = vpop.f32.mrb[7].mxu0  ;;  %v497_v5 = vmax.f32 %v491_v0, 0.0 }
 0x11a   :  { %v498_v6 = vmax.f32 %v494_v3, 0.0 }
 0x11c   :  { %v566_v7 = vpack.c.bf16 %v498_v6, %v497_v5 }
 0x11e   :  { %567 = vst [vmem:[%s856_s3] sm:$0xff] %v566_v7  }

// kernel: resnet_forward.34
= control target key start
LH: loop header
LB: loop body
LE: loop exit
PB: predicated region body
PF: predicated region fallthrough
CT: control target
= control target key end

     0   :  { %v703_v33 = vmov 0.0   ;;  %vm704_vm0 = vmmov 0   ;;  %s874_s1 = inlined_call_operand.vmem [shape: bf16[640,128], index: 1, kind: input, shape index: {}]   ;;  %s875_s0 = inlined_call_operand.vmem [shape: bf16[16,640], index: 0, kind: input, shape index: {}]   ;;  %s876_s2 = inlined_call_operand.vmem [shape: f32[1,128], index: 2, kind: input, shape index: {}]   ;;  %s877_s3 = inlined_call_operand.vmem [shape: bf16[16,128], index: 3, kind: input, shape index: {}]   ;;  %s878_s4 = inlined_call_operand.vmem [shape: bf16[16,128], index: 4, kind: output, shape index: {}]  }
   0x1   :  { %v656_v0 = vld [vmem:[%s874_s1 + $0x40] sm:$0xff]   ;;  %v660_v4 = vld [vmem:[%s874_s1 + $0x48] sm:$0xff]   ;;  %v664_v8 = vld [vmem:[%s874_s1 + $0x50] sm:$0xff]  }
   0x2   :  { %v657_v1 = vld [vmem:[%s874_s1] sm:$0xff]   ;;  %581 = vmatprep.subr.bf16.mxu0 %v656_v0  ;;  %v661_v5 = vld [vmem:[%s874_s1 + $0x8] sm:$0xff]   ;;  %v665_v9 = vld [vmem:[%s874_s1 + $0x10] sm:$0xff]  }
   0x3   :  { %v658_v2 = vld [vmem:[%s874_s1 + $0xc0] sm:$0xff]   ;;  %582 = vmatpush3.bf16.msra.mxu0 %v657_v1  ;;  %v662_v6 = vld [vmem:[%s874_s1 + $0xc8] sm:$0xff]   ;;  %v666_v10 = vld [vmem:[%s874_s1 + $0xd0] sm:$0xff]  }
   0x4   :  { %v659_v3 = vld [vmem:[%s874_s1 + $0x80] sm:$0xff]   ;;  %603 = vmatprep.subr.bf16.mxu1 %v658_v2  ;;  %583 = vmatprep.subr.bf16.mxu0 %v660_v4  ;;  %v663_v7 = vld [vmem:[%s874_s1 + $0x88] sm:$0xff]   ;;  %v667_v11 = vld [vmem:[%s874_s1 + $0x90] sm:$0xff]  }
   0x5   :  { %604 = vmatpush3.bf16.msra.mxu1 %v659_v3  ;;  %v668_v12 = vld [vmem:[%s874_s1 + $0x58] sm:$0xff]   ;;  %v672_v16 = vld [vmem:[%s874_s1 + $0x60] sm:$0xff]   ;;  %v676_v20 = vld [vmem:[%s874_s1 + $0x68] sm:$0xff]  }
   0x6   :  { %605 = vmatprep.subr.bf16.mxu1 %v662_v6  ;;  %v669_v13 = vld [vmem:[%s874_s1 + $0x18] sm:$0xff]   ;;  %v673_v17 = vld [vmem:[%s874_s1 + $0x20] sm:$0xff]   ;;  %v677_v21 = vld [vmem:[%s874_s1 + $0x28] sm:$0xff]  }
   0x7   :  { %584 = vmatpush3.bf16.msra.mxu0 %v661_v5  ;;  %v670_v14 = vld [vmem:[%s874_s1 + $0xd8] sm:$0xff]   ;;  %v674_v18 = vld [vmem:[%s874_s1 + $0xe0] sm:$0xff]   ;;  %v678_v22 = vld [vmem:[%s874_s1 + $0xe8] sm:$0xff]  }
   0x8   :  { %585 = vmatprep.subr.bf16.mxu0 %v664_v8  ;;  %v671_v15 = vld [vmem:[%s874_s1 + $0x98] sm:$0xff]   ;;  %v675_v19 = vld [vmem:[%s874_s1 + $0xa0] sm:$0xff]   ;;  %v679_v23 = vld [vmem:[%s874_s1 + $0xa8] sm:$0xff]  }
   0x9   :  { %606 = vmatpush3.bf16.msra.mxu1 %v663_v7  ;;  %v680_v24 = vld [vmem:[%s874_s1 + $0x70] sm:$0xff]   ;;  %v684_v28 = vld [vmem:[%s874_s1 + $0x78] sm:$0xff]   ;;  %v693_v36 = vld [vmem:[%s875_s0 + $0xc] ss:$20 sps:$4 sm:$0xff]  }
   0xa   :  { %607 = vmatprep.subr.bf16.mxu1 %v666_v10  ;;  %v681_v25 = vld [vmem:[%s874_s1 + $0x30] sm:$0xff]   ;;  %v685_v29 = vld [vmem:[%s874_s1 + $0x38] sm:$0xff]   ;;  %v694_v37 = vld [vmem:[%s874_s1 + $0x100] sm:$0xff]   ;;  %450 = vmatprep.mubr.bf16.mxu1 %v693_v36 }
   0xb   :  { %586 = vmatpush3.bf16.msra.mxu0 %v665_v9  ;;  %v682_v26 = vld [vmem:[%s874_s1 + $0xf0] sm:$0xff]   ;;  %v686_v30 = vld [vmem:[%s874_s1 + $0xf8] sm:$0xff]   ;;  %v695_v38 = vld [vmem:[%s874_s1 + $0x108] sm:$0xff]  }
   0xc   :  { %587 = vmatprep.subr.bf16.mxu0 %v668_v12  ;;  %v683_v27 = vld [vmem:[%s874_s1 + $0xb0] sm:$0xff]   ;;  %v689_v32 = vld [vmem:[%s875_s0 + $0x4] ss:$20 sps:$4 sm:$0xff]   ;;  %v691_v35 = vld [vmem:[%s875_s0 + $0x8] ss:$20 sps:$4 sm:$0xff]  }
   0xd   :  { %608 = vmatpush3.bf16.msra.mxu1 %v667_v11  ;;  %v687_v31 = vld [vmem:[%s875_s0] ss:$20 sps:$4 sm:$0xff]   ;;  %v690_v34 = vld [vmem:[%s874_s1 + $0xb8] sm:$0xff]   ;;  %409 = vmatprep.mubr.bf16.mxu0 %v689_v32  ;;  %v699_v42 = vld [vmem:[%s874_s1 + $0x128] sm:$0xff]  }
   0xe   :  { %609 = vmatprep.subr.bf16.mxu1 %v670_v14  ;;  %v696_v39 = vld [vmem:[%s874_s1 + $0x110] sm:$0xff]   ;;  %v697_v40 = vld [vmem:[%s874_s1 + $0x118] sm:$0xff]   ;;  %v698_v41 = vld [vmem:[%s874_s1 + $0x120] sm:$0xff]  }
   0xf   :  { %588 = vmatpush3.bf16.msra.mxu0 %v669_v13  ;;  %v700_v43 = vld [vmem:[%s874_s1 + $0x130] sm:$0xff]   ;;  %v701_v44 = vld [vmem:[%s874_s1 + $0x138] sm:$0xff]   ;;  %v522_v47 = vld [vmem:[%s876_s2] ss:$0 sm:$0xff] }
  0x10   :  { %589 = vmatprep.subr.bf16.mxu0 %v672_v16  ;;  %v702_v45 = vld [vmem:[%s875_s0 + $0x10] ss:$20 sps:$4 sm:$0xff]  }
  0x11   :  { %610 = vmatpush3.bf16.msra.mxu1 %v671_v15  ;;  %v573_v63 = vld [vmem:[%s877_s3] sm:$0xff]  }
  0x12   :  { %611 = vmatprep.subr.bf16.mxu1 %v674_v18  ;;  %v574_v0 = vunpack.c.l.bf16 %v573_v63  ;;  %v575_v4 = vunpack.c.h.bf16 %v573_v63 }
  0x13   :  { %590 = vmatpush3.bf16.msra.mxu0 %v673_v17 }
  0x14   :  { %591 = vmatprep.subr.bf16.mxu0 %v676_v20 }
  0x15   :  { %612 = vmatpush3.bf16.msra.mxu1 %v675_v19 }
  0x16   :  { %613 = vmatprep.subr.bf16.mxu1 %v678_v22 }
  0x17   :  { %592 = vmatpush3.bf16.msra.mxu0 %v677_v21 }
  0x18   :  { %593 = vmatprep.subr.bf16.mxu0 %v680_v24 }
  0x19   :  { %614 = vmatpush3.bf16.msra.mxu1 %v679_v23 }
  0x1a   :  { %615 = vmatprep.subr.bf16.mxu1 %v682_v26 }
  0x1b   :  { %594 = vmatpush3.bf16.msra.mxu0 %v681_v25 }
  0x1c   :  { %595 = vmatprep.subr.bf16.mxu0 %v684_v28 }
  0x1d   :  { %616 = vmatpush3.bf16.msra.mxu1 %v683_v27 }
  0x1e   :  { %617 = vmatprep.subr.bf16.mxu1 %v686_v30 }
  0x1f   :  { %596 = vmatpush3.bf16.msra.mxu0 %v685_v29 }
  0x20   :  { %634 = vmatprep.subr.bf16.mxu0 %v703_v33 }
  0x21   :  { %618 = vmatpush3.bf16.msra.mxu1 %v690_v34 }
  0x22   :  { %410 = vmatmul.mubr.bf16.vlgmr.msra.gmra.mrb[0].mxu0 %v687_v31 }
  0x23   :  { %650 = vmatprep.mubr.msk.bf16.mxu0 %vm704_vm0, %v703_v33  ;;  %635 = vmatpush3.bf16.msra.mxu0 %v694_v37 }
  0x24   :  { %451 = vmatmul.mubr.bf16.vlgmr.msra.gmra.mrb[0].mxu1 %v691_v35  ;;  %636 = vmatprep.subr.bf16.mxu0 %v703_v33 }
  0x27   :  { %637 = vmatpush3.bf16.msra.mxu0 %v695_v38 }
  0x28   :  { %638 = vmatprep.subr.bf16.mxu0 %v703_v33 }
  0x2b   :  { %639 = vmatpush3.bf16.msra.mxu0 %v696_v39 }
  0x2c   :  { %640 = vmatprep.subr.bf16.mxu0 %v703_v33 }
  0x2f   :  { %641 = vmatpush3.bf16.msra.mxu0 %v697_v40 }
  0x30   :  { %642 = vmatprep.subr.bf16.mxu0 %v703_v33 }
  0x33   :  { %643 = vmatpush3.bf16.msra.mxu0 %v698_v41 }
  0x34   :  { %644 = vmatprep.subr.bf16.mxu0 %v703_v33 }
  0x37   :  { %645 = vmatpush3.bf16.msra.mxu0 %v699_v42 }
  0x38   :  { %646 = vmatprep.subr.bf16.mxu0 %v703_v33 }
  0x3b   :  { %647 = vmatpush3.bf16.msra.mxu0 %v700_v43 }
  0x3c   :  { %648 = vmatprep.subr.bf16.mxu0 %v703_v33 }
  0x3f   :  { %649 = vmatpush3.bf16.msra.mxu0 %v701_v44 }
  0x42   :  { %651 = vmatmul.mubr.bf16.vlgmr.msra.gmra.mrb[4].mxu0 %v702_v45 }
  0xf5   :  { %v597_v46 = vpop.f32.mrb[0].mxu0 }
  0xf6   :  { %v598_v48 = vpop.f32.mrb[1].mxu0 }
  0xf7   :  { %v599_v49 = vadd.f32 %v598_v48, %v597_v46  ;;  %v600_v50 = vpop.f32.mrb[2].mxu0  ;;  %v619_v51 = vpop.f32.mrb[0].mxu1 }
  0xf8   :  { %v601_v52 = vpop.f32.mrb[3].mxu0  ;;  %v620_v55 = vpop.f32.mrb[1].mxu1 }
  0xf9   :  { %v412_v53 = vadd.f32 %v599_v49, %v522_v47  ;;  %v602_v54 = vadd.f32 %v601_v52, %v600_v50  ;;  %v621_v56 = vadd.f32 %v620_v55, %v619_v51  ;;  %v622_v57 = vpop.f32.mrb[2].mxu1 }
  0xfa   :  { %v623_v59 = vpop.f32.mrb[3].mxu1 }
  0xfb   :  { %v415_v58 = vadd.f32 %v602_v54, %v522_v47  ;;  %v624_v60 = vadd.f32 %v623_v59, %v622_v57  ;;  %v453_v61 = vadd.f32 %v621_v56, %v412_v53 }
  0xfd   :  { %v456_v62 = vadd.f32 %v624_v60, %v415_v58 }
 0x115   :  { %v493_v1 = vpop.f32.mrb[4].mxu0 }
 0x116   :  { %v494_v2 = vadd.f32 %v493_v1, %v453_v61  ;;  %v652_v3 = vpop.f32.mrb[5].mxu0 }
 0x117   :  { %v496_v5 = vpop.f32.mrb[6].mxu0 }
 0x118   :  { %v504_v6 = vadd.f32 %v574_v0, %v494_v2  ;;  %v497_v7 = vadd.f32 %v496_v5, %v456_v62  ;;  %v653_v8 = vpop.f32.mrb[7].mxu0 }
 0x11a   :  { %v505_v9 = vadd.f32 %v575_v4, %v497_v7  ;;  %v506_v10 = vmax.f32 %v504_v6, 0.0 }
 0x11c   :  { %v507_v11 = vmax.f32 %v505_v9, 0.0 }
 0x11e   :  { %v579_v12 = vpack.c.bf16 %v507_v11, %v506_v10 }
 0x120   :  { %580 = vst [vmem:[%s878_s4] sm:$0xff] %v579_v12  }

// kernel: resnet_forward.32
= control target key start
LH: loop header
LB: loop body
LE: loop exit
PB: predicated region body
PF: predicated region fallthrough
CT: control target
= control target key end

     0   :  { %v755_v33 = vmov 0.0   ;;  %vm756_vm0 = vmmov 0   ;;  %s929_s0 = inlined_call_operand.vmem [shape: bf16[16,640], index: 0, kind: input, shape index: {}]   ;;  %s930_s1 = inlined_call_operand.vmem [shape: bf16[640,128], index: 1, kind: input, shape index: {}]   ;;  %s931_s2 = inlined_call_operand.vmem [shape: f32[1,128], index: 2, kind: input, shape index: {}]   ;;  %s932_s3 = inlined_call_operand.vmem [shape: bf16[16,256], index: 3, kind: input, shape index: {}]   ;;  %s933_s4 = inlined_call_operand.vmem [shape: bf16[16,128], index: 4, kind: output, shape index: {}]  }
   0x1   :  { %v708_v0 = vld [vmem:[%s930_s1 + $0x40] sm:$0xff]   ;;  %v712_v4 = vld [vmem:[%s930_s1 + $0x48] sm:$0xff]   ;;  %v716_v8 = vld [vmem:[%s930_s1 + $0x50] sm:$0xff]  }
   0x2   :  { %v709_v1 = vld [vmem:[%s930_s1] sm:$0xff]   ;;  %633 = vmatprep.subr.bf16.mxu0 %v708_v0  ;;  %v713_v5 = vld [vmem:[%s930_s1 + $0x8] sm:$0xff]   ;;  %v717_v9 = vld [vmem:[%s930_s1 + $0x10] sm:$0xff]  }
   0x3   :  { %v710_v2 = vld [vmem:[%s930_s1 + $0xc0] sm:$0xff]   ;;  %634 = vmatpush3.bf16.msra.mxu0 %v709_v1  ;;  %v714_v6 = vld [vmem:[%s930_s1 + $0xc8] sm:$0xff]   ;;  %v718_v10 = vld [vmem:[%s930_s1 + $0xd0] sm:$0xff]  }
   0x4   :  { %v711_v3 = vld [vmem:[%s930_s1 + $0x80] sm:$0xff]   ;;  %655 = vmatprep.subr.bf16.mxu1 %v710_v2  ;;  %635 = vmatprep.subr.bf16.mxu0 %v712_v4  ;;  %v715_v7 = vld [vmem:[%s930_s1 + $0x88] sm:$0xff]   ;;  %v719_v11 = vld [vmem:[%s930_s1 + $0x90] sm:$0xff]  }
   0x5   :  { %656 = vmatpush3.bf16.msra.mxu1 %v711_v3  ;;  %v720_v12 = vld [vmem:[%s930_s1 + $0x58] sm:$0xff]   ;;  %v724_v16 = vld [vmem:[%s930_s1 + $0x60] sm:$0xff]   ;;  %v728_v20 = vld [vmem:[%s930_s1 + $0x68] sm:$0xff]  }
   0x6   :  { %657 = vmatprep.subr.bf16.mxu1 %v714_v6  ;;  %v721_v13 = vld [vmem:[%s930_s1 + $0x18] sm:$0xff]   ;;  %v725_v17 = vld [vmem:[%s930_s1 + $0x20] sm:$0xff]   ;;  %v729_v21 = vld [vmem:[%s930_s1 + $0x28] sm:$0xff]  }
   0x7   :  { %636 = vmatpush3.bf16.msra.mxu0 %v713_v5  ;;  %v722_v14 = vld [vmem:[%s930_s1 + $0xd8] sm:$0xff]   ;;  %v726_v18 = vld [vmem:[%s930_s1 + $0xe0] sm:$0xff]   ;;  %v730_v22 = vld [vmem:[%s930_s1 + $0xe8] sm:$0xff]  }
   0x8   :  { %637 = vmatprep.subr.bf16.mxu0 %v716_v8  ;;  %v723_v15 = vld [vmem:[%s930_s1 + $0x98] sm:$0xff]   ;;  %v727_v19 = vld [vmem:[%s930_s1 + $0xa0] sm:$0xff]   ;;  %v731_v23 = vld [vmem:[%s930_s1 + $0xa8] sm:$0xff]  }
   0x9   :  { %658 = vmatpush3.bf16.msra.mxu1 %v715_v7  ;;  %v732_v24 = vld [vmem:[%s930_s1 + $0x70] sm:$0xff]   ;;  %v736_v28 = vld [vmem:[%s930_s1 + $0x78] sm:$0xff]   ;;  %v745_v36 = vld [vmem:[%s929_s0 + $0xc] ss:$20 sps:$4 sm:$0xff]  }
   0xa   :  { %659 = vmatprep.subr.bf16.mxu1 %v718_v10  ;;  %v733_v25 = vld [vmem:[%s930_s1 + $0x30] sm:$0xff]   ;;  %v737_v29 = vld [vmem:[%s930_s1 + $0x38] sm:$0xff]   ;;  %v746_v37 = vld [vmem:[%s930_s1 + $0x100] sm:$0xff]   ;;  %496 = vmatprep.mubr.bf16.mxu1 %v745_v36 }
   0xb   :  { %638 = vmatpush3.bf16.msra.mxu0 %v717_v9  ;;  %v734_v26 = vld [vmem:[%s930_s1 + $0xf0] sm:$0xff]   ;;  %v738_v30 = vld [vmem:[%s930_s1 + $0xf8] sm:$0xff]   ;;  %v747_v38 = vld [vmem:[%s930_s1 + $0x108] sm:$0xff]  }
   0xc   :  { %639 = vmatprep.subr.bf16.mxu0 %v720_v12  ;;  %v735_v27 = vld [vmem:[%s930_s1 + $0xb0] sm:$0xff]   ;;  %v741_v32 = vld [vmem:[%s929_s0 + $0x4] ss:$20 sps:$4 sm:$0xff]   ;;  %v743_v35 = vld [vmem:[%s929_s0 + $0x8] ss:$20 sps:$4 sm:$0xff]  }
   0xd   :  { %660 = vmatpush3.bf16.msra.mxu1 %v719_v11  ;;  %v739_v31 = vld [vmem:[%s929_s0] ss:$20 sps:$4 sm:$0xff]   ;;  %v742_v34 = vld [vmem:[%s930_s1 + $0xb8] sm:$0xff]   ;;  %455 = vmatprep.mubr.bf16.mxu0 %v741_v32  ;;  %v751_v42 = vld [vmem:[%s930_s1 + $0x128] sm:$0xff]  }
   0xe   :  { %661 = vmatprep.subr.bf16.mxu1 %v722_v14  ;;  %v748_v39 = vld [vmem:[%s930_s1 + $0x110] sm:$0xff]   ;;  %v749_v40 = vld [vmem:[%s930_s1 + $0x118] sm:$0xff]   ;;  %v750_v41 = vld [vmem:[%s930_s1 + $0x120] sm:$0xff]  }
   0xf   :  { %640 = vmatpush3.bf16.msra.mxu0 %v721_v13  ;;  %v752_v43 = vld [vmem:[%s930_s1 + $0x130] sm:$0xff]   ;;  %v753_v44 = vld [vmem:[%s930_s1 + $0x138] sm:$0xff]   ;;  %v572_v46 = vld [vmem:[%s932_s3 + $0x4] sm:$0xf] }
  0x10   :  { %641 = vmatprep.subr.bf16.mxu0 %v724_v16  ;;  %v754_v45 = vld [vmem:[%s929_s0 + $0x10] ss:$20 sps:$4 sm:$0xff]   ;;  %v573_v47 = vld [vmem:[%s932_s3 + $0xc] sm:$0xf]  ;;  %34 = vst [vmem:[#allocation2] sm:$0xf] %v572_v46 }
  0x11   :  { %662 = vmatpush3.bf16.msra.mxu1 %v723_v15  ;;  %36 = vst [vmem:[#allocation2 + $0x4] sm:$0xf] %v573_v47  ;;  %v574_v49 = vld [vmem:[%s931_s2] ss:$0 sm:$0xff] }
  0x12   :  { %663 = vmatprep.subr.bf16.mxu1 %v726_v18 }
  0x13   :  { %642 = vmatpush3.bf16.msra.mxu0 %v725_v17 }
  0x14   :  { %643 = vmatprep.subr.bf16.mxu0 %v728_v20 }
  0x15   :  { %664 = vmatpush3.bf16.msra.mxu1 %v727_v19 }
  0x16   :  { %665 = vmatprep.subr.bf16.mxu1 %v730_v22 }
  0x17   :  { %644 = vmatpush3.bf16.msra.mxu0 %v729_v21 }
  0x18   :  { %645 = vmatprep.subr.bf16.mxu0 %v732_v24  ;;  %v625_v1 = vld [vmem:[#allocation2] sm:$0xff]  }
  0x19   :  { %666 = vmatpush3.bf16.msra.mxu1 %v731_v23  ;;  %v626_v2 = vunpack.c.l.bf16 %v625_v1  ;;  %v627_v6 = vunpack.c.h.bf16 %v625_v1 }
  0x1a   :  { %667 = vmatprep.subr.bf16.mxu1 %v734_v26 }
  0x1b   :  { %646 = vmatpush3.bf16.msra.mxu0 %v733_v25 }
  0x1c   :  { %647 = vmatprep.subr.bf16.mxu0 %v736_v28 }
  0x1d   :  { %668 = vmatpush3.bf16.msra.mxu1 %v735_v27 }
  0x1e   :  { %669 = vmatprep.subr.bf16.mxu1 %v738_v30 }
  0x1f   :  { %648 = vmatpush3.bf16.msra.mxu0 %v737_v29 }
  0x20   :  { %686 = vmatprep.subr.bf16.mxu0 %v755_v33 }
  0x21   :  { %670 = vmatpush3.bf16.msra.mxu1 %v742_v34 }
  0x22   :  { %456 = vmatmul.mubr.bf16.vlgmr.msra.gmra.mrb[0].mxu0 %v739_v31 }
  0x23   :  { %702 = vmatprep.mubr.msk.bf16.mxu0 %vm756_vm0, %v755_v33  ;;  %687 = vmatpush3.bf16.msra.mxu0 %v746_v37 }
  0x24   :  { %497 = vmatmul.mubr.bf16.vlgmr.msra.gmra.mrb[0].mxu1 %v743_v35  ;;  %688 = vmatprep.subr.bf16.mxu0 %v755_v33 }
  0x27   :  { %689 = vmatpush3.bf16.msra.mxu0 %v747_v38 }
  0x28   :  { %690 = vmatprep.subr.bf16.mxu0 %v755_v33 }
  0x2b   :  { %691 = vmatpush3.bf16.msra.mxu0 %v748_v39 }
  0x2c   :  { %692 = vmatprep.subr.bf16.mxu0 %v755_v33 }
  0x2f   :  { %693 = vmatpush3.bf16.msra.mxu0 %v749_v40 }
  0x30   :  { %694 = vmatprep.subr.bf16.mxu0 %v755_v33 }
  0x33   :  { %695 = vmatpush3.bf16.msra.mxu0 %v750_v41 }
  0x34   :  { %696 = vmatprep.subr.bf16.mxu0 %v755_v33 }
  0x37   :  { %697 = vmatpush3.bf16.msra.mxu0 %v751_v42 }
  0x38   :  { %698 = vmatprep.subr.bf16.mxu0 %v755_v33 }
  0x3b   :  { %699 = vmatpush3.bf16.msra.mxu0 %v752_v43 }
  0x3c   :  { %700 = vmatprep.subr.bf16.mxu0 %v755_v33 }
  0x3f   :  { %701 = vmatpush3.bf16.msra.mxu0 %v753_v44 }
  0x42   :  { %703 = vmatmul.mubr.bf16.vlgmr.msra.gmra.mrb[4].mxu0 %v754_v45 }
  0xf5   :  { %v649_v48 = vpop.f32.mrb[0].mxu0 }
  0xf6   :  { %v650_v50 = vpop.f32.mrb[1].mxu0 }
  0xf7   :  { %v651_v51 = vadd.f32 %v650_v50, %v649_v48  ;;  %v652_v52 = vpop.f32.mrb[2].mxu0  ;;  %v671_v53 = vpop.f32.mrb[0].mxu1 }
  0xf8   :  { %v653_v54 = vpop.f32.mrb[3].mxu0  ;;  %v672_v57 = vpop.f32.mrb[1].mxu1 }
  0xf9   :  { %v458_v55 = vadd.f32 %v651_v51, %v574_v49  ;;  %v654_v56 = vadd.f32 %v653_v54, %v652_v52  ;;  %v673_v58 = vadd.f32 %v672_v57, %v671_v53  ;;  %v674_v59 = vpop.f32.mrb[2].mxu1 }
  0xfa   :  { %v675_v61 = vpop.f32.mrb[3].mxu1 }
  0xfb   :  { %v461_v60 = vadd.f32 %v654_v56, %v574_v49  ;;  %v676_v62 = vadd.f32 %v675_v61, %v674_v59  ;;  %v499_v63 = vadd.f32 %v673_v58, %v458_v55 }
  0xfd   :  { %v502_v0 = vadd.f32 %v676_v62, %v461_v60 }
 0x115   :  { %v539_v3 = vpop.f32.mrb[4].mxu0 }
 0x116   :  { %v540_v4 = vadd.f32 %v539_v3, %v499_v63  ;;  %v704_v5 = vpop.f32.mrb[5].mxu0 }
 0x117   :  { %v542_v7 = vpop.f32.mrb[6].mxu0 }
 0x118   :  { %v550_v8 = vadd.f32 %v626_v2, %v540_v4  ;;  %v543_v9 = vadd.f32 %v542_v7, %v502_v0  ;;  %v705_v10 = vpop.f32.mrb[7].mxu0 }
 0x11a   :  { %v551_v11 = vadd.f32 %v627_v6, %v543_v9  ;;  %v552_v12 = vmax.f32 %v550_v8, 0.0 }
 0x11c   :  { %v553_v13 = vmax.f32 %v551_v11, 0.0 }
 0x11e   :  { %v631_v14 = vpack.c.bf16 %v553_v13, %v552_v12 }
 0x120   :  { %632 = vst [vmem:[%s933_s4] sm:$0xff] %v631_v14  }

</bundles_post_ra>
